<compile_context>
chip_gen: v6e
topology: v6e:2x2x1
jax: 0.10.0
libtpu: 0.0.40
codegen_flags: <defaults>
</compile_context>

<pallas_src>
import functools

import numpy as np
import jax
import jax.numpy as jnp
from jax import lax
from jax.experimental import pallas as pl
from jax.experimental.pallas import tpu as pltpu

# ----------------------------- model config ---------------------------------
N_CLS, S, N_CTX, DIM = 2, 3, 8, 128          # small synthetic, lane-dense D
N_HEADS, N_LAYERS, PROJ_DIM = 4, 2, 128
VOCAB = 100                                   # fake vocab (EOT = VOCAB - 1)


# ----------------------------- fused Pallas kernel ---------------------------
def _text_encoder_kernel(eot_ref,                       # scalar prefetch (SMEM)
                         x_ref, pos_ref,
                         wqkv_ref, bqkv_ref, wo_ref, bo_ref,
                         g1_ref, b1_ref, g2_ref, b2_ref,
                         w1_ref, c1_ref, w2_ref, c2_ref,
                         gf_ref, bf_ref, proj_ref,
                         o_ref,
                         *, num_heads, num_layers, s, n_ctx, dim):
    """Full text encoder for one class (s ensemble sequences) per grid step."""
    c = pl.program_id(0)
    T, D, H = n_ctx, dim, num_heads
    hd = D // H
    BT = s * T
    scale = 1.0 / (hd ** 0.5)

    def ln(v, g, b):
        mu = jnp.mean(v, axis=-1, keepdims=True)
        var = jnp.mean(jnp.square(v - mu), axis=-1, keepdims=True)
        return (v - mu) * lax.rsqrt(var + 1e-5) * g + b

    def bf16_dot(a, w):   # bf16 MXU operands, f32 accumulation
        return jnp.dot(a.astype(jnp.bfloat16), w,
                       preferred_element_type=jnp.float32)

    # positional add (residual stream kept in f32)
    x = x_ref[0].astype(jnp.float32) + pos_ref[...][None]      # (s, T, D)
    x = x.reshape(BT, D)                                        # batched matmuls

    rows = lax.broadcasted_iota(jnp.int32, (T, T), 0)
    cols = lax.broadcasted_iota(jnp.int32, (T, T), 1)
    causal = (cols <= rows)[None]                                # (1, T, T)

    for l in range(num_layers):                                  # static unroll
        # ---------------- self-attention (pre-LN) ----------------
        h = ln(x, g1_ref[l], b1_ref[l])                          # (BT, D)
        qkv = bf16_dot(h, wqkv_ref[l]) + bqkv_ref[l]             # (BT, 3D) f32
        q = qkv[:, :D].reshape(s, T, D)                          # aligned 128-lane slices
        k = qkv[:, D:2 * D].reshape(s, T, D)
        v = qkv[:, 2 * D:].reshape(s, T, D)

        head_outs = []
        for hh in range(H):                                      # static head loop,
            sl = slice(hh * hd, (hh + 1) * hd)                   # batched over s
            sc = jnp.einsum('bqd,bkd->bqk',
                            q[:, :, sl].astype(jnp.bfloat16),
                            k[:, :, sl].astype(jnp.bfloat16),
                            preferred_element_type=jnp.float32) * scale
            sc = jnp.where(causal, sc, -1e30)                    # f32 scores: safe fill
            m = jnp.max(sc, axis=-1, keepdims=True)
            p = jnp.exp(sc - m)
            denom = jnp.sum(p, axis=-1, keepdims=True)
            p = p * pl.reciprocal(denom, approx=True)            # EUP
            head_outs.append(
                jnp.einsum('bqk,bkd->bqd', p.astype(jnp.bfloat16),
                           v[:, :, sl].astype(jnp.bfloat16),
                           preferred_element_type=jnp.float32))
        attn = jnp.concatenate(head_outs, axis=-1).reshape(BT, D)
        x = x + bf16_dot(attn, wo_ref[l]) + bo_ref[l]

        # ---------------- MLP (QuickGELU) ----------------
        h2 = ln(x, g2_ref[l], b2_ref[l])
        m1 = bf16_dot(h2, w1_ref[l]) + c1_ref[l]                 # (BT, 4D)
        m1 = m1 * jax.nn.sigmoid(1.702 * m1)
        x = x + bf16_dot(m1, w2_ref[l]) + c2_ref[l]

    # ---------------- head: EOT gather + ln_final + projection ----------------
    x3 = x.reshape(s, T, D)
    e = eot_ref[c]                                               # scalar from SMEM
    tmask = (lax.broadcasted_iota(jnp.int32, (s, T, D), 1) == e).astype(jnp.float32)
    gathered = jnp.sum(x3 * tmask, axis=1)                       # (s, D) one-hot gather
    nrm = ln(gathered, gf_ref[...], bf_ref[...])                 # ln_final (per-token)
    y = bf16_dot(nrm, proj_ref[...])                             # (s, P), P=128 lane-dense
    o_ref[0] = y.astype(o_ref.dtype)


# ----------------------------- forward (Pallas) ------------------------------
def text_encoder_forward(params, prompts, tokenized_prompts):
    n_cls, s, T, D = prompts.shape
    P = params['proj'].shape[-1]
    L = N_LAYERS
    eot = jnp.argmax(tokenized_prompts, axis=-1).astype(jnp.int32)   # (n_cls,)

    kernel = functools.partial(_text_encoder_kernel, num_heads=N_HEADS,
                               num_layers=L, s=s, n_ctx=T, dim=D)

    grid_spec = pltpu.PrefetchScalarGridSpec(
        num_scalar_prefetch=1,
        grid=(n_cls,),
        in_specs=[
            pl.BlockSpec((1, s, T, D), lambda c, e: (c, 0, 0, 0)),   # prompts
            pl.BlockSpec((T, D),        lambda c, e: (0, 0)),        # pos
            pl.BlockSpec((L, D, 3 * D), lambda c, e: (0, 0, 0)),     # wqkv (bf16)
            pl.BlockSpec((L, 1, 3 * D), lambda c, e: (0, 0, 0)),     # bqkv
            pl.BlockSpec((L, D, D),     lambda c, e: (0, 0, 0)),     # wo   (bf16)
            pl.BlockSpec((L, 1, D),     lambda c, e: (0, 0, 0)),     # bo
            pl.BlockSpec((L, 1, D),     lambda c, e: (0, 0, 0)),     # g1
            pl.BlockSpec((L, 1, D),     lambda c, e: (0, 0, 0)),     # b1
            pl.BlockSpec((L, 1, D),     lambda c, e: (0, 0, 0)),     # g2
            pl.BlockSpec((L, 1, D),     lambda c, e: (0, 0, 0)),     # b2
            pl.BlockSpec((L, D, 4 * D), lambda c, e: (0, 0, 0)),     # w1   (bf16)
            pl.BlockSpec((L, 1, 4 * D), lambda c, e: (0, 0, 0)),     # c1
            pl.BlockSpec((L, 4 * D, D), lambda c, e: (0, 0, 0)),     # w2   (bf16)
            pl.BlockSpec((L, 1, D),     lambda c, e: (0, 0, 0)),     # c2
            pl.BlockSpec((1, D),        lambda c, e: (0, 0)),        # gf
            pl.BlockSpec((1, D),        lambda c, e: (0, 0)),        # bf
            pl.BlockSpec((D, P),        lambda c, e: (0, 0)),        # proj (bf16)
        ],
        out_specs=pl.BlockSpec((1, s, P), lambda c, e: (c, 0, 0)),
    )

    return pl.pallas_call(
        kernel,
        grid_spec=grid_spec,
        out_shape=jax.ShapeDtypeStruct((n_cls, s, P), jnp.float32),
        compiler_params=pltpu.CompilerParams(
            dimension_semantics=("parallel",)),       # 2 balanced steps -> v7x megacore
    )(eot, prompts, params['pos'],
      params['wqkv'], params['bqkv'], params['wo'], params['bo'],
      params['g1'], params['b1'], params['g2'], params['b2'],
      params['w1'], params['c1'], params['w2'], params['c2'],
      params['gf'], params['bf'], params['proj'])


# ----------------------------- parameters ------------------------------------
def init_params(key):
    ks = iter(jax.random.split(key, 16))

    def nrm(shape, scale=0.02, dtype=jnp.float32):
        return (jax.random.normal(next(ks), shape, jnp.float32) * scale).astype(dtype)

    L, D, P = N_LAYERS, DIM, PROJ_DIM
    bf16 = jnp.bfloat16
    return {
        'pos':  nrm((N_CTX, D), 0.01),
        'wqkv': nrm((L, D, 3 * D), 0.02, bf16),
        'bqkv': nrm((L, 1, 3 * D), 0.01),
        'wo':   nrm((L, D, D), 0.02, bf16),
        'bo':   nrm((L, 1, D), 0.01),
        'g1':   jnp.ones((L, 1, D), jnp.float32),
        'b1':   nrm((L, 1, D), 0.01),
        'g2':   jnp.ones((L, 1, D), jnp.float32),
        'b2':   nrm((L, 1, D), 0.01),
        'w1':   nrm((L, D, 4 * D), 0.02, bf16),
        'c1':   nrm((L, 1, 4 * D), 0.01),
        'w2':   nrm((L, 4 * D, D), 0.02, bf16),
        'c2':   nrm((L, 1, D), 0.01),
        'gf':   jnp.ones((1, D), jnp.float32),
        'bf':   nrm((1, D), 0.01),
        'proj': nrm((D, P), D ** -0.5, bf16),
    }


# ----------------------------- pure-JAX reference ----------------------------
def reference_forward(params, prompts, tokenized_prompts):
    f32, bf16 = jnp.float32, jnp.bfloat16

    def ln(v, g, b):
        mu = jnp.mean(v, -1, keepdims=True)
        var = jnp.mean(jnp.square(v - mu), -1, keepdims=True)
        return (v - mu) * lax.rsqrt(var + 1e-5) * g + b

    def bdot(a, w):
        return jnp.dot(a.astype(bf16), w.astype(bf16), preferred_element_type=f32)

    n_cls, s, T, D = prompts.shape
    H, hd = N_HEADS, D // N_HEADS
    B = n_cls * s
    scale = 1.0 / (hd ** 0.5)

    x = (prompts.astype(f32) + params['pos'][None, None]).reshape(B, T, D)
    causal = jnp.tril(jnp.ones((T, T), bool))
    for l in range(N_LAYERS):
        h = ln(x, params['g1'][l], params['b1'][l])
        qkv = bdot(h.reshape(B * T, D), params['wqkv'][l]) + params['bqkv'][l]
        q = qkv[:, :D].reshape(B, T, H, hd)
        k = qkv[:, D:2 * D].reshape(B, T, H, hd)
        v = qkv[:, 2 * D:].reshape(B, T, H, hd)
        sc = jnp.einsum('bqhd,bkhd->bhqk', q.astype(bf16), k.astype(bf16),
                        preferred_element_type=f32) * scale
        sc = jnp.where(causal, sc, -1e30)
        p = jax.nn.softmax(sc, axis=-1)
        a = jnp.einsum('bhqk,bkhd->bqhd', p.astype(bf16), v.astype(bf16),
                       preferred_element_type=f32).reshape(B, T, D)
        x = x + (bdot(a.reshape(B * T, D), params['wo'][l])
                 + params['bo'][l]).reshape(B, T, D)
        h2 = ln(x, params['g2'][l], params['b2'][l])
        m = bdot(h2.reshape(B * T, D), params['w1'][l]) + params['c1'][l]
        m = m * jax.nn.sigmoid(1.702 * m)
        x = x + (bdot(m, params['w2'][l]) + params['c2'][l]).reshape(B, T, D)

    x = x.reshape(n_cls, s, T, D)
    xn = ln(x, params['gf'], params['bf'])
    eot = jnp.argmax(tokenized_prompts, axis=-1)
    gathered = xn[jnp.arange(n_cls)[:, None], jnp.arange(s)[None, :], eot[:, None], :]
    P = params['proj'].shape[-1]
    return bdot(gathered.reshape(n_cls * s, DIM), params['proj']).reshape(n_cls, s, P)


# ----------------------------------- main -------------------------------------
if __name__ == "__main__":
    key = jax.random.PRNGKey(0)
    kp, kt, kparams = jax.random.split(key, 3)
    params = init_params(kparams)

    prompts = jax.random.normal(kp, (N_CLS, S, N_CTX, DIM), jnp.float32) * 0.1
    # tokenized prompts: random ids < 50 with an EOT token (largest id) per class
    body = jax.random.randint(kt, (N_CLS, N_CTX), 1, 50)
    eot_pos = jnp.array([5, 3], dtype=jnp.int32)
    tokenized = body.at[jnp.arange(N_CLS), eot_pos].set(VOCAB - 1)

    out = jax.block_until_ready(text_encoder_forward(params, prompts, tokenized))
    ref = jax.block_until_ready(reference_forward(params, prompts, tokenized))

    np.testing.assert_allclose(np.asarray(out), np.asarray(ref),
                               rtol=2e-2, atol=2e-2)
    print("KERNEL_OK")
</pallas_src>

<mosaic_0001>
module attributes {stable_mosaic.version = 11 : i64} {
  func.func @_text_encoder_kernel(%arg0: i32, %arg1: memref<2xi32, #tpu.memory_space<smem>>, %arg2: memref<1x3x8x128xf32, #tpu.memory_space<vmem>>, %arg3: memref<8x128xf32, #tpu.memory_space<vmem>>, %arg4: memref<2x128x384xbf16, #tpu.memory_space<vmem>>, %arg5: memref<2x1x384xf32, #tpu.memory_space<vmem>>, %arg6: memref<2x128x128xbf16, #tpu.memory_space<vmem>>, %arg7: memref<2x1x128xf32, #tpu.memory_space<vmem>>, %arg8: memref<2x1x128xf32, #tpu.memory_space<vmem>>, %arg9: memref<2x1x128xf32, #tpu.memory_space<vmem>>, %arg10: memref<2x1x128xf32, #tpu.memory_space<vmem>>, %arg11: memref<2x1x128xf32, #tpu.memory_space<vmem>>, %arg12: memref<2x128x512xbf16, #tpu.memory_space<vmem>>, %arg13: memref<2x1x512xf32, #tpu.memory_space<vmem>>, %arg14: memref<2x512x128xbf16, #tpu.memory_space<vmem>>, %arg15: memref<2x1x128xf32, #tpu.memory_space<vmem>>, %arg16: memref<1x128xf32, #tpu.memory_space<vmem>>, %arg17: memref<1x128xf32, #tpu.memory_space<vmem>>, %arg18: memref<128x128xbf16, #tpu.memory_space<vmem>>, %arg19: memref<1x3x128xf32, #tpu.memory_space<vmem>>) attributes {dimension_semantics = [#tpu.dimension_semantics<parallel>], iteration_bounds = array<i64: 2>, scalar_prefetch = 1 : i64, scratch_operands = 0 : i64, tpu.core_type = #tpu.core_type<tc>, window_params = [{transform_indices = @transform_0, window_bounds = array<i64: 1, 3, 8, 128>}, {pipeline_mode = #tpu.pipeline_mode<synchronous>, transform_indices = @transform_1, window_bounds = array<i64: 8, 128>}, {pipeline_mode = #tpu.pipeline_mode<synchronous>, transform_indices = @transform_2, window_bounds = array<i64: 2, 128, 384>}, {pipeline_mode = #tpu.pipeline_mode<synchronous>, transform_indices = @transform_3, window_bounds = array<i64: 2, 1, 384>}, {pipeline_mode = #tpu.pipeline_mode<synchronous>, transform_indices = @transform_4, window_bounds = array<i64: 2, 128, 128>}, {pipeline_mode = #tpu.pipeline_mode<synchronous>, transform_indices = @transform_5, window_bounds = array<i64: 2, 1, 128>}, {pipeline_mode = #tpu.pipeline_mode<synchronous>, transform_indices = @transform_6, window_bounds = array<i64: 2, 1, 128>}, {pipeline_mode = #tpu.pipeline_mode<synchronous>, transform_indices = @transform_7, window_bounds = array<i64: 2, 1, 128>}, {pipeline_mode = #tpu.pipeline_mode<synchronous>, transform_indices = @transform_8, window_bounds = array<i64: 2, 1, 128>}, {pipeline_mode = #tpu.pipeline_mode<synchronous>, transform_indices = @transform_9, window_bounds = array<i64: 2, 1, 128>}, {pipeline_mode = #tpu.pipeline_mode<synchronous>, transform_indices = @transform_10, window_bounds = array<i64: 2, 128, 512>}, {pipeline_mode = #tpu.pipeline_mode<synchronous>, transform_indices = @transform_11, window_bounds = array<i64: 2, 1, 512>}, {pipeline_mode = #tpu.pipeline_mode<synchronous>, transform_indices = @transform_12, window_bounds = array<i64: 2, 512, 128>}, {pipeline_mode = #tpu.pipeline_mode<synchronous>, transform_indices = @transform_13, window_bounds = array<i64: 2, 1, 128>}, {pipeline_mode = #tpu.pipeline_mode<synchronous>, transform_indices = @transform_14, window_bounds = array<i64: 1, 128>}, {pipeline_mode = #tpu.pipeline_mode<synchronous>, transform_indices = @transform_15, window_bounds = array<i64: 1, 128>}, {pipeline_mode = #tpu.pipeline_mode<synchronous>, transform_indices = @transform_16, window_bounds = array<i64: 128, 128>}, {transform_indices = @transform_17, window_bounds = array<i64: 1, 3, 128>}]} {
    %c0 = arith.constant 0 : index
    %c0_0 = arith.constant 0 : index
    %c0_1 = arith.constant 0 : index
    %c0_2 = arith.constant 0 : index
    %0 = vector.load %arg2[%c0, %c0_0, %c0_1, %c0_2] : memref<1x3x8x128xf32, #tpu.memory_space<vmem>>, vector<1x3x8x128xf32>
    %1 = vector.shape_cast %0 : vector<1x3x8x128xf32> to vector<3x8x128xf32>
    %c0_3 = arith.constant 0 : index
    %c0_4 = arith.constant 0 : index
    %2 = vector.load %arg3[%c0_3, %c0_4] : memref<8x128xf32, #tpu.memory_space<vmem>>, vector<8x128xf32>
    %3 = vector.shape_cast %2 : vector<8x128xf32> to vector<1x8x128xf32>
    %4 = vector.broadcast %3 : vector<1x8x128xf32> to vector<3x8x128xf32>
    %5 = arith.addf %1, %4 : vector<3x8x128xf32>
    %6 = vector.shape_cast %5 : vector<3x8x128xf32> to vector<24x128xf32>
    %7 = tpu.iota {dimensions = array<i32: 0>} : vector<8x8xi32>
    %8 = tpu.iota {dimensions = array<i32: 1>} : vector<8x8xi32>
    %9 = arith.cmpi sle, %8, %7 : vector<8x8xi32>
    %10 = vector.shape_cast %9 : vector<8x8xi1> to vector<1x8x8xi1>
    %c0_5 = arith.constant 0 : index
    %c0_6 = arith.constant 0 : index
    %c0_7 = arith.constant 0 : index
    %11 = vector.load %arg8[%c0_5, %c0_6, %c0_7] : memref<2x1x128xf32, #tpu.memory_space<vmem>>, vector<1x1x128xf32>
    %12 = vector.shape_cast %11 : vector<1x1x128xf32> to vector<1x128xf32>
    %c0_8 = arith.constant 0 : index
    %c0_9 = arith.constant 0 : index
    %c0_10 = arith.constant 0 : index
    %13 = vector.load %arg9[%c0_8, %c0_9, %c0_10] : memref<2x1x128xf32, #tpu.memory_space<vmem>>, vector<1x1x128xf32>
    %14 = vector.shape_cast %13 : vector<1x1x128xf32> to vector<1x128xf32>
    %cst = arith.constant dense<0.000000e+00> : vector<24xf32>
    %15 = vector.multi_reduction <add>, %6, %cst [1] : vector<24x128xf32> to vector<24xf32>
    %16 = vector.shape_cast %15 : vector<24xf32> to vector<24x1xf32>
    %cst_11 = arith.constant 1.280000e+02 : f32
    %17 = vector.broadcast %cst_11 : f32 to vector<24x1xf32>
    %18 = arith.divf %16, %17 : vector<24x1xf32>
    %19 = vector.broadcast %18 : vector<24x1xf32> to vector<24x128xf32>
    %20 = arith.subf %6, %19 : vector<24x128xf32>
    %21 = arith.mulf %20, %20 : vector<24x128xf32>
    %cst_12 = arith.constant dense<0.000000e+00> : vector<24xf32>
    %22 = vector.multi_reduction <add>, %21, %cst_12 [1] : vector<24x128xf32> to vector<24xf32>
    %23 = vector.shape_cast %22 : vector<24xf32> to vector<24x1xf32>
    %cst_13 = arith.constant 1.280000e+02 : f32
    %24 = vector.broadcast %cst_13 : f32 to vector<24x1xf32>
    %25 = arith.divf %23, %24 : vector<24x1xf32>
    %26 = vector.broadcast %18 : vector<24x1xf32> to vector<24x128xf32>
    %27 = arith.subf %6, %26 : vector<24x128xf32>
    %cst_14 = arith.constant 9.99999974E-6 : f32
    %28 = vector.broadcast %cst_14 : f32 to vector<24x1xf32>
    %29 = arith.addf %25, %28 : vector<24x1xf32>
    %30 = math.rsqrt %29 : vector<24x1xf32>
    %31 = vector.broadcast %30 : vector<24x1xf32> to vector<24x128xf32>
    %32 = arith.mulf %27, %31 : vector<24x128xf32>
    %33 = vector.broadcast %12 : vector<1x128xf32> to vector<24x128xf32>
    %34 = arith.mulf %32, %33 : vector<24x128xf32>
    %35 = vector.broadcast %14 : vector<1x128xf32> to vector<24x128xf32>
    %36 = arith.addf %34, %35 : vector<24x128xf32>
    %c0_15 = arith.constant 0 : index
    %c0_16 = arith.constant 0 : index
    %c0_17 = arith.constant 0 : index
    %37 = vector.load %arg4[%c0_15, %c0_16, %c0_17] : memref<2x128x384xbf16, #tpu.memory_space<vmem>>, vector<1x128x384xbf16>
    %38 = vector.shape_cast %37 : vector<1x128x384xbf16> to vector<128x384xbf16>
    %39 = arith.truncf %36 : vector<24x128xf32> to vector<24x128xbf16>
    %cst_18 = arith.constant dense<0.000000e+00> : vector<24x384xf32>
    %40 = tpu.matmul %39, %38, %cst_18 {dimension_numbers = #tpu.dot_dimension_numbers<[1], [0], [0], [1], [0, 0, 1, 1], [], []>} : vector<24x128xbf16>, vector<128x384xbf16>, vector<24x384xf32> -> vector<24x384xf32>
    %c0_19 = arith.constant 0 : index
    %c0_20 = arith.constant 0 : index
    %c0_21 = arith.constant 0 : index
    %41 = vector.load %arg5[%c0_19, %c0_20, %c0_21] : memref<2x1x384xf32, #tpu.memory_space<vmem>>, vector<1x1x384xf32>
    %42 = vector.shape_cast %41 : vector<1x1x384xf32> to vector<1x384xf32>
    %43 = vector.broadcast %42 : vector<1x384xf32> to vector<24x384xf32>
    %44 = arith.addf %40, %43 : vector<24x384xf32>
    %45 = vector.extract_strided_slice %44 {offsets = [0, 0], sizes = [24, 128], strides = [1, 1]} : vector<24x384xf32> to vector<24x128xf32>
    %46 = vector.shape_cast %45 : vector<24x128xf32> to vector<3x8x128xf32>
    %47 = vector.extract_strided_slice %44 {offsets = [0, 128], sizes = [24, 128], strides = [1, 1]} : vector<24x384xf32> to vector<24x128xf32>
    %48 = vector.shape_cast %47 : vector<24x128xf32> to vector<3x8x128xf32>
    %49 = vector.extract_strided_slice %44 {offsets = [0, 256], sizes = [24, 128], strides = [1, 1]} : vector<24x384xf32> to vector<24x128xf32>
    %50 = vector.shape_cast %49 : vector<24x128xf32> to vector<3x8x128xf32>
    %51 = vector.extract_strided_slice %46 {offsets = [0, 0, 0], sizes = [3, 8, 32], strides = [1, 1, 1]} : vector<3x8x128xf32> to vector<3x8x32xf32>
    %52 = arith.truncf %51 : vector<3x8x32xf32> to vector<3x8x32xbf16>
    %53 = vector.extract_strided_slice %48 {offsets = [0, 0, 0], sizes = [3, 8, 32], strides = [1, 1, 1]} : vector<3x8x128xf32> to vector<3x8x32xf32>
    %54 = arith.truncf %53 : vector<3x8x32xf32> to vector<3x8x32xbf16>
    "tpu.trace_start"() <{level = 10 : i32, message = "bqd,bkd->bqk"}> : () -> ()
    %cst_22 = arith.constant dense<0.000000e+00> : vector<3x8x8xf32>
    %55 = tpu.matmul %52, %54, %cst_22 {dimension_numbers = #tpu.dot_dimension_numbers<[2], [2], [1], [1], [0, 0, 0, 1, 1, 1], [0], [0]>} : vector<3x8x32xbf16>, vector<3x8x32xbf16>, vector<3x8x8xf32> -> vector<3x8x8xf32>
    "tpu.trace_stop"() : () -> ()
    %cst_23 = arith.constant 0.176776692 : f32
    %56 = vector.broadcast %cst_23 : f32 to vector<3x8x8xf32>
    %57 = arith.mulf %55, %56 : vector<3x8x8xf32>
    %cst_24 = arith.constant -1.000000e+30 : f32
    %58 = vector.shape_cast %10 : vector<1x8x8xi1> to vector<1x8x8xi1>
    %59 = vector.broadcast %58 : vector<1x8x8xi1> to vector<3x8x8xi1>
    %60 = vector.broadcast %cst_24 : f32 to vector<3x8x8xf32>
    %61 = arith.select %59, %57, %60 : vector<3x8x8xi1>, vector<3x8x8xf32>
    %cst_25 = arith.constant dense<0xFF800000> : vector<3x8xf32>
    %62 = vector.multi_reduction <maximumf>, %61, %cst_25 [2] : vector<3x8x8xf32> to vector<3x8xf32>
    %63 = vector.shape_cast %62 : vector<3x8xf32> to vector<3x8x1xf32>
    %64 = vector.broadcast %63 : vector<3x8x1xf32> to vector<3x8x8xf32>
    %65 = arith.subf %61, %64 : vector<3x8x8xf32>
    %66 = math.exp %65 : vector<3x8x8xf32>
    %cst_26 = arith.constant dense<0.000000e+00> : vector<3x8xf32>
    %67 = vector.multi_reduction <add>, %66, %cst_26 [2] : vector<3x8x8xf32> to vector<3x8xf32>
    %68 = vector.shape_cast %67 : vector<3x8xf32> to vector<3x8x1xf32>
    %69 = tpu.reciprocal %68 {approx = true} : vector<3x8x1xf32> -> vector<3x8x1xf32>
    %70 = vector.broadcast %69 : vector<3x8x1xf32> to vector<3x8x8xf32>
    %71 = arith.mulf %66, %70 : vector<3x8x8xf32>
    %72 = arith.truncf %71 : vector<3x8x8xf32> to vector<3x8x8xbf16>
    %73 = vector.extract_strided_slice %50 {offsets = [0, 0, 0], sizes = [3, 8, 32], strides = [1, 1, 1]} : vector<3x8x128xf32> to vector<3x8x32xf32>
    %74 = arith.truncf %73 : vector<3x8x32xf32> to vector<3x8x32xbf16>
    "tpu.trace_start"() <{level = 10 : i32, message = "bqk,bkd->bqd"}> : () -> ()
    %cst_27 = arith.constant dense<0.000000e+00> : vector<3x8x32xf32>
    %75 = tpu.matmul %72, %74, %cst_27 {dimension_numbers = #tpu.dot_dimension_numbers<[2], [1], [1], [2], [0, 0, 0, 1, 1, 2], [0], [0]>} : vector<3x8x8xbf16>, vector<3x8x32xbf16>, vector<3x8x32xf32> -> vector<3x8x32xf32>
    "tpu.trace_stop"() : () -> ()
    %76 = vector.extract_strided_slice %46 {offsets = [0, 0, 32], sizes = [3, 8, 32], strides = [1, 1, 1]} : vector<3x8x128xf32> to vector<3x8x32xf32>
    %77 = arith.truncf %76 : vector<3x8x32xf32> to vector<3x8x32xbf16>
    %78 = vector.extract_strided_slice %48 {offsets = [0, 0, 32], sizes = [3, 8, 32], strides = [1, 1, 1]} : vector<3x8x128xf32> to vector<3x8x32xf32>
    %79 = arith.truncf %78 : vector<3x8x32xf32> to vector<3x8x32xbf16>
    "tpu.trace_start"() <{level = 10 : i32, message = "bqd,bkd->bqk"}> : () -> ()
    %cst_28 = arith.constant dense<0.000000e+00> : vector<3x8x8xf32>
    %80 = tpu.matmul %77, %79, %cst_28 {dimension_numbers = #tpu.dot_dimension_numbers<[2], [2], [1], [1], [0, 0, 0, 1, 1, 1], [0], [0]>} : vector<3x8x32xbf16>, vector<3x8x32xbf16>, vector<3x8x8xf32> -> vector<3x8x8xf32>
    "tpu.trace_stop"() : () -> ()
    %cst_29 = arith.constant 0.176776692 : f32
    %81 = vector.broadcast %cst_29 : f32 to vector<3x8x8xf32>
    %82 = arith.mulf %80, %81 : vector<3x8x8xf32>
    %cst_30 = arith.constant -1.000000e+30 : f32
    %83 = vector.shape_cast %10 : vector<1x8x8xi1> to vector<1x8x8xi1>
    %84 = vector.broadcast %83 : vector<1x8x8xi1> to vector<3x8x8xi1>
    %85 = vector.broadcast %cst_30 : f32 to vector<3x8x8xf32>
    %86 = arith.select %84, %82, %85 : vector<3x8x8xi1>, vector<3x8x8xf32>
    %cst_31 = arith.constant dense<0xFF800000> : vector<3x8xf32>
    %87 = vector.multi_reduction <maximumf>, %86, %cst_31 [2] : vector<3x8x8xf32> to vector<3x8xf32>
    %88 = vector.shape_cast %87 : vector<3x8xf32> to vector<3x8x1xf32>
    %89 = vector.broadcast %88 : vector<3x8x1xf32> to vector<3x8x8xf32>
    %90 = arith.subf %86, %89 : vector<3x8x8xf32>
    %91 = math.exp %90 : vector<3x8x8xf32>
    %cst_32 = arith.constant dense<0.000000e+00> : vector<3x8xf32>
    %92 = vector.multi_reduction <add>, %91, %cst_32 [2] : vector<3x8x8xf32> to vector<3x8xf32>
    %93 = vector.shape_cast %92 : vector<3x8xf32> to vector<3x8x1xf32>
    %94 = tpu.reciprocal %93 {approx = true} : vector<3x8x1xf32> -> vector<3x8x1xf32>
    %95 = vector.broadcast %94 : vector<3x8x1xf32> to vector<3x8x8xf32>
    %96 = arith.mulf %91, %95 : vector<3x8x8xf32>
    %97 = arith.truncf %96 : vector<3x8x8xf32> to vector<3x8x8xbf16>
    %98 = vector.extract_strided_slice %50 {offsets = [0, 0, 32], sizes = [3, 8, 32], strides = [1, 1, 1]} : vector<3x8x128xf32> to vector<3x8x32xf32>
    %99 = arith.truncf %98 : vector<3x8x32xf32> to vector<3x8x32xbf16>
    "tpu.trace_start"() <{level = 10 : i32, message = "bqk,bkd->bqd"}> : () -> ()
    %cst_33 = arith.constant dense<0.000000e+00> : vector<3x8x32xf32>
    %100 = tpu.matmul %97, %99, %cst_33 {dimension_numbers = #tpu.dot_dimension_numbers<[2], [1], [1], [2], [0, 0, 0, 1, 1, 2], [0], [0]>} : vector<3x8x8xbf16>, vector<3x8x32xbf16>, vector<3x8x32xf32> -> vector<3x8x32xf32>
    "tpu.trace_stop"() : () -> ()
    %101 = vector.extract_strided_slice %46 {offsets = [0, 0, 64], sizes = [3, 8, 32], strides = [1, 1, 1]} : vector<3x8x128xf32> to vector<3x8x32xf32>
    %102 = arith.truncf %101 : vector<3x8x32xf32> to vector<3x8x32xbf16>
    %103 = vector.extract_strided_slice %48 {offsets = [0, 0, 64], sizes = [3, 8, 32], strides = [1, 1, 1]} : vector<3x8x128xf32> to vector<3x8x32xf32>
    %104 = arith.truncf %103 : vector<3x8x32xf32> to vector<3x8x32xbf16>
    "tpu.trace_start"() <{level = 10 : i32, message = "bqd,bkd->bqk"}> : () -> ()
    %cst_34 = arith.constant dense<0.000000e+00> : vector<3x8x8xf32>
    %105 = tpu.matmul %102, %104, %cst_34 {dimension_numbers = #tpu.dot_dimension_numbers<[2], [2], [1], [1], [0, 0, 0, 1, 1, 1], [0], [0]>} : vector<3x8x32xbf16>, vector<3x8x32xbf16>, vector<3x8x8xf32> -> vector<3x8x8xf32>
    "tpu.trace_stop"() : () -> ()
    %cst_35 = arith.constant 0.176776692 : f32
    %106 = vector.broadcast %cst_35 : f32 to vector<3x8x8xf32>
    %107 = arith.mulf %105, %106 : vector<3x8x8xf32>
    %cst_36 = arith.constant -1.000000e+30 : f32
    %108 = vector.shape_cast %10 : vector<1x8x8xi1> to vector<1x8x8xi1>
    %109 = vector.broadcast %108 : vector<1x8x8xi1> to vector<3x8x8xi1>
    %110 = vector.broadcast %cst_36 : f32 to vector<3x8x8xf32>
    %111 = arith.select %109, %107, %110 : vector<3x8x8xi1>, vector<3x8x8xf32>
    %cst_37 = arith.constant dense<0xFF800000> : vector<3x8xf32>
    %112 = vector.multi_reduction <maximumf>, %111, %cst_37 [2] : vector<3x8x8xf32> to vector<3x8xf32>
    %113 = vector.shape_cast %112 : vector<3x8xf32> to vector<3x8x1xf32>
    %114 = vector.broadcast %113 : vector<3x8x1xf32> to vector<3x8x8xf32>
    %115 = arith.subf %111, %114 : vector<3x8x8xf32>
    %116 = math.exp %115 : vector<3x8x8xf32>
    %cst_38 = arith.constant dense<0.000000e+00> : vector<3x8xf32>
    %117 = vector.multi_reduction <add>, %116, %cst_38 [2] : vector<3x8x8xf32> to vector<3x8xf32>
    %118 = vector.shape_cast %117 : vector<3x8xf32> to vector<3x8x1xf32>
    %119 = tpu.reciprocal %118 {approx = true} : vector<3x8x1xf32> -> vector<3x8x1xf32>
    %120 = vector.broadcast %119 : vector<3x8x1xf32> to vector<3x8x8xf32>
    %121 = arith.mulf %116, %120 : vector<3x8x8xf32>
    %122 = arith.truncf %121 : vector<3x8x8xf32> to vector<3x8x8xbf16>
    %123 = vector.extract_strided_slice %50 {offsets = [0, 0, 64], sizes = [3, 8, 32], strides = [1, 1, 1]} : vector<3x8x128xf32> to vector<3x8x32xf32>
    %124 = arith.truncf %123 : vector<3x8x32xf32> to vector<3x8x32xbf16>
    "tpu.trace_start"() <{level = 10 : i32, message = "bqk,bkd->bqd"}> : () -> ()
    %cst_39 = arith.constant dense<0.000000e+00> : vector<3x8x32xf32>
    %125 = tpu.matmul %122, %124, %cst_39 {dimension_numbers = #tpu.dot_dimension_numbers<[2], [1], [1], [2], [0, 0, 0, 1, 1, 2], [0], [0]>} : vector<3x8x8xbf16>, vector<3x8x32xbf16>, vector<3x8x32xf32> -> vector<3x8x32xf32>
    "tpu.trace_stop"() : () -> ()
    %126 = vector.extract_strided_slice %46 {offsets = [0, 0, 96], sizes = [3, 8, 32], strides = [1, 1, 1]} : vector<3x8x128xf32> to vector<3x8x32xf32>
    %127 = arith.truncf %126 : vector<3x8x32xf32> to vector<3x8x32xbf16>
    %128 = vector.extract_strided_slice %48 {offsets = [0, 0, 96], sizes = [3, 8, 32], strides = [1, 1, 1]} : vector<3x8x128xf32> to vector<3x8x32xf32>
    %129 = arith.truncf %128 : vector<3x8x32xf32> to vector<3x8x32xbf16>
    "tpu.trace_start"() <{level = 10 : i32, message = "bqd,bkd->bqk"}> : () -> ()
    %cst_40 = arith.constant dense<0.000000e+00> : vector<3x8x8xf32>
    %130 = tpu.matmul %127, %129, %cst_40 {dimension_numbers = #tpu.dot_dimension_numbers<[2], [2], [1], [1], [0, 0, 0, 1, 1, 1], [0], [0]>} : vector<3x8x32xbf16>, vector<3x8x32xbf16>, vector<3x8x8xf32> -> vector<3x8x8xf32>
    "tpu.trace_stop"() : () -> ()
    %cst_41 = arith.constant 0.176776692 : f32
    %131 = vector.broadcast %cst_41 : f32 to vector<3x8x8xf32>
    %132 = arith.mulf %130, %131 : vector<3x8x8xf32>
    %cst_42 = arith.constant -1.000000e+30 : f32
    %133 = vector.shape_cast %10 : vector<1x8x8xi1> to vector<1x8x8xi1>
    %134 = vector.broadcast %133 : vector<1x8x8xi1> to vector<3x8x8xi1>
    %135 = vector.broadcast %cst_42 : f32 to vector<3x8x8xf32>
    %136 = arith.select %134, %132, %135 : vector<3x8x8xi1>, vector<3x8x8xf32>
    %cst_43 = arith.constant dense<0xFF800000> : vector<3x8xf32>
    %137 = vector.multi_reduction <maximumf>, %136, %cst_43 [2] : vector<3x8x8xf32> to vector<3x8xf32>
    %138 = vector.shape_cast %137 : vector<3x8xf32> to vector<3x8x1xf32>
    %139 = vector.broadcast %138 : vector<3x8x1xf32> to vector<3x8x8xf32>
    %140 = arith.subf %136, %139 : vector<3x8x8xf32>
    %141 = math.exp %140 : vector<3x8x8xf32>
    %cst_44 = arith.constant dense<0.000000e+00> : vector<3x8xf32>
    %142 = vector.multi_reduction <add>, %141, %cst_44 [2] : vector<3x8x8xf32> to vector<3x8xf32>
    %143 = vector.shape_cast %142 : vector<3x8xf32> to vector<3x8x1xf32>
    %144 = tpu.reciprocal %143 {approx = true} : vector<3x8x1xf32> -> vector<3x8x1xf32>
    %145 = vector.broadcast %144 : vector<3x8x1xf32> to vector<3x8x8xf32>
    %146 = arith.mulf %141, %145 : vector<3x8x8xf32>
    %147 = arith.truncf %146 : vector<3x8x8xf32> to vector<3x8x8xbf16>
    %148 = vector.extract_strided_slice %50 {offsets = [0, 0, 96], sizes = [3, 8, 32], strides = [1, 1, 1]} : vector<3x8x128xf32> to vector<3x8x32xf32>
    %149 = arith.truncf %148 : vector<3x8x32xf32> to vector<3x8x32xbf16>
    "tpu.trace_start"() <{level = 10 : i32, message = "bqk,bkd->bqd"}> : () -> ()
    %cst_45 = arith.constant dense<0.000000e+00> : vector<3x8x32xf32>
    %150 = tpu.matmul %147, %149, %cst_45 {dimension_numbers = #tpu.dot_dimension_numbers<[2], [1], [1], [2], [0, 0, 0, 1, 1, 2], [0], [0]>} : vector<3x8x8xbf16>, vector<3x8x32xbf16>, vector<3x8x32xf32> -> vector<3x8x32xf32>
    "tpu.trace_stop"() : () -> ()
    %151 = tpu.concatenate %75, %100, %125, %150 in 2 : vector<3x8x32xf32>, vector<3x8x32xf32>, vector<3x8x32xf32>, vector<3x8x32xf32> -> vector<3x8x128xf32>
    %152 = vector.shape_cast %151 : vector<3x8x128xf32> to vector<24x128xf32>
    %c0_46 = arith.constant 0 : index
    %c0_47 = arith.constant 0 : index
    %c0_48 = arith.constant 0 : index
    %153 = vector.load %arg6[%c0_46, %c0_47, %c0_48] : memref<2x128x128xbf16, #tpu.memory_space<vmem>>, vector<1x128x128xbf16>
    %154 = vector.shape_cast %153 : vector<1x128x128xbf16> to vector<128x128xbf16>
    %155 = arith.truncf %152 : vector<24x128xf32> to vector<24x128xbf16>
    %cst_49 = arith.constant dense<0.000000e+00> : vector<24x128xf32>
    %156 = tpu.matmul %155, %154, %cst_49 {dimension_numbers = #tpu.dot_dimension_numbers<[1], [0], [0], [1], [0, 0, 1, 1], [], []>} : vector<24x128xbf16>, vector<128x128xbf16>, vector<24x128xf32> -> vector<24x128xf32>
    %157 = arith.addf %6, %156 : vector<24x128xf32>
    %c0_50 = arith.constant 0 : index
    %c0_51 = arith.constant 0 : index
    %c0_52 = arith.constant 0 : index
    %158 = vector.load %arg7[%c0_50, %c0_51, %c0_52] : memref<2x1x128xf32, #tpu.memory_space<vmem>>, vector<1x1x128xf32>
    %159 = vector.shape_cast %158 : vector<1x1x128xf32> to vector<1x128xf32>
    %160 = vector.broadcast %159 : vector<1x128xf32> to vector<24x128xf32>
    %161 = arith.addf %157, %160 : vector<24x128xf32>
    %c0_53 = arith.constant 0 : index
    %c0_54 = arith.constant 0 : index
    %c0_55 = arith.constant 0 : index
    %162 = vector.load %arg10[%c0_53, %c0_54, %c0_55] : memref<2x1x128xf32, #tpu.memory_space<vmem>>, vector<1x1x128xf32>
    %163 = vector.shape_cast %162 : vector<1x1x128xf32> to vector<1x128xf32>
    %c0_56 = arith.constant 0 : index
    %c0_57 = arith.constant 0 : index
    %c0_58 = arith.constant 0 : index
    %164 = vector.load %arg11[%c0_56, %c0_57, %c0_58] : memref<2x1x128xf32, #tpu.memory_space<vmem>>, vector<1x1x128xf32>
    %165 = vector.shape_cast %164 : vector<1x1x128xf32> to vector<1x128xf32>
    %cst_59 = arith.constant dense<0.000000e+00> : vector<24xf32>
    %166 = vector.multi_reduction <add>, %161, %cst_59 [1] : vector<24x128xf32> to vector<24xf32>
    %167 = vector.shape_cast %166 : vector<24xf32> to vector<24x1xf32>
    %cst_60 = arith.constant 1.280000e+02 : f32
    %168 = vector.broadcast %cst_60 : f32 to vector<24x1xf32>
    %169 = arith.divf %167, %168 : vector<24x1xf32>
    %170 = vector.broadcast %169 : vector<24x1xf32> to vector<24x128xf32>
    %171 = arith.subf %161, %170 : vector<24x128xf32>
    %172 = arith.mulf %171, %171 : vector<24x128xf32>
    %cst_61 = arith.constant dense<0.000000e+00> : vector<24xf32>
    %173 = vector.multi_reduction <add>, %172, %cst_61 [1] : vector<24x128xf32> to vector<24xf32>
    %174 = vector.shape_cast %173 : vector<24xf32> to vector<24x1xf32>
    %cst_62 = arith.constant 1.280000e+02 : f32
    %175 = vector.broadcast %cst_62 : f32 to vector<24x1xf32>
    %176 = arith.divf %174, %175 : vector<24x1xf32>
    %177 = vector.broadcast %169 : vector<24x1xf32> to vector<24x128xf32>
    %178 = arith.subf %161, %177 : vector<24x128xf32>
    %cst_63 = arith.constant 9.99999974E-6 : f32
    %179 = vector.broadcast %cst_63 : f32 to vector<24x1xf32>
    %180 = arith.addf %176, %179 : vector<24x1xf32>
    %181 = math.rsqrt %180 : vector<24x1xf32>
    %182 = vector.broadcast %181 : vector<24x1xf32> to vector<24x128xf32>
    %183 = arith.mulf %178, %182 : vector<24x128xf32>
    %184 = vector.broadcast %163 : vector<1x128xf32> to vector<24x128xf32>
    %185 = arith.mulf %183, %184 : vector<24x128xf32>
    %186 = vector.broadcast %165 : vector<1x128xf32> to vector<24x128xf32>
    %187 = arith.addf %185, %186 : vector<24x128xf32>
    %c0_64 = arith.constant 0 : index
    %c0_65 = arith.constant 0 : index
    %c0_66 = arith.constant 0 : index
    %188 = vector.load %arg12[%c0_64, %c0_65, %c0_66] : memref<2x128x512xbf16, #tpu.memory_space<vmem>>, vector<1x128x512xbf16>
    %189 = vector.shape_cast %188 : vector<1x128x512xbf16> to vector<128x512xbf16>
    %190 = arith.truncf %187 : vector<24x128xf32> to vector<24x128xbf16>
    %cst_67 = arith.constant dense<0.000000e+00> : vector<24x512xf32>
    %191 = tpu.matmul %190, %189, %cst_67 {dimension_numbers = #tpu.dot_dimension_numbers<[1], [0], [0], [1], [0, 0, 1, 1], [], []>} : vector<24x128xbf16>, vector<128x512xbf16>, vector<24x512xf32> -> vector<24x512xf32>
    %c0_68 = arith.constant 0 : index
    %c0_69 = arith.constant 0 : index
    %c0_70 = arith.constant 0 : index
    %192 = vector.load %arg13[%c0_68, %c0_69, %c0_70] : memref<2x1x512xf32, #tpu.memory_space<vmem>>, vector<1x1x512xf32>
    %193 = vector.shape_cast %192 : vector<1x1x512xf32> to vector<1x512xf32>
    %194 = vector.broadcast %193 : vector<1x512xf32> to vector<24x512xf32>
    %195 = arith.addf %191, %194 : vector<24x512xf32>
    %cst_71 = arith.constant 1.702000e+00 : f32
    %196 = vector.broadcast %cst_71 : f32 to vector<24x512xf32>
    %197 = arith.mulf %196, %195 : vector<24x512xf32>
    %198 = arith.negf %197 : vector<24x512xf32>
    %199 = math.exp %198 : vector<24x512xf32>
    %cst_72 = arith.constant 1.000000e+00 : f32
    %200 = vector.broadcast %cst_72 : f32 to vector<24x512xf32>
    %201 = arith.addf %200, %199 : vector<24x512xf32>
    %202 = arith.divf %200, %201 : vector<24x512xf32>
    %203 = arith.mulf %195, %202 : vector<24x512xf32>
    %c0_73 = arith.constant 0 : index
    %c0_74 = arith.constant 0 : index
    %c0_75 = arith.constant 0 : index
    %204 = vector.load %arg14[%c0_73, %c0_74, %c0_75] : memref<2x512x128xbf16, #tpu.memory_space<vmem>>, vector<1x512x128xbf16>
    %205 = vector.shape_cast %204 : vector<1x512x128xbf16> to vector<512x128xbf16>
    %206 = arith.truncf %203 : vector<24x512xf32> to vector<24x512xbf16>
    %cst_76 = arith.constant dense<0.000000e+00> : vector<24x128xf32>
    %207 = tpu.matmul %206, %205, %cst_76 {dimension_numbers = #tpu.dot_dimension_numbers<[1], [0], [0], [1], [0, 0, 1, 1], [], []>} : vector<24x512xbf16>, vector<512x128xbf16>, vector<24x128xf32> -> vector<24x128xf32>
    %208 = arith.addf %161, %207 : vector<24x128xf32>
    %c0_77 = arith.constant 0 : index
    %c0_78 = arith.constant 0 : index
    %c0_79 = arith.constant 0 : index
    %209 = vector.load %arg15[%c0_77, %c0_78, %c0_79] : memref<2x1x128xf32, #tpu.memory_space<vmem>>, vector<1x1x128xf32>
    %210 = vector.shape_cast %209 : vector<1x1x128xf32> to vector<1x128xf32>
    %211 = vector.broadcast %210 : vector<1x128xf32> to vector<24x128xf32>
    %212 = arith.addf %208, %211 : vector<24x128xf32>
    %c1 = arith.constant 1 : index
    %c0_80 = arith.constant 0 : index
    %c0_81 = arith.constant 0 : index
    %213 = vector.load %arg8[%c1, %c0_80, %c0_81] : memref<2x1x128xf32, #tpu.memory_space<vmem>>, vector<1x1x128xf32>
    %214 = vector.shape_cast %213 : vector<1x1x128xf32> to vector<1x128xf32>
    %c1_82 = arith.constant 1 : index
    %c0_83 = arith.constant 0 : index
    %c0_84 = arith.constant 0 : index
    %215 = vector.load %arg9[%c1_82, %c0_83, %c0_84] : memref<2x1x128xf32, #tpu.memory_space<vmem>>, vector<1x1x128xf32>
    %216 = vector.shape_cast %215 : vector<1x1x128xf32> to vector<1x128xf32>
    %cst_85 = arith.constant dense<0.000000e+00> : vector<24xf32>
    %217 = vector.multi_reduction <add>, %212, %cst_85 [1] : vector<24x128xf32> to vector<24xf32>
    %218 = vector.shape_cast %217 : vector<24xf32> to vector<24x1xf32>
    %cst_86 = arith.constant 1.280000e+02 : f32
    %219 = vector.broadcast %cst_86 : f32 to vector<24x1xf32>
    %220 = arith.divf %218, %219 : vector<24x1xf32>
    %221 = vector.broadcast %220 : vector<24x1xf32> to vector<24x128xf32>
    %222 = arith.subf %212, %221 : vector<24x128xf32>
    %223 = arith.mulf %222, %222 : vector<24x128xf32>
    %cst_87 = arith.constant dense<0.000000e+00> : vector<24xf32>
    %224 = vector.multi_reduction <add>, %223, %cst_87 [1] : vector<24x128xf32> to vector<24xf32>
    %225 = vector.shape_cast %224 : vector<24xf32> to vector<24x1xf32>
    %cst_88 = arith.constant 1.280000e+02 : f32
    %226 = vector.broadcast %cst_88 : f32 to vector<24x1xf32>
    %227 = arith.divf %225, %226 : vector<24x1xf32>
    %228 = vector.broadcast %220 : vector<24x1xf32> to vector<24x128xf32>
    %229 = arith.subf %212, %228 : vector<24x128xf32>
    %cst_89 = arith.constant 9.99999974E-6 : f32
    %230 = vector.broadcast %cst_89 : f32 to vector<24x1xf32>
    %231 = arith.addf %227, %230 : vector<24x1xf32>
    %232 = math.rsqrt %231 : vector<24x1xf32>
    %233 = vector.broadcast %232 : vector<24x1xf32> to vector<24x128xf32>
    %234 = arith.mulf %229, %233 : vector<24x128xf32>
    %235 = vector.broadcast %214 : vector<1x128xf32> to vector<24x128xf32>
    %236 = arith.mulf %234, %235 : vector<24x128xf32>
    %237 = vector.broadcast %216 : vector<1x128xf32> to vector<24x128xf32>
    %238 = arith.addf %236, %237 : vector<24x128xf32>
    %c1_90 = arith.constant 1 : index
    %c0_91 = arith.constant 0 : index
    %c0_92 = arith.constant 0 : index
    %239 = vector.load %arg4[%c1_90, %c0_91, %c0_92] : memref<2x128x384xbf16, #tpu.memory_space<vmem>>, vector<1x128x384xbf16>
    %240 = vector.shape_cast %239 : vector<1x128x384xbf16> to vector<128x384xbf16>
    %241 = arith.truncf %238 : vector<24x128xf32> to vector<24x128xbf16>
    %cst_93 = arith.constant dense<0.000000e+00> : vector<24x384xf32>
    %242 = tpu.matmul %241, %240, %cst_93 {dimension_numbers = #tpu.dot_dimension_numbers<[1], [0], [0], [1], [0, 0, 1, 1], [], []>} : vector<24x128xbf16>, vector<128x384xbf16>, vector<24x384xf32> -> vector<24x384xf32>
    %c1_94 = arith.constant 1 : index
    %c0_95 = arith.constant 0 : index
    %c0_96 = arith.constant 0 : index
    %243 = vector.load %arg5[%c1_94, %c0_95, %c0_96] : memref<2x1x384xf32, #tpu.memory_space<vmem>>, vector<1x1x384xf32>
    %244 = vector.shape_cast %243 : vector<1x1x384xf32> to vector<1x384xf32>
    %245 = vector.broadcast %244 : vector<1x384xf32> to vector<24x384xf32>
    %246 = arith.addf %242, %245 : vector<24x384xf32>
    %247 = vector.extract_strided_slice %246 {offsets = [0, 0], sizes = [24, 128], strides = [1, 1]} : vector<24x384xf32> to vector<24x128xf32>
    %248 = vector.shape_cast %247 : vector<24x128xf32> to vector<3x8x128xf32>
    %249 = vector.extract_strided_slice %246 {offsets = [0, 128], sizes = [24, 128], strides = [1, 1]} : vector<24x384xf32> to vector<24x128xf32>
    %250 = vector.shape_cast %249 : vector<24x128xf32> to vector<3x8x128xf32>
    %251 = vector.extract_strided_slice %246 {offsets = [0, 256], sizes = [24, 128], strides = [1, 1]} : vector<24x384xf32> to vector<24x128xf32>
    %252 = vector.shape_cast %251 : vector<24x128xf32> to vector<3x8x128xf32>
    %253 = vector.extract_strided_slice %248 {offsets = [0, 0, 0], sizes = [3, 8, 32], strides = [1, 1, 1]} : vector<3x8x128xf32> to vector<3x8x32xf32>
    %254 = arith.truncf %253 : vector<3x8x32xf32> to vector<3x8x32xbf16>
    %255 = vector.extract_strided_slice %250 {offsets = [0, 0, 0], sizes = [3, 8, 32], strides = [1, 1, 1]} : vector<3x8x128xf32> to vector<3x8x32xf32>
    %256 = arith.truncf %255 : vector<3x8x32xf32> to vector<3x8x32xbf16>
    "tpu.trace_start"() <{level = 10 : i32, message = "bqd,bkd->bqk"}> : () -> ()
    %cst_97 = arith.constant dense<0.000000e+00> : vector<3x8x8xf32>
    %257 = tpu.matmul %254, %256, %cst_97 {dimension_numbers = #tpu.dot_dimension_numbers<[2], [2], [1], [1], [0, 0, 0, 1, 1, 1], [0], [0]>} : vector<3x8x32xbf16>, vector<3x8x32xbf16>, vector<3x8x8xf32> -> vector<3x8x8xf32>
    "tpu.trace_stop"() : () -> ()
    %cst_98 = arith.constant 0.176776692 : f32
    %258 = vector.broadcast %cst_98 : f32 to vector<3x8x8xf32>
    %259 = arith.mulf %257, %258 : vector<3x8x8xf32>
    %cst_99 = arith.constant -1.000000e+30 : f32
    %260 = vector.shape_cast %10 : vector<1x8x8xi1> to vector<1x8x8xi1>
    %261 = vector.broadcast %260 : vector<1x8x8xi1> to vector<3x8x8xi1>
    %262 = vector.broadcast %cst_99 : f32 to vector<3x8x8xf32>
    %263 = arith.select %261, %259, %262 : vector<3x8x8xi1>, vector<3x8x8xf32>
    %cst_100 = arith.constant dense<0xFF800000> : vector<3x8xf32>
    %264 = vector.multi_reduction <maximumf>, %263, %cst_100 [2] : vector<3x8x8xf32> to vector<3x8xf32>
    %265 = vector.shape_cast %264 : vector<3x8xf32> to vector<3x8x1xf32>
    %266 = vector.broadcast %265 : vector<3x8x1xf32> to vector<3x8x8xf32>
    %267 = arith.subf %263, %266 : vector<3x8x8xf32>
    %268 = math.exp %267 : vector<3x8x8xf32>
    %cst_101 = arith.constant dense<0.000000e+00> : vector<3x8xf32>
    %269 = vector.multi_reduction <add>, %268, %cst_101 [2] : vector<3x8x8xf32> to vector<3x8xf32>
    %270 = vector.shape_cast %269 : vector<3x8xf32> to vector<3x8x1xf32>
    %271 = tpu.reciprocal %270 {approx = true} : vector<3x8x1xf32> -> vector<3x8x1xf32>
    %272 = vector.broadcast %271 : vector<3x8x1xf32> to vector<3x8x8xf32>
    %273 = arith.mulf %268, %272 : vector<3x8x8xf32>
    %274 = arith.truncf %273 : vector<3x8x8xf32> to vector<3x8x8xbf16>
    %275 = vector.extract_strided_slice %252 {offsets = [0, 0, 0], sizes = [3, 8, 32], strides = [1, 1, 1]} : vector<3x8x128xf32> to vector<3x8x32xf32>
    %276 = arith.truncf %275 : vector<3x8x32xf32> to vector<3x8x32xbf16>
    "tpu.trace_start"() <{level = 10 : i32, message = "bqk,bkd->bqd"}> : () -> ()
    %cst_102 = arith.constant dense<0.000000e+00> : vector<3x8x32xf32>
    %277 = tpu.matmul %274, %276, %cst_102 {dimension_numbers = #tpu.dot_dimension_numbers<[2], [1], [1], [2], [0, 0, 0, 1, 1, 2], [0], [0]>} : vector<3x8x8xbf16>, vector<3x8x32xbf16>, vector<3x8x32xf32> -> vector<3x8x32xf32>
    "tpu.trace_stop"() : () -> ()
    %278 = vector.extract_strided_slice %248 {offsets = [0, 0, 32], sizes = [3, 8, 32], strides = [1, 1, 1]} : vector<3x8x128xf32> to vector<3x8x32xf32>
    %279 = arith.truncf %278 : vector<3x8x32xf32> to vector<3x8x32xbf16>
    %280 = vector.extract_strided_slice %250 {offsets = [0, 0, 32], sizes = [3, 8, 32], strides = [1, 1, 1]} : vector<3x8x128xf32> to vector<3x8x32xf32>
    %281 = arith.truncf %280 : vector<3x8x32xf32> to vector<3x8x32xbf16>
    "tpu.trace_start"() <{level = 10 : i32, message = "bqd,bkd->bqk"}> : () -> ()
    %cst_103 = arith.constant dense<0.000000e+00> : vector<3x8x8xf32>
    %282 = tpu.matmul %279, %281, %cst_103 {dimension_numbers = #tpu.dot_dimension_numbers<[2], [2], [1], [1], [0, 0, 0, 1, 1, 1], [0], [0]>} : vector<3x8x32xbf16>, vector<3x8x32xbf16>, vector<3x8x8xf32> -> vector<3x8x8xf32>
    "tpu.trace_stop"() : () -> ()
    %cst_104 = arith.constant 0.176776692 : f32
    %283 = vector.broadcast %cst_104 : f32 to vector<3x8x8xf32>
    %284 = arith.mulf %282, %283 : vector<3x8x8xf32>
    %cst_105 = arith.constant -1.000000e+30 : f32
    %285 = vector.shape_cast %10 : vector<1x8x8xi1> to vector<1x8x8xi1>
    %286 = vector.broadcast %285 : vector<1x8x8xi1> to vector<3x8x8xi1>
    %287 = vector.broadcast %cst_105 : f32 to vector<3x8x8xf32>
    %288 = arith.select %286, %284, %287 : vector<3x8x8xi1>, vector<3x8x8xf32>
    %cst_106 = arith.constant dense<0xFF800000> : vector<3x8xf32>
    %289 = vector.multi_reduction <maximumf>, %288, %cst_106 [2] : vector<3x8x8xf32> to vector<3x8xf32>
    %290 = vector.shape_cast %289 : vector<3x8xf32> to vector<3x8x1xf32>
    %291 = vector.broadcast %290 : vector<3x8x1xf32> to vector<3x8x8xf32>
    %292 = arith.subf %288, %291 : vector<3x8x8xf32>
    %293 = math.exp %292 : vector<3x8x8xf32>
    %cst_107 = arith.constant dense<0.000000e+00> : vector<3x8xf32>
    %294 = vector.multi_reduction <add>, %293, %cst_107 [2] : vector<3x8x8xf32> to vector<3x8xf32>
    %295 = vector.shape_cast %294 : vector<3x8xf32> to vector<3x8x1xf32>
    %296 = tpu.reciprocal %295 {approx = true} : vector<3x8x1xf32> -> vector<3x8x1xf32>
    %297 = vector.broadcast %296 : vector<3x8x1xf32> to vector<3x8x8xf32>
    %298 = arith.mulf %293, %297 : vector<3x8x8xf32>
    %299 = arith.truncf %298 : vector<3x8x8xf32> to vector<3x8x8xbf16>
    %300 = vector.extract_strided_slice %252 {offsets = [0, 0, 32], sizes = [3, 8, 32], strides = [1, 1, 1]} : vector<3x8x128xf32> to vector<3x8x32xf32>
    %301 = arith.truncf %300 : vector<3x8x32xf32> to vector<3x8x32xbf16>
    "tpu.trace_start"() <{level = 10 : i32, message = "bqk,bkd->bqd"}> : () -> ()
    %cst_108 = arith.constant dense<0.000000e+00> : vector<3x8x32xf32>
    %302 = tpu.matmul %299, %301, %cst_108 {dimension_numbers = #tpu.dot_dimension_numbers<[2], [1], [1], [2], [0, 0, 0, 1, 1, 2], [0], [0]>} : vector<3x8x8xbf16>, vector<3x8x32xbf16>, vector<3x8x32xf32> -> vector<3x8x32xf32>
    "tpu.trace_stop"() : () -> ()
    %303 = vector.extract_strided_slice %248 {offsets = [0, 0, 64], sizes = [3, 8, 32], strides = [1, 1, 1]} : vector<3x8x128xf32> to vector<3x8x32xf32>
    %304 = arith.truncf %303 : vector<3x8x32xf32> to vector<3x8x32xbf16>
    %305 = vector.extract_strided_slice %250 {offsets = [0, 0, 64], sizes = [3, 8, 32], strides = [1, 1, 1]} : vector<3x8x128xf32> to vector<3x8x32xf32>
    %306 = arith.truncf %305 : vector<3x8x32xf32> to vector<3x8x32xbf16>
    "tpu.trace_start"() <{level = 10 : i32, message = "bqd,bkd->bqk"}> : () -> ()
    %cst_109 = arith.constant dense<0.000000e+00> : vector<3x8x8xf32>
    %307 = tpu.matmul %304, %306, %cst_109 {dimension_numbers = #tpu.dot_dimension_numbers<[2], [2], [1], [1], [0, 0, 0, 1, 1, 1], [0], [0]>} : vector<3x8x32xbf16>, vector<3x8x32xbf16>, vector<3x8x8xf32> -> vector<3x8x8xf32>
    "tpu.trace_stop"() : () -> ()
    %cst_110 = arith.constant 0.176776692 : f32
    %308 = vector.broadcast %cst_110 : f32 to vector<3x8x8xf32>
    %309 = arith.mulf %307, %308 : vector<3x8x8xf32>
    %cst_111 = arith.constant -1.000000e+30 : f32
    %310 = vector.shape_cast %10 : vector<1x8x8xi1> to vector<1x8x8xi1>
    %311 = vector.broadcast %310 : vector<1x8x8xi1> to vector<3x8x8xi1>
    %312 = vector.broadcast %cst_111 : f32 to vector<3x8x8xf32>
    %313 = arith.select %311, %309, %312 : vector<3x8x8xi1>, vector<3x8x8xf32>
    %cst_112 = arith.constant dense<0xFF800000> : vector<3x8xf32>
    %314 = vector.multi_reduction <maximumf>, %313, %cst_112 [2] : vector<3x8x8xf32> to vector<3x8xf32>
    %315 = vector.shape_cast %314 : vector<3x8xf32> to vector<3x8x1xf32>
    %316 = vector.broadcast %315 : vector<3x8x1xf32> to vector<3x8x8xf32>
    %317 = arith.subf %313, %316 : vector<3x8x8xf32>
    %318 = math.exp %317 : vector<3x8x8xf32>
    %cst_113 = arith.constant dense<0.000000e+00> : vector<3x8xf32>
    %319 = vector.multi_reduction <add>, %318, %cst_113 [2] : vector<3x8x8xf32> to vector<3x8xf32>
    %320 = vector.shape_cast %319 : vector<3x8xf32> to vector<3x8x1xf32>
    %321 = tpu.reciprocal %320 {approx = true} : vector<3x8x1xf32> -> vector<3x8x1xf32>
    %322 = vector.broadcast %321 : vector<3x8x1xf32> to vector<3x8x8xf32>
    %323 = arith.mulf %318, %322 : vector<3x8x8xf32>
    %324 = arith.truncf %323 : vector<3x8x8xf32> to vector<3x8x8xbf16>
    %325 = vector.extract_strided_slice %252 {offsets = [0, 0, 64], sizes = [3, 8, 32], strides = [1, 1, 1]} : vector<3x8x128xf32> to vector<3x8x32xf32>
    %326 = arith.truncf %325 : vector<3x8x32xf32> to vector<3x8x32xbf16>
    "tpu.trace_start"() <{level = 10 : i32, message = "bqk,bkd->bqd"}> : () -> ()
    %cst_114 = arith.constant dense<0.000000e+00> : vector<3x8x32xf32>
    %327 = tpu.matmul %324, %326, %cst_114 {dimension_numbers = #tpu.dot_dimension_numbers<[2], [1], [1], [2], [0, 0, 0, 1, 1, 2], [0], [0]>} : vector<3x8x8xbf16>, vector<3x8x32xbf16>, vector<3x8x32xf32> -> vector<3x8x32xf32>
    "tpu.trace_stop"() : () -> ()
    %328 = vector.extract_strided_slice %248 {offsets = [0, 0, 96], sizes = [3, 8, 32], strides = [1, 1, 1]} : vector<3x8x128xf32> to vector<3x8x32xf32>
    %329 = arith.truncf %328 : vector<3x8x32xf32> to vector<3x8x32xbf16>
    %330 = vector.extract_strided_slice %250 {offsets = [0, 0, 96], sizes = [3, 8, 32], strides = [1, 1, 1]} : vector<3x8x128xf32> to vector<3x8x32xf32>
    %331 = arith.truncf %330 : vector<3x8x32xf32> to vector<3x8x32xbf16>
    "tpu.trace_start"() <{level = 10 : i32, message = "bqd,bkd->bqk"}> : () -> ()
    %cst_115 = arith.constant dense<0.000000e+00> : vector<3x8x8xf32>
    %332 = tpu.matmul %329, %331, %cst_115 {dimension_numbers = #tpu.dot_dimension_numbers<[2], [2], [1], [1], [0, 0, 0, 1, 1, 1], [0], [0]>} : vector<3x8x32xbf16>, vector<3x8x32xbf16>, vector<3x8x8xf32> -> vector<3x8x8xf32>
    "tpu.trace_stop"() : () -> ()
    %cst_116 = arith.constant 0.176776692 : f32
    %333 = vector.broadcast %cst_116 : f32 to vector<3x8x8xf32>
    %334 = arith.mulf %332, %333 : vector<3x8x8xf32>
    %cst_117 = arith.constant -1.000000e+30 : f32
    %335 = vector.shape_cast %10 : vector<1x8x8xi1> to vector<1x8x8xi1>
    %336 = vector.broadcast %335 : vector<1x8x8xi1> to vector<3x8x8xi1>
    %337 = vector.broadcast %cst_117 : f32 to vector<3x8x8xf32>
    %338 = arith.select %336, %334, %337 : vector<3x8x8xi1>, vector<3x8x8xf32>
    %cst_118 = arith.constant dense<0xFF800000> : vector<3x8xf32>
    %339 = vector.multi_reduction <maximumf>, %338, %cst_118 [2] : vector<3x8x8xf32> to vector<3x8xf32>
    %340 = vector.shape_cast %339 : vector<3x8xf32> to vector<3x8x1xf32>
    %341 = vector.broadcast %340 : vector<3x8x1xf32> to vector<3x8x8xf32>
    %342 = arith.subf %338, %341 : vector<3x8x8xf32>
    %343 = math.exp %342 : vector<3x8x8xf32>
    %cst_119 = arith.constant dense<0.000000e+00> : vector<3x8xf32>
    %344 = vector.multi_reduction <add>, %343, %cst_119 [2] : vector<3x8x8xf32> to vector<3x8xf32>
    %345 = vector.shape_cast %344 : vector<3x8xf32> to vector<3x8x1xf32>
    %346 = tpu.reciprocal %345 {approx = true} : vector<3x8x1xf32> -> vector<3x8x1xf32>
    %347 = vector.broadcast %346 : vector<3x8x1xf32> to vector<3x8x8xf32>
    %348 = arith.mulf %343, %347 : vector<3x8x8xf32>
    %349 = arith.truncf %348 : vector<3x8x8xf32> to vector<3x8x8xbf16>
    %350 = vector.extract_strided_slice %252 {offsets = [0, 0, 96], sizes = [3, 8, 32], strides = [1, 1, 1]} : vector<3x8x128xf32> to vector<3x8x32xf32>
    %351 = arith.truncf %350 : vector<3x8x32xf32> to vector<3x8x32xbf16>
    "tpu.trace_start"() <{level = 10 : i32, message = "bqk,bkd->bqd"}> : () -> ()
    %cst_120 = arith.constant dense<0.000000e+00> : vector<3x8x32xf32>
    %352 = tpu.matmul %349, %351, %cst_120 {dimension_numbers = #tpu.dot_dimension_numbers<[2], [1], [1], [2], [0, 0, 0, 1, 1, 2], [0], [0]>} : vector<3x8x8xbf16>, vector<3x8x32xbf16>, vector<3x8x32xf32> -> vector<3x8x32xf32>
    "tpu.trace_stop"() : () -> ()
    %353 = tpu.concatenate %277, %302, %327, %352 in 2 : vector<3x8x32xf32>, vector<3x8x32xf32>, vector<3x8x32xf32>, vector<3x8x32xf32> -> vector<3x8x128xf32>
    %354 = vector.shape_cast %353 : vector<3x8x128xf32> to vector<24x128xf32>
    %c1_121 = arith.constant 1 : index
    %c0_122 = arith.constant 0 : index
    %c0_123 = arith.constant 0 : index
    %355 = vector.load %arg6[%c1_121, %c0_122, %c0_123] : memref<2x128x128xbf16, #tpu.memory_space<vmem>>, vector<1x128x128xbf16>
    %356 = vector.shape_cast %355 : vector<1x128x128xbf16> to vector<128x128xbf16>
    %357 = arith.truncf %354 : vector<24x128xf32> to vector<24x128xbf16>
    %cst_124 = arith.constant dense<0.000000e+00> : vector<24x128xf32>
    %358 = tpu.matmul %357, %356, %cst_124 {dimension_numbers = #tpu.dot_dimension_numbers<[1], [0], [0], [1], [0, 0, 1, 1], [], []>} : vector<24x128xbf16>, vector<128x128xbf16>, vector<24x128xf32> -> vector<24x128xf32>
    %359 = arith.addf %212, %358 : vector<24x128xf32>
    %c1_125 = arith.constant 1 : index
    %c0_126 = arith.constant 0 : index
    %c0_127 = arith.constant 0 : index
    %360 = vector.load %arg7[%c1_125, %c0_126, %c0_127] : memref<2x1x128xf32, #tpu.memory_space<vmem>>, vector<1x1x128xf32>
    %361 = vector.shape_cast %360 : vector<1x1x128xf32> to vector<1x128xf32>
    %362 = vector.broadcast %361 : vector<1x128xf32> to vector<24x128xf32>
    %363 = arith.addf %359, %362 : vector<24x128xf32>
    %c1_128 = arith.constant 1 : index
    %c0_129 = arith.constant 0 : index
    %c0_130 = arith.constant 0 : index
    %364 = vector.load %arg10[%c1_128, %c0_129, %c0_130] : memref<2x1x128xf32, #tpu.memory_space<vmem>>, vector<1x1x128xf32>
    %365 = vector.shape_cast %364 : vector<1x1x128xf32> to vector<1x128xf32>
    %c1_131 = arith.constant 1 : index
    %c0_132 = arith.constant 0 : index
    %c0_133 = arith.constant 0 : index
    %366 = vector.load %arg11[%c1_131, %c0_132, %c0_133] : memref<2x1x128xf32, #tpu.memory_space<vmem>>, vector<1x1x128xf32>
    %367 = vector.shape_cast %366 : vector<1x1x128xf32> to vector<1x128xf32>
    %cst_134 = arith.constant dense<0.000000e+00> : vector<24xf32>
    %368 = vector.multi_reduction <add>, %363, %cst_134 [1] : vector<24x128xf32> to vector<24xf32>
    %369 = vector.shape_cast %368 : vector<24xf32> to vector<24x1xf32>
    %cst_135 = arith.constant 1.280000e+02 : f32
    %370 = vector.broadcast %cst_135 : f32 to vector<24x1xf32>
    %371 = arith.divf %369, %370 : vector<24x1xf32>
    %372 = vector.broadcast %371 : vector<24x1xf32> to vector<24x128xf32>
    %373 = arith.subf %363, %372 : vector<24x128xf32>
    %374 = arith.mulf %373, %373 : vector<24x128xf32>
    %cst_136 = arith.constant dense<0.000000e+00> : vector<24xf32>
    %375 = vector.multi_reduction <add>, %374, %cst_136 [1] : vector<24x128xf32> to vector<24xf32>
    %376 = vector.shape_cast %375 : vector<24xf32> to vector<24x1xf32>
    %cst_137 = arith.constant 1.280000e+02 : f32
    %377 = vector.broadcast %cst_137 : f32 to vector<24x1xf32>
    %378 = arith.divf %376, %377 : vector<24x1xf32>
    %379 = vector.broadcast %371 : vector<24x1xf32> to vector<24x128xf32>
    %380 = arith.subf %363, %379 : vector<24x128xf32>
    %cst_138 = arith.constant 9.99999974E-6 : f32
    %381 = vector.broadcast %cst_138 : f32 to vector<24x1xf32>
    %382 = arith.addf %378, %381 : vector<24x1xf32>
    %383 = math.rsqrt %382 : vector<24x1xf32>
    %384 = vector.broadcast %383 : vector<24x1xf32> to vector<24x128xf32>
    %385 = arith.mulf %380, %384 : vector<24x128xf32>
    %386 = vector.broadcast %365 : vector<1x128xf32> to vector<24x128xf32>
    %387 = arith.mulf %385, %386 : vector<24x128xf32>
    %388 = vector.broadcast %367 : vector<1x128xf32> to vector<24x128xf32>
    %389 = arith.addf %387, %388 : vector<24x128xf32>
    %c1_139 = arith.constant 1 : index
    %c0_140 = arith.constant 0 : index
    %c0_141 = arith.constant 0 : index
    %390 = vector.load %arg12[%c1_139, %c0_140, %c0_141] : memref<2x128x512xbf16, #tpu.memory_space<vmem>>, vector<1x128x512xbf16>
    %391 = vector.shape_cast %390 : vector<1x128x512xbf16> to vector<128x512xbf16>
    %392 = arith.truncf %389 : vector<24x128xf32> to vector<24x128xbf16>
    %cst_142 = arith.constant dense<0.000000e+00> : vector<24x512xf32>
    %393 = tpu.matmul %392, %391, %cst_142 {dimension_numbers = #tpu.dot_dimension_numbers<[1], [0], [0], [1], [0, 0, 1, 1], [], []>} : vector<24x128xbf16>, vector<128x512xbf16>, vector<24x512xf32> -> vector<24x512xf32>
    %c1_143 = arith.constant 1 : index
    %c0_144 = arith.constant 0 : index
    %c0_145 = arith.constant 0 : index
    %394 = vector.load %arg13[%c1_143, %c0_144, %c0_145] : memref<2x1x512xf32, #tpu.memory_space<vmem>>, vector<1x1x512xf32>
    %395 = vector.shape_cast %394 : vector<1x1x512xf32> to vector<1x512xf32>
    %396 = vector.broadcast %395 : vector<1x512xf32> to vector<24x512xf32>
    %397 = arith.addf %393, %396 : vector<24x512xf32>
    %cst_146 = arith.constant 1.702000e+00 : f32
    %398 = vector.broadcast %cst_146 : f32 to vector<24x512xf32>
    %399 = arith.mulf %398, %397 : vector<24x512xf32>
    %400 = arith.negf %399 : vector<24x512xf32>
    %401 = math.exp %400 : vector<24x512xf32>
    %cst_147 = arith.constant 1.000000e+00 : f32
    %402 = vector.broadcast %cst_147 : f32 to vector<24x512xf32>
    %403 = arith.addf %402, %401 : vector<24x512xf32>
    %404 = arith.divf %402, %403 : vector<24x512xf32>
    %405 = arith.mulf %397, %404 : vector<24x512xf32>
    %c1_148 = arith.constant 1 : index
    %c0_149 = arith.constant 0 : index
    %c0_150 = arith.constant 0 : index
    %406 = vector.load %arg14[%c1_148, %c0_149, %c0_150] : memref<2x512x128xbf16, #tpu.memory_space<vmem>>, vector<1x512x128xbf16>
    %407 = vector.shape_cast %406 : vector<1x512x128xbf16> to vector<512x128xbf16>
    %408 = arith.truncf %405 : vector<24x512xf32> to vector<24x512xbf16>
    %cst_151 = arith.constant dense<0.000000e+00> : vector<24x128xf32>
    %409 = tpu.matmul %408, %407, %cst_151 {dimension_numbers = #tpu.dot_dimension_numbers<[1], [0], [0], [1], [0, 0, 1, 1], [], []>} : vector<24x512xbf16>, vector<512x128xbf16>, vector<24x128xf32> -> vector<24x128xf32>
    %410 = arith.addf %363, %409 : vector<24x128xf32>
    %c1_152 = arith.constant 1 : index
    %c0_153 = arith.constant 0 : index
    %c0_154 = arith.constant 0 : index
    %411 = vector.load %arg15[%c1_152, %c0_153, %c0_154] : memref<2x1x128xf32, #tpu.memory_space<vmem>>, vector<1x1x128xf32>
    %412 = vector.shape_cast %411 : vector<1x1x128xf32> to vector<1x128xf32>
    %413 = vector.broadcast %412 : vector<1x128xf32> to vector<24x128xf32>
    %414 = arith.addf %410, %413 : vector<24x128xf32>
    %415 = vector.shape_cast %414 : vector<24x128xf32> to vector<3x8x128xf32>
    %416 = arith.index_cast %arg0 : i32 to index
    %417 = memref.load %arg1[%416] : memref<2xi32, #tpu.memory_space<smem>>
    %418 = tpu.iota {dimensions = array<i32: 1>} : vector<3x8x128xi32>
    %419 = vector.broadcast %417 : i32 to vector<3x8x128xi32>
    %420 = arith.cmpi eq, %418, %419 : vector<3x8x128xi32>
    %421 = arith.extui %420 : vector<3x8x128xi1> to vector<3x8x128xi32>
    %422 = arith.sitofp %421 : vector<3x8x128xi32> to vector<3x8x128xf32>
    %423 = arith.mulf %415, %422 : vector<3x8x128xf32>
    %cst_155 = arith.constant dense<0.000000e+00> : vector<3x128xf32>
    %424 = vector.multi_reduction <add>, %423, %cst_155 [1] : vector<3x8x128xf32> to vector<3x128xf32>
    %c0_156 = arith.constant 0 : index
    %c0_157 = arith.constant 0 : index
    %425 = vector.load %arg16[%c0_156, %c0_157] : memref<1x128xf32, #tpu.memory_space<vmem>>, vector<1x128xf32>
    %c0_158 = arith.constant 0 : index
    %c0_159 = arith.constant 0 : index
    %426 = vector.load %arg17[%c0_158, %c0_159] : memref<1x128xf32, #tpu.memory_space<vmem>>, vector<1x128xf32>
    %cst_160 = arith.constant dense<0.000000e+00> : vector<3xf32>
    %427 = vector.multi_reduction <add>, %424, %cst_160 [1] : vector<3x128xf32> to vector<3xf32>
    %428 = vector.shape_cast %427 : vector<3xf32> to vector<3x1xf32>
    %cst_161 = arith.constant 1.280000e+02 : f32
    %429 = vector.broadcast %cst_161 : f32 to vector<3x1xf32>
    %430 = arith.divf %428, %429 : vector<3x1xf32>
    %431 = vector.broadcast %430 : vector<3x1xf32> to vector<3x128xf32>
    %432 = arith.subf %424, %431 : vector<3x128xf32>
    %433 = arith.mulf %432, %432 : vector<3x128xf32>
    %cst_162 = arith.constant dense<0.000000e+00> : vector<3xf32>
    %434 = vector.multi_reduction <add>, %433, %cst_162 [1] : vector<3x128xf32> to vector<3xf32>
    %435 = vector.shape_cast %434 : vector<3xf32> to vector<3x1xf32>
    %cst_163 = arith.constant 1.280000e+02 : f32
    %436 = vector.broadcast %cst_163 : f32 to vector<3x1xf32>
    %437 = arith.divf %435, %436 : vector<3x1xf32>
    %438 = vector.broadcast %430 : vector<3x1xf32> to vector<3x128xf32>
    %439 = arith.subf %424, %438 : vector<3x128xf32>
    %cst_164 = arith.constant 9.99999974E-6 : f32
    %440 = vector.broadcast %cst_164 : f32 to vector<3x1xf32>
    %441 = arith.addf %437, %440 : vector<3x1xf32>
    %442 = math.rsqrt %441 : vector<3x1xf32>
    %443 = vector.broadcast %442 : vector<3x1xf32> to vector<3x128xf32>
    %444 = arith.mulf %439, %443 : vector<3x128xf32>
    %445 = vector.broadcast %425 : vector<1x128xf32> to vector<3x128xf32>
    %446 = arith.mulf %444, %445 : vector<3x128xf32>
    %447 = vector.broadcast %426 : vector<1x128xf32> to vector<3x128xf32>
    %448 = arith.addf %446, %447 : vector<3x128xf32>
    %c0_165 = arith.constant 0 : index
    %c0_166 = arith.constant 0 : index
    %449 = vector.load %arg18[%c0_165, %c0_166] : memref<128x128xbf16, #tpu.memory_space<vmem>>, vector<128x128xbf16>
    %450 = arith.truncf %448 : vector<3x128xf32> to vector<3x128xbf16>
    %cst_167 = arith.constant dense<0.000000e+00> : vector<3x128xf32>
    %451 = tpu.matmul %450, %449, %cst_167 {dimension_numbers = #tpu.dot_dimension_numbers<[1], [0], [0], [1], [0, 0, 1, 1], [], []>} : vector<3x128xbf16>, vector<128x128xbf16>, vector<3x128xf32> -> vector<3x128xf32>
    %c0_168 = arith.constant 0 : index
    %c0_169 = arith.constant 0 : index
    %c0_170 = arith.constant 0 : index
    %452 = vector.load %arg19[%c0_168, %c0_169, %c0_170] : memref<1x3x128xf32, #tpu.memory_space<vmem>>, vector<1x3x128xf32>
    %453 = vector.shape_cast %452 : vector<1x3x128xf32> to vector<3x128xf32>
    %454 = vector.shape_cast %451 : vector<3x128xf32> to vector<1x3x128xf32>
    tpu.vector_store %arg19[%c0_168, %c0_169, %c0_170], %454 {strides = array<i32>} : memref<1x3x128xf32, #tpu.memory_space<vmem>>, vector<1x3x128xf32>,
    return
  }
  func.func @transform_0(%arg0: i32, %arg1: memref<2xi32, #tpu.memory_space<smem>>) -> (i32, i32, i32, i32) {
    %c0_i32 = arith.constant 0 : i32
    %c0_i32_0 = arith.constant 0 : i32
    %c0_i32_1 = arith.constant 0 : i32
    %c0_i32_2 = arith.constant 0 : i32
    return %arg0, %c0_i32, %c0_i32_0, %c0_i32_1 : i32, i32, i32, i32
  }
  func.func @transform_1(%arg0: i32, %arg1: memref<2xi32, #tpu.memory_space<smem>>) -> (i32, i32) {
    %c0_i32 = arith.constant 0 : i32
    %c0_i32_0 = arith.constant 0 : i32
    %c0_i32_1 = arith.constant 0 : i32
    return %c0_i32, %c0_i32_0 : i32, i32
  }
  func.func @transform_2(%arg0: i32, %arg1: memref<2xi32, #tpu.memory_space<smem>>) -> (i32, i32, i32) {
    %c0_i32 = arith.constant 0 : i32
    %c0_i32_0 = arith.constant 0 : i32
    %c0_i32_1 = arith.constant 0 : i32
    %c0_i32_2 = arith.constant 0 : i32
    return %c0_i32, %c0_i32_0, %c0_i32_1 : i32, i32, i32
  }
  func.func @transform_3(%arg0: i32, %arg1: memref<2xi32, #tpu.memory_space<smem>>) -> (i32, i32, i32) {
    %c0_i32 = arith.constant 0 : i32
    %c0_i32_0 = arith.constant 0 : i32
    %c0_i32_1 = arith.constant 0 : i32
    %c0_i32_2 = arith.constant 0 : i32
    return %c0_i32, %c0_i32_0, %c0_i32_1 : i32, i32, i32
  }
  func.func @transform_4(%arg0: i32, %arg1: memref<2xi32, #tpu.memory_space<smem>>) -> (i32, i32, i32) {
    %c0_i32 = arith.constant 0 : i32
    %c0_i32_0 = arith.constant 0 : i32
    %c0_i32_1 = arith.constant 0 : i32
    %c0_i32_2 = arith.constant 0 : i32
    return %c0_i32, %c0_i32_0, %c0_i32_1 : i32, i32, i32
  }
  func.func @transform_5(%arg0: i32, %arg1: memref<2xi32, #tpu.memory_space<smem>>) -> (i32, i32, i32) {
    %c0_i32 = arith.constant 0 : i32
    %c0_i32_0 = arith.constant 0 : i32
    %c0_i32_1 = arith.constant 0 : i32
    %c0_i32_2 = arith.constant 0 : i32
    return %c0_i32, %c0_i32_0, %c0_i32_1 : i32, i32, i32
  }
  func.func @transform_6(%arg0: i32, %arg1: memref<2xi32, #tpu.memory_space<smem>>) -> (i32, i32, i32) {
    %c0_i32 = arith.constant 0 : i32
    %c0_i32_0 = arith.constant 0 : i32
    %c0_i32_1 = arith.constant 0 : i32
    %c0_i32_2 = arith.constant 0 : i32
    return %c0_i32, %c0_i32_0, %c0_i32_1 : i32, i32, i32
  }
  func.func @transform_7(%arg0: i32, %arg1: memref<2xi32, #tpu.memory_space<smem>>) -> (i32, i32, i32) {
    %c0_i32 = arith.constant 0 : i32
    %c0_i32_0 = arith.constant 0 : i32
    %c0_i32_1 = arith.constant 0 : i32
    %c0_i32_2 = arith.constant 0 : i32
    return %c0_i32, %c0_i32_0, %c0_i32_1 : i32, i32, i32
  }
  func.func @transform_8(%arg0: i32, %arg1: memref<2xi32, #tpu.memory_space<smem>>) -> (i32, i32, i32) {
    %c0_i32 = arith.constant 0 : i32
    %c0_i32_0 = arith.constant 0 : i32
    %c0_i32_1 = arith.constant 0 : i32
    %c0_i32_2 = arith.constant 0 : i32
    return %c0_i32, %c0_i32_0, %c0_i32_1 : i32, i32, i32
  }
  func.func @transform_9(%arg0: i32, %arg1: memref<2xi32, #tpu.memory_space<smem>>) -> (i32, i32, i32) {
    %c0_i32 = arith.constant 0 : i32
    %c0_i32_0 = arith.constant 0 : i32
    %c0_i32_1 = arith.constant 0 : i32
    %c0_i32_2 = arith.constant 0 : i32
    return %c0_i32, %c0_i32_0, %c0_i32_1 : i32, i32, i32
  }
  func.func @transform_10(%arg0: i32, %arg1: memref<2xi32, #tpu.memory_space<smem>>) -> (i32, i32, i32) {
    %c0_i32 = arith.constant 0 : i32
    %c0_i32_0 = arith.constant 0 : i32
    %c0_i32_1 = arith.constant 0 : i32
    %c0_i32_2 = arith.constant 0 : i32
    return %c0_i32, %c0_i32_0, %c0_i32_1 : i32, i32, i32
  }
  func.func @transform_11(%arg0: i32, %arg1: memref<2xi32, #tpu.memory_space<smem>>) -> (i32, i32, i32) {
    %c0_i32 = arith.constant 0 : i32
    %c0_i32_0 = arith.constant 0 : i32
    %c0_i32_1 = arith.constant 0 : i32
    %c0_i32_2 = arith.constant 0 : i32
    return %c0_i32, %c0_i32_0, %c0_i32_1 : i32, i32, i32
  }
  func.func @transform_12(%arg0: i32, %arg1: memref<2xi32, #tpu.memory_space<smem>>) -> (i32, i32, i32) {
    %c0_i32 = arith.constant 0 : i32
    %c0_i32_0 = arith.constant 0 : i32
    %c0_i32_1 = arith.constant 0 : i32
    %c0_i32_2 = arith.constant 0 : i32
    return %c0_i32, %c0_i32_0, %c0_i32_1 : i32, i32, i32
  }
  func.func @transform_13(%arg0: i32, %arg1: memref<2xi32, #tpu.memory_space<smem>>) -> (i32, i32, i32) {
    %c0_i32 = arith.constant 0 : i32
    %c0_i32_0 = arith.constant 0 : i32
    %c0_i32_1 = arith.constant 0 : i32
    %c0_i32_2 = arith.constant 0 : i32
    return %c0_i32, %c0_i32_0, %c0_i32_1 : i32, i32, i32
  }
  func.func @transform_14(%arg0: i32, %arg1: memref<2xi32, #tpu.memory_space<smem>>) -> (i32, i32) {
    %c0_i32 = arith.constant 0 : i32
    %c0_i32_0 = arith.constant 0 : i32
    %c0_i32_1 = arith.constant 0 : i32
    return %c0_i32, %c0_i32_0 : i32, i32
  }
  func.func @transform_15(%arg0: i32, %arg1: memref<2xi32, #tpu.memory_space<smem>>) -> (i32, i32) {
    %c0_i32 = arith.constant 0 : i32
    %c0_i32_0 = arith.constant 0 : i32
    %c0_i32_1 = arith.constant 0 : i32
    return %c0_i32, %c0_i32_0 : i32, i32
  }
  func.func @transform_16(%arg0: i32, %arg1: memref<2xi32, #tpu.memory_space<smem>>) -> (i32, i32) {
    %c0_i32 = arith.constant 0 : i32
    %c0_i32_0 = arith.constant 0 : i32
    %c0_i32_1 = arith.constant 0 : i32
    return %c0_i32, %c0_i32_0 : i32, i32
  }
  func.func @transform_17(%arg0: i32, %arg1: memref<2xi32, #tpu.memory_space<smem>>) -> (i32, i32, i32) {
    %c0_i32 = arith.constant 0 : i32
    %c0_i32_0 = arith.constant 0 : i32
    %c0_i32_1 = arith.constant 0 : i32
    return %arg0, %c0_i32, %c0_i32_0 : i32, i32, i32
  }
}

</mosaic_0001>

<bundles_post_ra>
// kernel: tpu_custom_call.1
= control target key start
LH: loop header
LB: loop body
LE: loop exit
PB: predicated region body
PF: predicated region fallthrough
CT: control target
= control target key end

     0   :  { %s8409_s27 = smov [#allocation3]   ;;  %s9674_s0 = inlined_call_operand.hbm [shape: s32[2], index: 0, kind: input, shape index: {}]   ;;  %s9675_s1 = inlined_call_operand.hbm [shape: f32[2,3,8,128], index: 1, kind: input, shape index: {}]   ;;  %s9676_s2 = inlined_call_operand.hbm [shape: f32[8,128], index: 2, kind: input, shape index: {}]   ;;  %s9677_s3 = inlined_call_operand.hbm [shape: bf16[2,128,384], index: 3, kind: input, shape index: {}]   ;;  %s9678_s4 = inlined_call_operand.vmem [shape: f32[2,1,384], index: 4, kind: input, shape index: {}]   ;;  %s9679_s5 = inlined_call_operand.hbm [shape: bf16[2,128,128], index: 5, kind: input, shape index: {}]   ;;  %s9680_s6 = inlined_call_operand.vmem [shape: f32[2,1,128], index: 6, kind: input, shape index: {}]   ;;  %s9681_s7 = inlined_call_operand.hbm [shape: f32[2,1,128], index: 7, kind: input, shape index: {}]   ;;  %s9682_s8 = inlined_call_operand.hbm [shape: f32[2,1,128], index: 8, kind: input, shape index: {}]   ;;  %s9683_s9 = inlined_call_operand.hbm [shape: f32[2,1,128], index: 9, kind: input, shape index: {}]   ;;  %s9684_s10 = inlined_call_operand.vmem [shape: f32[2,1,128], index: 10, kind: input, shape index: {}]   ;;  %s9685_s11 = inlined_call_operand.hbm [shape: bf16[2,128,512], index: 11, kind: input, shape index: {}]   ;;  %s9686_s12 = inlined_call_operand.vmem [shape: f32[2,1,512], index: 12, kind: input, shape index: {}]   ;;  %s9687_s13 = inlined_call_operand.hbm [shape: bf16[2,512,128], index: 13, kind: input, shape index: {}]   ;;  %s9688_s14 = inlined_call_operand.vmem [shape: f32[2,1,128], index: 14, kind: input, shape index: {}]   ;;  %s9689_s15 = inlined_call_operand.vmem [shape: f32[1,128], index: 15, kind: input, shape index: {}]   ;;  %s9690_s16 = inlined_call_operand.vmem [shape: f32[1,128], index: 16, kind: input, shape index: {}]   ;;  %s9691_s17 = inlined_call_operand.hbm [shape: bf16[128,128], index: 17, kind: input, shape index: {}]   ;;  %s9692_s18 = inlined_call_operand.vmem [shape: f32[2,3,128], index: 18, kind: output, shape index: {}]  }
   0x1   :  { %9706 = sst [smem:[#allocation27_spill]] %s9674_s0 }
   0x2   :  { %9707 = sst [smem:[#allocation28_spill]] %s9675_s1 }
   0x3   :  { %9708 = sst [smem:[#allocation29_spill]] %s9676_s2 }
   0x4   :  { %9709 = sst [smem:[#allocation30_spill]] %s9677_s3 }
   0x5   :  { %9710 = sst [smem:[#allocation31_spill]] %s9679_s5 }
   0x6   :  { %9711 = sst [smem:[#allocation32_spill]] %s9681_s7 }
   0x7   :  { %9712 = sst [smem:[#allocation33_spill]] %s9682_s8 }
   0x8   :  { %9713 = sst [smem:[#allocation34_spill]] %s9686_s12 }
   0x9   :  { %9714 = sst [smem:[#allocation35_spill]] %s9692_s18 }
   0xa   :  { %s9715_s12 = sld [smem:[#allocation27_spill]] }
  0x10   :  { %24 = dma.hbm_to_smem %s9715_s12, 16, %s8409_s27, [#allocation2] }
  0x11   :  { %8367 = dma.done.wait [#allocation2], 16 }
  0x12   :  { %8368 = vsyncadd [#allocation2], 4294967280 }
  0x13   :  { %26 = sfence }
  0x14   :  { %27 = vsyncpa [#allocation5], 0 }
  0x15   :  { %29 = vsyncpa [#allocation5 + $0x1], 0 }
  0x16   :  { %30 = vsyncpa [#allocation7], 0 }
  0x17   :  { %31 = vsyncpa [#allocation10], 0 }
  0x18   :  { %32 = vsyncpa [#allocation13], 0 }
  0x19   :  { %33 = vsyncpa [#allocation16], 0 }
  0x1a   :  { %34 = vsyncpa [#allocation19], 0  ;;  %s8533_s30 = smov 0   ;;  %s8535_s0 = smov 0  }
  0x1b   :  { %s8537_s19 = smov 0   ;;  %s8539_s1 = smov 0  }
  0x1c LB: > { %s8410_s12 = smov [#allocation6]   ;;  %s8554_s21 = sadd.s32 4294967295, %s8407_s1   ;;  %s8407_s1 = sphi %s8539_s1, %s9751_s1   ;;  %s8403_s19 = sphi %s8537_s19, %s9750_s19   ;;  %s8399_s0 = sphi %s8535_s0, %s9749_s0   ;;  %s8395_s30 = sphi %s8533_s30, %s9748_s30  }
  0x1d   : > { %s446_s20 = sshll.u32 %s8410_s12, 4  ;;  %p6474_p0 = scmp.ge.s32.totalorder %s8407_s1, 1  ;;  %s447_s20 = int_to_ptr.vmem [resolvable:$true] %s446_s20 }
  0x1e   : > { %p9703_p1 = scmp.eq.s32.totalorder %s8554_s21, 0  ;;  %p433_p2 = scmp.lt.s32.totalorder %s8407_s1, 3 }
  0x1f   : > { %s8411_s2 = smov [#allocation9]   ;;  %s8412_s25 = smov [#allocation12]  }
  0x20   : > { %p8559_p3 = pnand %p6474_p0, %p433_p2  ;;  %s472_s23 = sshll.u32 %s8411_s2, 4  ;;  %s8565_s23 = int_to_ptr.vmem [resolvable:$true] %s472_s23 }
  0x21   : > { %s501_s26 = sshll.u32 %s8412_s25, 4  ;;  %s8100_s28 = scalar_lea.vmem %s447_s20, 128  ;;  %s502_s26 = int_to_ptr.vmem [resolvable:$true] %s501_s26 }
  0x22   : > { %s9716_s22 = scalar_select %p8559_p3, 1, 0 }
  0x23   : > { %p7477_p4 = pneg %p8559_p3  ;;  %p8101_p7 = scmp.ne.s32.totalorder %s447_s20, %s8100_s28 }
  0x24   : > { %p8108_p10 = scmp.lt.s32.totalorder %s447_s20, %s447_s20  ;;  %p8109_p11 = scmp.lt.s32.totalorder %s8100_s28, %s8100_s28 }
  0x25   : > { %p8569_p5 = pnand %p7477_p4, %p9703_p1 }
  0x26   : > { %p8110_p12 = por %p8109_p11, %p8108_p10 }
  0x27   : > { %p8575_p6 = pneg %p8569_p5 }
  0x29   : > { %p8103_p8 = pnand %p8101_p7, %p8575_p6 }
  0x2b   : > { %p8104_p9 = pneg %p8103_p8 }
  0x2d   : > { %p8111_p13 = pnand %p8110_p12, %p8104_p9 }
  0x2f   : > { %8114 = shalt.err (!%p8111_p13)
}
  0x30   : > { %s9719_s2 = sld [smem:[#allocation29_spill]]  ;;  %s8126_s25 = scalar_lea.vmem %s8565_s23, 2048 }
  0x31   : > { %p8127_p0 = scmp.ne.s32.totalorder %s8565_s23, %s8126_s25  ;;  %p8134_p7 = scmp.lt.s32.totalorder %s8565_s23, %s8565_s23 }
  0x32   : > { %p8135_p8 = scmp.lt.s32.totalorder %s8126_s25, %s8126_s25 }
  0x33   : > { %p8129_p2 = pnand %p8127_p0, %p8575_p6 }
  0x34   : > { %p8136_p9 = por %p8135_p8, %p8134_p7 }
  0x35   : > { %p8130_p4 = pneg %p8129_p2 }
  0x36   : > { %7480 = dma.hbm_to_vmem [thread:$0]  (!%p8569_p5), %s9719_s2, 128, %s447_s20, [#allocation7]  }
  0x37   : > { %p8137_p10 = pnand %p8136_p9, %p8130_p4 }
  0x39   : > { %8140 = shalt.err (!%p8137_p10)
}
  0x3a   : > { %s9695_s28 = smov 64   ;;  %s9697_s29 = smov 4  }
  0x3b   : > { %s9720_s5 = sld [smem:[#allocation31_spill]]  ;;  %s8152_s2 = scalar_lea.vmem %s502_s26, 32 }
  0x3c   : > { %p8153_p11 = scmp.ne.s32.totalorder %s502_s26, %s8152_s2  ;;  %p8160_p0 = scmp.lt.s32.totalorder %s502_s26, %s502_s26 }
  0x3d   : > { %p8161_p2 = scmp.lt.s32.totalorder %s8152_s2, %s8152_s2 }
  0x3e   : > { %p8155_p12 = pnand %p8153_p11, %p8575_p6 }
  0x3f   : > { %p8162_p4 = por %p8161_p2, %p8160_p0 }
  0x40   : > { %p8156_p13 = pneg %p8155_p12 }
  0x41   : > { %7486 = dma.hbm_to_vmem [thread:$0]  (!%p8569_p5), %s9720_s5, 2048, %s8565_s23, [#allocation10], %s9695_s28, %s9695_s28, %s9697_s29  }
  0x42   : > { %p8163_p7 = pnand %p8162_p4, %p8156_p13 }
  0x44   : > { %8166 = shalt.err (!%p8163_p7)
}
  0x45   : > { %s9701_s25 = smov 16   ;;  %s9699_s18 = smov 1  }
  0x46   : > { %s9721_s8 = sld [smem:[#allocation33_spill]]  ;;  %s8417_s12 = smov [#allocation15]  }
  0x47   : > { %s530_s28 = sshll.u32 %s8417_s12, 4  ;;  %s531_s28 = int_to_ptr.vmem [resolvable:$true] %s530_s28 }
  0x48   : > { %s8178_s29 = scalar_lea.vmem %s531_s28, 8192  ;;  %p8186_p11 = scmp.lt.s32.totalorder %s531_s28, %s531_s28 }
  0x49   : > { %p8179_p8 = scmp.ne.s32.totalorder %s531_s28, %s8178_s29  ;;  %p8187_p12 = scmp.lt.s32.totalorder %s8178_s29, %s8178_s29 }
  0x4b   : > { %p8181_p9 = pnand %p8179_p8, %p8575_p6  ;;  %p8188_p13 = por %p8187_p12, %p8186_p11 }
  0x4c   : > { %7492 = dma.hbm_to_vmem [thread:$0]  (!%p8569_p5), %s9721_s8, 32, %s502_s26, [#allocation13], %s9701_s25, %s9701_s25, %s9699_s18  }
  0x4d   : > { %p8182_p10 = pneg %p8181_p9 }
  0x4f   : > { %p8189_p0 = pnand %p8188_p13, %p8182_p10 }
  0x51   : > { %8192 = shalt.err (!%p8189_p0)
}
  0x52   : > { %s8418_s2 = smov 256   ;;  %s8419_s26 = smov [#allocation8]  }
  0x53   : > { %7498 = dma.hbm_to_vmem [thread:$0]  (!%p8569_p5), %s9685_s11, 8192, %s531_s28, [#allocation16], %s8418_s2, %s8418_s2, %s9701_s25  }
  0x54   : > { %s456_s20 = sshll.u32 %s8419_s26, 4  ;;  %s457_s20 = int_to_ptr.vmem [resolvable:$true] %s456_s20 }
  0x55   : > { %s8204_s12 = scalar_lea.vmem %s457_s20, 6144  ;;  %p8212_p8 = scmp.lt.s32.totalorder %s457_s20, %s457_s20 }
  0x56   : > { %p8205_p2 = scmp.ne.s32.totalorder %s457_s20, %s8204_s12  ;;  %p8213_p9 = scmp.lt.s32.totalorder %s8204_s12, %s8204_s12 }
  0x58   : > { %p8207_p4 = pnand %p8205_p2, %p8575_p6  ;;  %p8214_p10 = por %p8213_p9, %p8212_p8 }
  0x5a   : > { %p8208_p7 = pneg %p8207_p4 }
  0x5c   : > { %p8215_p11 = pnand %p8214_p10, %p8208_p7 }
  0x5e   : > { %8218 = shalt.err (!%p8215_p11)
}
  0x5f   : > { %s8420_s29 = smov 192   ;;  %s8421_s18 = smov 12  }
  0x60   : > { %s9722_s3 = sld [smem:[#allocation30_spill]]  ;;  %s8422_s2 = smov [#allocation11]  }
  0x61   : > { %s488_s23 = sshll.u32 %s8422_s2, 4  ;;  %s8423_s26 = smov [#allocation14]   ;;  %s489_s23 = int_to_ptr.vmem [resolvable:$true] %s488_s23 }
  0x62   : > { %s514_s25 = sshll.u32 %s8423_s26, 4  ;;  %s8230_s8 = scalar_lea.vmem %s489_s23, 32  ;;  %s515_s25 = int_to_ptr.vmem [resolvable:$true] %s514_s25 }
  0x63   : > { %p8231_p12 = scmp.ne.s32.totalorder %s489_s23, %s8230_s8  ;;  %p8238_p2 = scmp.lt.s32.totalorder %s489_s23, %s489_s23 }
  0x64   : > { %p8239_p4 = scmp.lt.s32.totalorder %s8230_s8, %s8230_s8 }
  0x65   : > { %p8233_p13 = pnand %p8231_p12, %p8575_p6 }
  0x66   : > { %7483 = dma.hbm_to_vmem [thread:$0]  (!%p8569_p5), %s9722_s3, 6144, %s457_s20, [#allocation7], %s8420_s29, %s8420_s29, %s8421_s18  }
  0x67   : > { %p8234_p0 = pneg %p8233_p13  ;;  %p8240_p7 = por %p8239_p4, %p8238_p2 }
  0x69   : > { %p8241_p8 = pnand %p8240_p7, %p8234_p0 }
  0x6b   : > { %8244 = shalt.err (!%p8241_p8)
}
  0x6c   : > { %s9723_s12 = smov 1   ;;  %s9724_s18 = smov 16  }
  0x6d   : > { %s9725_s7 = sld [smem:[#allocation32_spill]]  ;;  %s8256_s5 = scalar_lea.vmem %s515_s25, 32 }
  0x6e   : > { %p8257_p9 = scmp.ne.s32.totalorder %s515_s25, %s8256_s5  ;;  %p8264_p12 = scmp.lt.s32.totalorder %s515_s25, %s515_s25 }
  0x6f   : > { %p8265_p13 = scmp.lt.s32.totalorder %s8256_s5, %s8256_s5 }
  0x70   : > { %p8259_p10 = pnand %p8257_p9, %p8575_p6 }
  0x71   : > { %p8266_p2 = por %p8265_p13, %p8264_p12 }
  0x72   : > { %p8260_p11 = pneg %p8259_p10 }
  0x73   : > { %7489 = dma.hbm_to_vmem [thread:$0]  (!%p8569_p5), %s9725_s7, 32, %s489_s23, [#allocation10], %s9724_s18, %s9724_s18, %s9723_s12  }
  0x74   : > { %p8267_p0 = pnand %p8266_p2, %p8260_p11 }
  0x76   : > { %8270 = shalt.err (!%p8267_p0)
}
  0x77   : > { %7495 = dma.hbm_to_vmem [thread:$0]  (!%p8569_p5), %s9683_s9, 32, %s515_s25, [#allocation13], %s9724_s18, %s9724_s18, %s9723_s12  }
  0x78   : > { %s8424_s2 = smov [#allocation17]   ;;  %s8425_s26 = smov [#allocation18]  }
  0x79   : > { %s546_s23 = sshll.u32 %s8424_s2, 4  ;;  %s568_s20 = sshll.u32 %s8425_s26, 4  ;;  %s547_s23 = int_to_ptr.vmem [resolvable:$true] %s546_s23  ;;  %s569_s20 = int_to_ptr.vmem [resolvable:$true] %s568_s20 }
  0x7a   : > { %s8282_s29 = scalar_lea.vmem %s547_s23, 8192  ;;  %p8290_p9 = scmp.lt.s32.totalorder %s547_s23, %s547_s23 }
  0x7b   : > { %p8283_p4 = scmp.ne.s32.totalorder %s547_s23, %s8282_s29  ;;  %p8291_p10 = scmp.lt.s32.totalorder %s8282_s29, %s8282_s29 }
  0x7d   : > { %p8285_p7 = pnand %p8283_p4, %p8575_p6  ;;  %p8292_p11 = por %p8291_p10, %p8290_p9 }
  0x7f   : > { %p8286_p8 = pneg %p8285_p7 }
  0x81   : > { %p8293_p12 = pnand %p8292_p11, %p8286_p8 }
  0x83   : > { %8296 = shalt.err (!%p8293_p12)
}
  0x84   : > { %s9726_s5 = smov 4   ;;  %s9727_s25 = smov 64  }
  0x85   : > { %7501 = dma.hbm_to_vmem [thread:$0]  (!%p8569_p5), %s9687_s13, 8192, %s547_s23, [#allocation16], %s9727_s25, %s9727_s25, %s9726_s5  }
  0x86   : > { %s8308_s8 = scalar_lea.vmem %s569_s20, 1024  ;;  %p8316_p4 = scmp.lt.s32.totalorder %s569_s20, %s569_s20 }
  0x87   : > { %p8309_p13 = scmp.ne.s32.totalorder %s569_s20, %s8308_s8  ;;  %p8317_p7 = scmp.lt.s32.totalorder %s8308_s8, %s8308_s8 }
  0x89   : > { %p8311_p2 = pnand %p8309_p13, %p8575_p6  ;;  %p8318_p9 = por %p8317_p7, %p8316_p4 }
  0x8b   : > { %p8312_p0 = pneg %p8311_p2 }
  0x8d   : > { %p8319_p8 = pnand %p8318_p9, %p8312_p0 }
  0x8f   : > { %8322 = shalt.err (!%p8319_p8)
}
  0x90   : > { %7504 = dma.hbm_to_vmem [thread:$0]  (!%p8569_p5), %s9691_s17, 1024, %s569_s20, [#allocation19], %s9727_s25, %s9727_s25, %s9726_s5  }
  0x91   : > { %s8667_s24 = sadd.s32 1, %s8407_s1   ;;  %s47_s27 = sadd.s32 1, %s8403_s19 }
  0x92   : > { %s44_s23 = ssub.s32 %s8407_s1, %s8667_s24  ;;  %p54_p6 = scmp.ne.s32.totalorder %s8403_s19, %s8399_s0 }
  0x93   : > { %p45_p10 = scmp.eq.s32.totalorder %s44_s23, 0  ;;  %p55_p11 = scmp.eq.s32.totalorder %s8407_s1, 0 }
  0x94   : > { %p60_p12 = scmp.ne.s32.totalorder %s8399_s0, %s8395_s30  ;;  %p7518_p13 = scmp.lt.s32.totalorder %s8407_s1, 2 }
  0x95   : > { %s8679_s26 = scalar_select %p45_p10, %s8403_s19, %s47_s27  }
  0x96   : > { %p56_p2 = por %p55_p11, %p54_p6  ;;  %p8683_p0 = por %p9703_p1, %p60_p12 }
  0x97   : > { %s582_s12 = sand.u32 1, %s8403_s19   ;;  %s7437_s20 = smul.u32 384, %s8407_s1 }
  0x98   : > { %s9728_s29 = scalar_select %p8683_p0, 1, 0 }
  0x99   : > { %s7436_s5 = smul.u32 24, %s582_s12  ;;  %s9729_s8 = sld [smem:[#allocation28_spill]] }
  0x9a   : > { %p8694_p5 = pnand %p7518_p13, %p56_p2  ;;  %s8700_s23 = scalar_lea.sflag [#allocation5], %s582_s12 }
  0x9b   : > { %s586_s2 = scalar_lea.vmem [#allocation4], %s7436_s5 }
  0x9c   : > { %s593_s27 = sshll.u32 %s586_s2, 4  ;;  %p8325_p7 = pneg %p8694_p5  ;;  %s8698_s27 = int_to_ptr.vmem [resolvable:$true] %s593_s27 }
  0x9f   : > { %s8692_s28 = scalar_lea.hbm %s9729_s8, %s7437_s20  ;;  %s8328_s18 = scalar_lea.hbm %s9729_s8, 768 }
  0xa0   : > { %s8323_s1 = scalar_lea.hbm %s8692_s28, 384  ;;  %p8329_p6 = scmp.lt.s32.totalorder %s8692_s28, %s9729_s8 }
  0xa1   : > { %p8324_p4 = scmp.ne.s32.totalorder %s8692_s28, %s8323_s1  ;;  %p8330_p10 = scmp.lt.s32.totalorder %s8328_s18, %s8323_s1 }
  0xa3   : > { %p8326_p9 = pnand %p8325_p7, %p8324_p4  ;;  %p8331_p11 = por %p8330_p10, %p8329_p6 }
  0xa5   : > { %p8327_p8 = pneg %p8326_p9 }
  0xa7   : > { %p8332_p12 = pnand %p8331_p11, %p8327_p8 }
  0xa9   : > { %8335 = shalt.err (!%p8332_p12)
}
  0xaa   : > { %s8336_s12 = scalar_lea.vmem %s8698_s27, 384  ;;  %s8426_s5 = smov [#allocation4]  }
  0xab   : > { %p8337_p13 = scmp.ne.s32.totalorder %s8698_s27, %s8336_s12  ;;  %s8341_s2 = sshll.u32 %s8426_s5, 4  ;;  %s8342_s2 = int_to_ptr.vmem [resolvable:$false] %s8341_s2 }
  0xac   : > { %s8343_s20 = scalar_lea.vmem %s8342_s2, 768  ;;  %p8344_p9 = scmp.lt.s32.totalorder %s8698_s27, %s8342_s2 }
  0xad   : > { %p8339_p2 = pnand %p8337_p13, %p8325_p7  ;;  %p8345_p1 = scmp.lt.s32.totalorder %s8343_s20, %s8336_s12 }
  0xaf   : > { %p8340_p4 = pneg %p8339_p2  ;;  %p8346_p0 = por %p8345_p1, %p8344_p9 }
  0xb1   : > { %p8347_p3 = pnand %p8346_p0, %p8340_p4 }
  0xb3   : > { %8350 = shalt.err (!%p8347_p3)
}
  0xb4   : > { %s8427_s3 = smov 128   ;;  %s8428_s7 = smov 8  }
  0xb5   : > { %7508 = dma.hbm_to_vmem [thread:$0]  (!%p8694_p5), %s8692_s28, 384, %s8698_s27, %s8700_s23, %s8427_s3, %s8427_s3, %s8428_s7  }
  0xb6   : > { %p9731_p7 = scmp.ne.s32.totalorder %s9716_s22, 0 }
  0xb7   : > { %s607_s1 = sand.u32 (!%p9731_p7), 1, %s8399_s0   ;;  %p9732_p1 = scmp.ne.s32.totalorder (!%p9731_p7), %s9728_s29, 0 }
  0xb8   : > { %605 = sbr.rel (%p9731_p7) target bundleno = 8600 (0x2198), region = 88  ;;  %s608_s18 = scalar_lea.sflag (!%p9731_p7), [#allocation5], %s607_s1 }
  0xb9   : > { %s7438_s25 = smul.u32 (!%p9731_p7), 24, %s607_s1 }
  0xbb   : > { %s611_s12 = scalar_lea.vmem (!%p9731_p7), [#allocation4], %s7438_s25 }
  0xbd   : > { %8370 = dma.done.wait (%p9732_p1), %s608_s18, 384  }
  0xbe   : > { %8372 = vsyncadd (%p9732_p1), %s608_s18, 4294966912  ;;  %p9733_p3 = scmp.eq.s32.totalorder %s8554_s21, 0 }
  0xc0   : > { %8374 = dma.done.wait (%p9733_p3), [#allocation7], 6272   ;;  %p9734_p0 = pmov %p9733_p3 }
  0xc2   : > { %8376 = vsyncadd (%p9734_p0), [#allocation7], 4294961024  ;;  %p9735_p5 = pmov %p9734_p0 }
  0xc3   : > { %p9736_p8 = pmov %p9734_p0 }
  0xc4   : > { %8378 = dma.done.wait (%p9735_p5), [#allocation10], 2080  }
  0xc5   : > { %8380 = vsyncadd (%p9736_p8), [#allocation10], 4294965216  ;;  %p9737_p6 = pmov %p9734_p0 }
  0xc6   : > { %p9738_p10 = pmov %p9734_p0 }
  0xc7   : > { %8382 = dma.done.wait (%p9737_p6), [#allocation13], 64  }
  0xc8   : > { %8384 = vsyncadd (%p9738_p10), [#allocation13], 4294967232  ;;  %p9739_p11 = pmov %p9734_p0 }
  0xc9   : > { %p9740_p12 = pmov %p9734_p0 }
  0xca   : > { %8386 = dma.done.wait (%p9739_p11), [#allocation16], 16384  }
  0xcb   : > { %8388 = vsyncadd (%p9740_p12), [#allocation16], 4294950912  ;;  %p9741_p13 = pmov %p9734_p0 }
  0xcc   : > { %p9742_p2 = pmov %p9734_p0 }
  0xcd   : > { %8390 = dma.done.wait (%p9741_p13), [#allocation19], 1024  }
  0xce   : > { %8392 = vsyncadd (%p9742_p2), [#allocation19], 4294966272  ;;  %v702_v0 = vld [vmem:[%s611_s12] sm:$0xff]  ;;  %v705_v1 = vld [vmem:[#allocation6] sm:$0xff]  ;;  %v8429_v36 = vmov 0   ;;  %vm8431_vm0 = vmmov 0  }
  0xcf   : > { %v704_v2 = vld [vmem:[%s611_s12 + $0x10] sm:$0xff]  ;;  %v8748_v3 = vadd.f32 %v705_v1, %v702_v0  ;;  %v703_v5 = vld [vmem:[%s611_s12 + $0x8] sm:$0xff]  ;;  %979 = vmatprep.mubr.bf16.mxu0 %v8429_v36  ;;  %v6497_v55 = vld [vmem:[#allocation11] ss:$0 sm:$0xff]  ;;  %vm1052_vm1 = vcmask 261120   ;;  %vm1242_vm2 = vcmask 1043456  }
  0xd0   : > { %v8750_v4 = vadd.f32 %v705_v1, %v704_v2  ;;  %v8754_v6 = vadd.f32 %v705_v1, %v703_v5  ;;  %v7615_v7 = vld [vmem:[#allocation8 + $0xac] ss:$12 sps:$4 sm:$0xff]   ;;  %v7617_v8 = vld [vmem:[#allocation8 + $0xa8] ss:$12 sps:$4 sm:$0xff]   ;;  %v7618_v9 = vld [vmem:[#allocation8 + $0xb0] ss:$12 sps:$4 sm:$0xff]  }
  0xd1   : > { %716 = vadd.xlane.f32.xlu0 %v8748_v3  ;;  %947 = vmatprep.subr.bf16.mxu0 %v7615_v7  ;;  %v7619_v22 = vld [vmem:[#allocation8 + $0x94] ss:$12 sps:$4 sm:$0xff]   ;;  %v7621_v23 = vld [vmem:[#allocation8 + $0x90] ss:$12 sps:$4 sm:$0xff]   ;;  %v7622_v24 = vld [vmem:[#allocation8 + $0x98] ss:$12 sps:$4 sm:$0xff]  }
  0xd2   : > { %720 = vadd.xlane.f32.xlu1 %v8750_v4  ;;  %7048 = vmatprep.subr.bf16.mxu1 %v7618_v9  ;;  %v7623_v25 = vld [vmem:[#allocation8 + $0x7c] ss:$12 sps:$4 sm:$0xff]   ;;  %v7625_v26 = vld [vmem:[#allocation8 + $0x78] ss:$12 sps:$4 sm:$0xff]   ;;  %v7626_v27 = vld [vmem:[#allocation8 + $0x80] ss:$12 sps:$4 sm:$0xff]  }
  0xd3   : > { %948 = vmatpush1.bf16.msra.mxu0 %v7617_v8  ;;  %7049 = vmatpush3.bf16.msra.mxu1 %v7618_v9  ;;  %v7627_v28 = vld [vmem:[#allocation8 + $0x64] ss:$12 sps:$4 sm:$0xff]   ;;  %v7629_v29 = vld [vmem:[#allocation8 + $0x60] ss:$12 sps:$4 sm:$0xff]   ;;  %v7630_v30 = vld [vmem:[#allocation8 + $0x68] ss:$12 sps:$4 sm:$0xff]   ;;  %v709_v9 = vlaneseq }
  0xd4   : > { %949 = vmatprep.subr.bf16.mxu0 %v7619_v22  ;;  %7050 = vmatprep.subr.bf16.mxu1 %v7622_v24  ;;  %v7631_v31 = vld [vmem:[#allocation8 + $0x4c] ss:$12 sps:$4 sm:$0xff]   ;;  %v7634_v32 = vld [vmem:[#allocation8 + $0x50] ss:$12 sps:$4 sm:$0xff]   ;;  %v7633_v33 = vld [vmem:[#allocation8 + $0x48] ss:$12 sps:$4 sm:$0xff]  }
  0xd5   : > { %718 = vadd.xlane.f32.xlu0 %v8754_v6  ;;  %v7635_v34 = vld [vmem:[#allocation8 + $0x34] ss:$12 sps:$4 sm:$0xff]   ;;  %v7638_v35 = vld [vmem:[#allocation8 + $0x38] ss:$12 sps:$4 sm:$0xff]   ;;  %v7637_v37 = vld [vmem:[#allocation8 + $0x30] ss:$12 sps:$4 sm:$0xff]  }
  0xd6   : > { %v7639_v38 = vld [vmem:[#allocation8 + $0x1c] ss:$12 sps:$4 sm:$0xff]   ;;  %v7642_v39 = vld [vmem:[#allocation8 + $0x20] ss:$12 sps:$4 sm:$0xff]   ;;  %v7641_v40 = vld [vmem:[#allocation8 + $0x18] ss:$12 sps:$4 sm:$0xff]  }
  0xd7   : > { %950 = vmatpush1.bf16.msra.mxu0 %v7621_v23  ;;  %7051 = vmatpush3.bf16.msra.mxu1 %v7622_v24  ;;  %v7643_v41 = vld [vmem:[#allocation8 + $0x4] ss:$12 sps:$4 sm:$0xff]   ;;  %v7646_v42 = vld [vmem:[#allocation8 + $0x8] ss:$12 sps:$4 sm:$0xff]   ;;  %v7645_v43 = vld [vmem:[#allocation8] ss:$12 sps:$4 sm:$0xff]  }
  0xd8   : > { %951 = vmatprep.subr.bf16.mxu0 %v7623_v25  ;;  %7052 = vmatprep.subr.bf16.mxu1 %v7626_v27  ;;  %v6498_v61 = vld [vmem:[#allocation12] ss:$0 sm:$0xff]  ;;  %v8430_v8 = vmov 0.0   ;;  %vm1199_vm4 = vcmask 64512   ;;  %s8432_s28 = smov 96   ;;  %s8433_s30 = smov 64  }
  0xd9   : > { %s8434_s27 = smov 32   ;;  %vm2434_vm5 = vcmask 523264   ;;  %vm2438_vm6 = vcmask 785408   ;;  %s9745_s1 = sld [smem:[#allocation34_spill]]  ;;  %vm6139_vm8 = vcmask 1041409   ;;  %vm6141_vm9 = vcmask 1042434  }
  0xda   : > { %s6108_s20 = sld [smem:[#allocation3 + %s8554_s21]]  ;;  %vm6144_vm10 = vcmask 1042432   ;;  %p697_p4 = scmp.lt.s32.totalorder %s8554_s21, 1 }
  0xdb   : > { %952 = vmatpush1.bf16.msra.mxu0 %v7625_v26  ;;  %7053 = vmatpush3.bf16.msra.mxu1 %v7626_v27 }
  0xdc   : > { %953 = vmatprep.subr.bf16.mxu0 %v7627_v28  ;;  %7054 = vmatprep.subr.bf16.mxu1 %v7630_v30  ;;  %s9753_s21 = smov (!%p697_p4, %s8554_s21), 1 }
  0xdd   : > { %s6496_s29 = sshll.u32 %s9753_s21, 2 }
  0xdf   : > { %954 = vmatpush1.bf16.msra.mxu0 %v7629_v29  ;;  %7055 = vmatpush3.bf16.msra.mxu1 %v7630_v30  ;;  %s9746_s25 = smov %s9745_s1 }
  0xe0   : > { %955 = vmatprep.subr.bf16.mxu0 %v7631_v31  ;;  %7056 = vmatprep.subr.bf16.mxu1 %v7634_v32 }
  0xe3   : > { %956 = vmatpush1.bf16.msra.mxu0 %v7633_v33  ;;  %7057 = vmatpush3.bf16.msra.mxu1 %v7634_v32 }
  0xe4   : > { %957 = vmatprep.subr.bf16.mxu0 %v7635_v34  ;;  %7058 = vmatprep.subr.bf16.mxu1 %v7638_v35 }
  0xe7   : > { %958 = vmatpush1.bf16.msra.mxu0 %v7637_v37  ;;  %7059 = vmatpush3.bf16.msra.mxu1 %v7638_v35 }
  0xe8   : > { %959 = vmatprep.subr.bf16.mxu0 %v7639_v38  ;;  %7060 = vmatprep.subr.bf16.mxu1 %v7642_v39 }
  0xeb   : > { %960 = vmatpush1.bf16.msra.mxu0 %v7641_v40  ;;  %7061 = vmatpush3.bf16.msra.mxu1 %v7642_v39 }
  0xec   : > { %961 = vmatprep.subr.bf16.mxu0 %v7643_v41  ;;  %7062 = vmatprep.subr.bf16.mxu1 %v7646_v42 }
  0xef   : > { %962 = vmatpush1.bf16.msra.mxu0 %v7645_v43  ;;  %7063 = vmatpush3.bf16.msra.mxu1 %v7646_v42 }
  0xf0   : > { %7068 = vmatprep.subr.bf16.mxu1 %v8430_v8  ;;  %7074 = vmatprep.subr.bf16.mxu0 %v8430_v8 }
 0x15a   : > { %v717_v10 = vpop.xlane.xlu0 %716 }
 0x15b   : > { %v721_v11 = vpop.xlane.xlu1 %720  ;;  %v723_v12 = vmul.f32 0.0078125, %v717_v10  ;;  %v8783_v10 = vshrl.u32 %v709_v9, 7 }
 0x15c   : > { %v725_v13 = vmul.f32 0.0078125, %v721_v11 }
 0x15d   : > { %v8758_v14 = vsub.f32 %v8748_v3, %v723_v12  ;;  %v8786_v11 = vsub.s32 2, %v8783_v10  ;;  %v802_v12 = vld [vmem:[%s9678_s4] sm:$0x7] }
 0x15e   : > { %v8761_v15 = vsub.f32 %v8750_v4, %v725_v13  ;;  %v719_v16 = vpop.xlane.xlu0 %718  ;;  %v8792_v13 = vsub.s32 1, %v8783_v10 }
 0x15f   : > { %v724_v17 = vmul.f32 0.0078125, %v719_v16  ;;  %v729_v18 = vmul.f32 %v8758_v14, %v8758_v14 }
 0x160   : > { %v731_v19 = vmul.f32 %v8761_v15, %v8761_v15 }
 0x161   : > { %732 = vadd.xlane.f32.xlu1 %v729_v18  ;;  %v8768_v20 = vsub.f32 %v8754_v6, %v724_v17  ;;  %v8797_v17 = vsub.s32 0, %v8783_v10 }
 0x163   : > { %v730_v21 = vmul.f32 %v8768_v20, %v8768_v20  ;;  %v807_v24 = vrot.slane %v802_v12, %v8797_v17 }
 0x165   : > { %736 = vadd.xlane.f32.xlu1 %v731_v19  ;;  %734 = vadd.xlane.f32.xlu0 %v730_v21 }
 0x1ea   : > { %v733_v44 = vpop.xlane.xlu1 %732 }
 0x1eb   : > { %v738_v45 = vmul.f32 0.0078125, %v733_v44 }
 0x1ed   : > { %v741_v46 = vadd.f32 1e-05, %v738_v45 }
 0x1ee   : > { %v737_v47 = vpop.xlane.xlu1 %736  ;;  %v735_v48 = vpop.xlane.xlu0 %734 }
 0x1ef   : > { %7863 = vrsqrt.f32 %v741_v46  ;;  %v740_v49 = vmul.f32 0.0078125, %v737_v47  ;;  %v739_v50 = vmul.f32 0.0078125, %v735_v48 }
 0x1f1   : > { %v743_v51 = vadd.f32 1e-05, %v740_v49  ;;  %v742_v52 = vadd.f32 1e-05, %v739_v50 }
 0x1f3   : > { %7865 = vrsqrt.f32 %v743_v51 }
 0x1f4   : > { %7867 = vrsqrt.f32 %v742_v52 }
 0x1fc   : > { %v7864_v53 = vpop.eup %7863 }
 0x1fd   : > { %v747_v54 = vmul.f32 %v7864_v53, %v8758_v14  ;;  %v815_v14 = vrot.slane %v802_v12, %v8786_v11  ;;  %v712_v53 = vand.u32 127, %v709_v9 }
 0x1ff   : > { %v756_v60 = vmul.f32 %v6497_v55, %v747_v54  ;;  %vm8846_vm3 = vcmp.le.s32.totalorder %v712_v53, %v8783_v10 }
 0x200   : > { %v7866_v56 = vpop.eup %7865 }
 0x201   : > { %v7868_v57 = vpop.eup %7867  ;;  %v749_v58 = vmul.f32 %v7866_v56, %v8761_v15  ;;  %v765_v1 = vadd.f32 %v6498_v61, %v756_v60  ;;  %v811_v15 = vrot.slane %v802_v12, %v8792_v13 }
 0x202   : > { %v748_v59 = vmul.f32 %v7868_v57, %v8768_v20 }
 0x203   : > { %v758_v62 = vmul.f32 %v6497_v55, %v749_v58 }
 0x204   : > { %v757_v63 = vmul.f32 %v6497_v55, %v748_v59 }
 0x205   : > { %v767_v0 = vadd.f32 %v6498_v61, %v758_v62 }
 0x206   : > { %v766_v2 = vadd.f32 %v6498_v61, %v757_v63 }
 0x207   : > { %v801_v5 = vpack.c.bf16 %v767_v0, %v767_v0 }
 0x208   : > { %v800_v7 = vpack.c.bf16 %v766_v2, %v765_v1 }
 0x20a   : > { %980 = vmatmul.mubr.bf16.vlgmr.msra.gmra.mxu0 %v800_v7  ;;  %7064 = vmatprep.mubr.bf16.mxu1 %v800_v7 }
 0x20b   : > { %7065 = vmatmul.mubr.bf16.vlgmr.msra.gmra.mxu1 %v801_v5  ;;  %989 = vmatprep.mubr.bf16.mxu0 %v8429_v36 }
 0x20c   : > { %7070 = vmatprep.mubr.msk.bf16.mxu1 %vm8431_vm0, %v8430_v8 }
 0x212   : > { %990 = vmatmul.mubr.bf16.gmra.mxu0 %v801_v5 }
 0x213   : > { %7076 = vmatprep.mubr.msk.bf16.mxu0 %vm8431_vm0, %v8430_v8 }
 0x2ca   : > { %v981_v16 = vpop.f32.mrf.mxu0 }
 0x2cb   : > { %v7066_v18 = vpop.f32.mrf.mxu1  ;;  %v982_v31 = vadd.f32 %v981_v16, %v807_v24 }
 0x2cc   : > { %v8799_v19 = vadd.f32 %v7066_v18, %v815_v14  ;;  %v983_v20 = vpop.f32.mrf.mxu0 }
 0x2cd   : > { %v984_v21 = vadd.f32 %v983_v20, %v811_v15  ;;  %v1032_v22 = vpop.f32.mrf.mxu1  ;;  %v8811_v40 = vpack.c.bf16 %v982_v31, %v982_v31 }
 0x2ce   : > { %v985_v23 = vpop.f32.mrf.mxu0  ;;  %v1033_v34 = vadd.f32 %v1032_v22, %v815_v14 }
 0x2cf   : > { %v8802_v25 = vpack.c.bf16 %v984_v21, %v984_v21  ;;  %v7067_v26 = vpop.f32.mrf.mxu1  ;;  %v986_v41 = vadd.f32 %v985_v23, %v807_v24 }
 0x2d0   : > { %v987_v27 = vpop.f32.mrf.mxu0  ;;  %v8816_v44 = vpack.c.bf16 %v1033_v34, %v1033_v34 }
 0x2d1   : > { %v988_v28 = vadd.f32 %v987_v27, %v811_v15  ;;  %v1057_v29 = vsel %vm1052_vm1, %v8802_v25, 0  ;;  %v1035_v38 = vpop.f32.mrf.mxu1  ;;  %v8824_v47 = vpack.c.bf16 %v986_v41, %v986_v41 }
 0x2d2   : > { %v991_v30 = vpop.f32.mrf.mxu0  ;;  %7069 = vmatpush3.bf16.xpose.msra.mxu1 %v1057_v29  ;;  %v1036_v45 = vadd.f32 %v1035_v38, %v815_v14  ;;  %v1244_v50 = vsel %vm1242_vm2, %v8816_v44, 0 }
 0x2d3   : > { %v8806_v32 = vpack.c.bf16 %v988_v28, %v988_v28  ;;  %7080 = vmatprep.subr.bf16.mxu1 %v8430_v8  ;;  %v992_v48 = vadd.f32 %v991_v30, %v807_v24 }
 0x2d4   : > { %v993_v33 = vpop.f32.mrf.mxu0  ;;  %v8827_v49 = vpack.c.bf16 %v1036_v45, %v1036_v45  ;;  %v8876_v45 = vpack.c.bf16 %v8799_v19, %v8799_v19 }
 0x2d5   : > { %v994_v35 = vadd.f32 %v993_v33, %v811_v15  ;;  %v1103_v37 = vsel %vm1052_vm1, %v8806_v32, 0  ;;  %v8835_v51 = vpack.c.bf16 %v992_v48, %v992_v48 }
 0x2d6   : > { %v995_v39 = vpop.f32.mrf.mxu0  ;;  %7075 = vmatpush3.bf16.xpose.msra.mxu0 %v1103_v37  ;;  %v1290_v52 = vsel %vm1242_vm2, %v8827_v49, 0 }
 0x2d7   : > { %v8813_v42 = vpack.c.bf16 %v994_v35, %v994_v35  ;;  %7086 = vmatprep.subr.bf16.mxu0 %v8430_v8 }
 0x2d8   : > { %v996_v43 = vpop.f32.mrf.mxu0 }
 0x2d9   : > { %7071 = vmatmul.mubr.msk.bf16.vlgmr.msra.gmra.mxu1 %vm1052_vm1, %v8811_v40  ;;  %v1149_v46 = vsel %vm1052_vm1, %v8813_v42, 0 }
 0x2da   : > { %7081 = vmatpush3.bf16.xpose.msra.mxu1 %v1149_v46  ;;  %7082 = vmatprep.mubr.msk.bf16.mxu1 %vm8431_vm0, %v8430_v8 }
 0x2db   : > { %7092 = vmatprep.subr.bf16.mxu1 %v8430_v8 }
 0x2dd   : > { %7077 = vmatmul.mubr.msk.bf16.vlgmr.msra.gmra.mxu0 %vm1052_vm1, %v8824_v47 }
 0x2de   : > { %7087 = vmatpush3.bf16.msra.mxu0 %v1244_v50  ;;  %7088 = vmatprep.mubr.msk.bf16.mxu0 %vm8431_vm0, %v8430_v8 }
 0x2df   : > { %7098 = vmatprep.subr.bf16.mxu0 %v8430_v8 }
 0x2e1   : > { %7083 = vmatmul.mubr.msk.bf16.vlgmr.msra.gmra.mxu1 %vm1052_vm1, %v8835_v51 }
 0x2e2   : > { %7093 = vmatpush3.bf16.msra.mxu1 %v1290_v52  ;;  %7094 = vmatprep.mubr.msk.bf16.mxu1 %vm8431_vm0, %v8430_v8  ;;  %v1336_v52 = vsel %vm1242_vm2, %v8876_v45, 0 }
 0x2e3   : > { %7104 = vmatprep.subr.bf16.mxu1 %v8430_v8 }
 0x399   : > { %v1093_v55 = vpop.f32.mrf.mxu1 }
 0x39a   : > { %v1191_v56 = vmul.f32 0.17677669, %v1093_v55 }
 0x39b   : > { %v7072_v57 = vpop.f32.mrf.mxu1 }
 0x39c   : > { %v1196_v58 = vsel %vm8846_vm3, %v1191_v56, -1e+30 }
 0x39d   : > { %v1096_v59 = vpop.f32.mrf.mxu1  ;;  %v1139_v60 = vpop.f32.mrf.mxu0  ;;  %v1200_v61 = vsel %vm1199_vm4, %v1196_v58, -inf }
 0x39e   : > { %v1192_v62 = vmul.f32 0.17677669, %v1139_v60  ;;  %1201 = vmax.xlane.f32.xlu0 %v1200_v61 }
 0x39f   : > { %v7073_v63 = vpop.f32.mrf.mxu1  ;;  %v7078_v0 = vpop.f32.mrf.mxu0 }
 0x3a0   : > { %v1197_v1 = vsel %vm8846_vm3, %v1192_v62, -1e+30 }
 0x3a1   : > { %v1142_v2 = vpop.f32.mrf.mxu0  ;;  %v1185_v5 = vpop.f32.mrf.mxu1  ;;  %v1203_v7 = vsel %vm1199_vm4, %v1197_v1, -inf }
 0x3a2   : > { %v1193_v9 = vmul.f32 0.17677669, %v1185_v5  ;;  %1204 = vmax.xlane.f32.xlu1 %v1203_v7 }
 0x3a3   : > { %v7079_v12 = vpop.f32.mrf.mxu0  ;;  %v7084_v14 = vpop.f32.mrf.mxu1 }
 0x3a4   : > { %v1198_v15 = vsel %vm8846_vm3, %v1193_v9, -1e+30 }
 0x3a5   : > { %v1188_v16 = vpop.f32.mrf.mxu1  ;;  %v1206_v18 = vsel %vm1199_vm4, %v1198_v15, -inf }
 0x3a6   : > { %1207 = vmax.xlane.f32.xlu0 %v1206_v18 }
 0x3a7   : > { %v7085_v20 = vpop.f32.mrf.mxu1 }
 0x427   : > { %v1202_v21 = vpop.xlane.xlu0 %1201 }
 0x428   : > { %v1209_v22 = vsub.f32 %v1196_v58, %v1202_v21 }
 0x42a   : > { %v1212_v23 = vmul.f32 1.442695, %v1209_v22 }
 0x42b   : > { %v1205_v24 = vpop.xlane.xlu1 %1204 }
 0x42c   : > { %7869 = vpow2.f32 %v1212_v23  ;;  %v1210_v26 = vsub.f32 %v1197_v1, %v1205_v24 }
 0x42e   : > { %v1214_v27 = vmul.f32 1.442695, %v1210_v26 }
 0x42f   : > { %v1208_v33 = vpop.xlane.xlu0 %1207 }
 0x430   : > { %7871 = vpow2.f32 %v1214_v27  ;;  %v1211_v34 = vsub.f32 %v1198_v15, %v1208_v33 }
 0x432   : > { %v1216_v35 = vmul.f32 1.442695, %v1211_v34 }
 0x434   : > { %7873 = vpow2.f32 %v1216_v35 }
 0x439   : > { %v7870_v28 = vpop.eup %7869 }
 0x43a   : > { %v1218_v29 = vsel %vm1199_vm4, %v7870_v28, 0.0 }
 0x43b   : > { %1219 = vadd.xlane.f32.xlu1 %v1218_v29 }
 0x43d   : > { %v7872_v30 = vpop.eup %7871 }
 0x43e   : > { %v1221_v31 = vsel %vm1199_vm4, %v7872_v30, 0.0 }
 0x43f   : > { %1222 = vadd.xlane.f32.xlu0 %v1221_v31 }
 0x441   : > { %v7874_v37 = vpop.eup %7873 }
 0x442   : > { %v1224_v38 = vsel %vm1199_vm4, %v7874_v37, 0.0 }
 0x44c   : > { %1434 = vrot.lane.b32.xlu1 %v8806_v32, %s8432_s28 }
 0x450   : > { %1379 = vrot.lane.b32.xlu1 %v8811_v40, %s8432_s28 }
 0x455   : > { %1382 = vrot.lane.b32.xlu0 %v8802_v25, %s8432_s28 }
 0x459   : > { %1431 = vrot.lane.b32.xlu0 %v8824_v47, %s8432_s28 }
 0x474   : > { %1225 = vadd.xlane.f32.xlu1 %v1224_v38 }
 0x485   : > { %1486 = vrot.lane.b32.xlu1 %v8813_v42, %s8432_s28 }
 0x489   : > { %1483 = vrot.lane.b32.xlu1 %v8835_v51, %s8432_s28 }
 0x4c4   : > { %v1220_v39 = vpop.xlane.xlu1 %1219 }
 0x4c5   : > { %7875 = vrcp.f32 %v1220_v39 }
 0x4c8   : > { %v1223_v41 = vpop.xlane.xlu0 %1222  ;;  %v1435_v57 = vpop.permute.xlu1 %1434 }
 0x4c9   : > { %7877 = vrcp.f32 %v1223_v41  ;;  %v1440_v2 = vsel %vm1052_vm1, %v1435_v57, 0 }
 0x4cc   : > { %v1383_v55 = vpop.permute.xlu0 %1382  ;;  %v1380_v58 = vpop.permute.xlu1 %1379 }
 0x4cd   : > { %v1388_v19 = vsel %vm1052_vm1, %v1383_v55, 0 }
 0x4d0   : > { %v1432_v5 = vpop.permute.xlu0 %1431 }
 0x4d2   : > { %v7876_v43 = vpop.eup %7875 }
 0x4d3   : > { %v1230_v46 = vmul.f32 %v7876_v43, %v7870_v28 }
 0x4d5   : > { %v1233_v48 = vpack.c.bf16 %v1230_v46, %v1230_v46 }
 0x4d6   : > { %v7878_v50 = vpop.eup %7877 }
 0x4d7   : > { %7089 = vmatmul.mubr.msk.bf16.vlgmr.msra.gmra.mxu0 %vm1199_vm4, %v1233_v48  ;;  %v1231_v53 = vmul.f32 %v7878_v50, %v7872_v30 }
 0x4d8   : > { %7099 = vmatpush3.bf16.msra.mxu0 %v1336_v52  ;;  %7100 = vmatprep.mubr.msk.bf16.mxu0 %vm8431_vm0, %v8430_v8 }
 0x4d9   : > { %v1234_v56 = vpack.c.bf16 %v1231_v53, %v1231_v53  ;;  %7110 = vmatprep.subr.bf16.mxu0 %v8430_v8 }
 0x4db   : > { %7095 = vmatmul.mubr.msk.bf16.vlgmr.msra.gmra.mxu1 %vm1199_vm4, %v1234_v56 }
 0x4dc   : > { %7105 = vmatpush3.bf16.xpose.msra.mxu1 %v1388_v19  ;;  %7106 = vmatprep.mubr.msk.bf16.mxu1 %vm8431_vm0, %v8430_v8 }
 0x4dd   : > { %7116 = vmatprep.subr.bf16.mxu1 %v8430_v8 }
 0x4e3   : > { %7107 = vmatmul.mubr.msk.bf16.vlgmr.msra.gmra.mxu1 %vm1052_vm1, %v1380_v58 }
 0x4e4   : > { %7118 = vmatprep.mubr.msk.bf16.mxu1 %vm8431_vm0, %v8430_v8 }
 0x4fd   : > { %v1226_v59 = vpop.xlane.xlu1 %1225 }
 0x4fe   : > { %7879 = vrcp.f32 %v1226_v59 }
 0x501   : > { %v1487_v60 = vpop.permute.xlu1 %1486 }
 0x502   : > { %v1492_v61 = vsel %vm1052_vm1, %v1487_v60, 0 }
 0x503   : > { %7117 = vmatpush3.bf16.xpose.msra.mxu1 %v1492_v61 }
 0x504   : > { %7128 = vmatprep.subr.bf16.mxu1 %v8430_v8 }
 0x505   : > { %v1484_v62 = vpop.permute.xlu1 %1483 }
 0x50a   : > { %7119 = vmatmul.mubr.msk.bf16.vlgmr.msra.gmra.mxu1 %vm1052_vm1, %v1484_v62 }
 0x50b   : > { %v7880_v63 = vpop.eup %7879  ;;  %7130 = vmatprep.mubr.msk.bf16.mxu1 %vm8431_vm0, %v8430_v8 }
 0x50c   : > { %v1232_v0 = vmul.f32 %v7880_v63, %v7874_v37 }
 0x50e   : > { %v1235_v1 = vpack.c.bf16 %v1232_v0, %v1232_v0 }
 0x510   : > { %7101 = vmatmul.mubr.msk.bf16.vlgmr.msra.gmra.mxu0 %vm1199_vm4, %v1235_v1 }
 0x511   : > { %7111 = vmatpush3.bf16.xpose.msra.mxu0 %v1440_v2  ;;  %7112 = vmatprep.mubr.msk.bf16.mxu0 %vm8431_vm0, %v8430_v8 }
 0x512   : > { %7122 = vmatprep.subr.bf16.mxu0 %v8430_v8 }
 0x518   : > { %7113 = vmatmul.mubr.msk.bf16.vlgmr.msra.gmra.mxu0 %vm1052_vm1, %v1432_v5 }
 0x519   : > { %7124 = vmatprep.mubr.msk.bf16.mxu0 %vm8431_vm0, %v8430_v8 }
 0x597   : > { %v8905_v7 = vpop.f32.mrf.mxu0 }
 0x599   : > { %v7090_v9 = vpop.f32.mrf.mxu0 }
 0x59b   : > { %v1283_v12 = vpop.f32.mrf.mxu0  ;;  %v8907_v14 = vpop.f32.mrf.mxu1 }
 0x59d   : > { %v7091_v15 = vpop.f32.mrf.mxu0  ;;  %v7096_v16 = vpop.f32.mrf.mxu1 }
 0x59f   : > { %v1329_v18 = vpop.f32.mrf.mxu1 }
 0x5a1   : > { %v7097_v20 = vpop.f32.mrf.mxu1 }
 0x5a3   : > { %v1424_v21 = vpop.f32.mrf.mxu1 }
 0x5a4   : > { %v1534_v22 = vmul.f32 0.17677669, %v1424_v21 }
 0x5a5   : > { %v7108_v23 = vpop.f32.mrf.mxu1 }
 0x5a6   : > { %v1537_v24 = vsel %vm8846_vm3, %v1534_v22, -1e+30 }
 0x5a7   : > { %v1427_v26 = vpop.f32.mrf.mxu1  ;;  %v1540_v27 = vsel %vm1199_vm4, %v1537_v24, -inf }
 0x5a8   : > { %1541 = vmax.xlane.f32.xlu0 %v1540_v27 }
 0x5a9   : > { %v7109_v28 = vpop.f32.mrf.mxu1 }
 0x5ca   : > { %v1528_v29 = vpop.f32.mrf.mxu1 }
 0x5cb   : > { %v1536_v30 = vmul.f32 0.17677669, %v1528_v29 }
 0x5cc   : > { %v7120_v31 = vpop.f32.mrf.mxu1 }
 0x5cd   : > { %v1539_v33 = vsel %vm8846_vm3, %v1536_v30, -1e+30 }
 0x5ce   : > { %v1531_v34 = vpop.f32.mrf.mxu1  ;;  %v1546_v35 = vsel %vm1199_vm4, %v1539_v33, -inf }
 0x5cf   : > { %1547 = vmax.xlane.f32.xlu0 %v1546_v35 }
 0x5d0   : > { %v8915_v37 = vpop.f32.mrf.mxu0  ;;  %v7121_v38 = vpop.f32.mrf.mxu1 }
 0x5d2   : > { %v7102_v39 = vpop.f32.mrf.mxu0 }
 0x5d4   : > { %v1375_v41 = vpop.f32.mrf.mxu0 }
 0x5d6   : > { %v7103_v43 = vpop.f32.mrf.mxu0 }
 0x5d8   : > { %v1476_v46 = vpop.f32.mrf.mxu0 }
 0x5d9   : > { %v1535_v48 = vmul.f32 0.17677669, %v1476_v46 }
 0x5da   : > { %v7114_v50 = vpop.f32.mrf.mxu0 }
 0x5db   : > { %v1538_v52 = vsel %vm8846_vm3, %v1535_v48, -1e+30 }
 0x5dc   : > { %v1479_v53 = vpop.f32.mrf.mxu0  ;;  %v1543_v55 = vsel %vm1199_vm4, %v1538_v52, -inf }
 0x5dd   : > { %1544 = vmax.xlane.f32.xlu1 %v1543_v55 }
 0x5de   : > { %v7115_v56 = vpop.f32.mrf.mxu0 }
 0x5ee   : > { %1626 = vrot.lane.b32.xlu1 %v8827_v49, %s8432_s28 }
 0x5f2   : > { %1675 = vrot.lane.b32.xlu1 %v8876_v45, %s8432_s28 }
 0x5f6   : > { %1725 = vrot.lane.b32.xlu1 %v8802_v25, %s8433_s30 }
 0x631   : > { %v1542_v19 = vpop.xlane.xlu0 %1541 }
 0x632   : > { %v1549_v57 = vsub.f32 %v1537_v24, %v1542_v19 }
 0x634   : > { %v1552_v58 = vmul.f32 1.442695, %v1549_v57 }
 0x636   : > { %7881 = vpow2.f32 %v1552_v58 }
 0x643   : > { %v7882_v59 = vpop.eup %7881 }
 0x644   : > { %v1558_v60 = vsel %vm1199_vm4, %v7882_v59, 0.0 }
 0x645   : > { %1559 = vadd.xlane.f32.xlu0 %v1558_v60 }
 0x658   : > { %v1548_v61 = vpop.xlane.xlu0 %1547 }
 0x659   : > { %v1551_v62 = vsub.f32 %v1539_v33, %v1548_v61 }
 0x65b   : > { %v1556_v63 = vmul.f32 1.442695, %v1551_v62  ;;  %1577 = vrot.lane.b32.xlu0 %v8816_v44, %s8432_s28 }
 0x65d   : > { %7883 = vpow2.f32 %v1556_v63 }
 0x666   : > { %v1545_v0 = vpop.xlane.xlu1 %1544 }
 0x667   : > { %v1550_v1 = vsub.f32 %v1538_v52, %v1545_v0 }
 0x669   : > { %v1554_v2 = vmul.f32 1.442695, %v1550_v1 }
 0x66a   : > { %v7884_v5 = vpop.eup %7883  ;;  %v1627_v9 = vpop.permute.xlu1 %1626 }
 0x66b   : > { %7885 = vpow2.f32 %v1554_v2  ;;  %v1632_v12 = vsel %vm1242_vm2, %v1627_v9, 0  ;;  %v1564_v15 = vsel %vm1199_vm4, %v7884_v5, 0.0 }
 0x66c   : > { %7129 = vmatpush3.bf16.msra.mxu1 %v1632_v12  ;;  %1565 = vadd.xlane.f32.xlu1 %v1564_v15 }
 0x66d   : > { %7140 = vmatprep.subr.bf16.mxu1 %v8430_v8 }
 0x66e   : > { %v1676_v26 = vpop.permute.xlu1 %1675 }
 0x66f   : > { %v1681_v28 = vsel %vm1242_vm2, %v1676_v26, 0 }
 0x672   : > { %v1726_v29 = vpop.permute.xlu1 %1725 }
 0x673   : > { %v1731_v52 = vsel %vm1052_vm1, %v1726_v29, 0 }
 0x678   : > { %v7886_v16 = vpop.eup %7885 }
 0x679   : > { %v1561_v18 = vsel %vm1199_vm4, %v7886_v16, 0.0 }
 0x67a   : > { %1562 = vadd.xlane.f32.xlu0 %v1561_v18 }
 0x67d   : > { %1723 = vrot.lane.b32.xlu1 %v8811_v40, %s8433_s30 }
 0x681   : > { %1773 = vrot.lane.b32.xlu1 %v8824_v47, %s8433_s30 }
 0x690   : > { %1775 = vrot.lane.b32.xlu0 %v8806_v32, %s8433_s30 }
 0x694   : > { %1825 = vrot.lane.b32.xlu0 %v8813_v42, %s8433_s30 }
 0x698   : > { %1823 = vrot.lane.b32.xlu0 %v8835_v51, %s8433_s30 }
 0x6ce   : > { %v1560_v20 = vpop.xlane.xlu0 %1559 }
 0x6cf   : > { %7887 = vrcp.f32 %v1560_v20 }
 0x6d2   : > { %v1578_v21 = vpop.permute.xlu0 %1577 }
 0x6d3   : > { %v1583_v22 = vsel %vm1242_vm2, %v1578_v21, 0 }
 0x6d4   : > { %7123 = vmatpush3.bf16.msra.mxu0 %v1583_v22 }
 0x6d5   : > { %7134 = vmatprep.subr.bf16.mxu0 %v8430_v8 }
 0x6dc   : > { %v7888_v23 = vpop.eup %7887 }
 0x6dd   : > { %v1570_v24 = vmul.f32 %v7888_v23, %v7882_v59 }
 0x6df   : > { %v1573_v27 = vpack.c.bf16 %v1570_v24, %v1570_v24 }
 0x6e1   : > { %7125 = vmatmul.mubr.msk.bf16.vlgmr.msra.gmra.mxu0 %vm1199_vm4, %v1573_v27 }
 0x6e2   : > { %7135 = vmatpush3.bf16.msra.mxu0 %v1681_v28  ;;  %7136 = vmatprep.mubr.msk.bf16.mxu0 %vm8431_vm0, %v8430_v8 }
 0x6e3   : > { %7146 = vmatprep.subr.bf16.mxu0 %v8430_v8 }
 0x6f5   : > { %v1566_v30 = vpop.xlane.xlu1 %1565 }
 0x6f6   : > { %7889 = vrcp.f32 %v1566_v30 }
 0x6f9   : > { %v1724_v41 = vpop.permute.xlu1 %1723 }
 0x6fd   : > { %v1774_v43 = vpop.permute.xlu1 %1773 }
 0x703   : > { %v7890_v31 = vpop.eup %7889  ;;  %v1563_v33 = vpop.xlane.xlu0 %1562 }
 0x704   : > { %7891 = vrcp.f32 %v1563_v33  ;;  %v1572_v34 = vmul.f32 %v7890_v31, %v7884_v5 }
 0x706   : > { %v1575_v35 = vpack.c.bf16 %v1572_v34, %v1572_v34 }
 0x707   : > { %v1776_v38 = vpop.permute.xlu0 %1775 }
 0x708   : > { %v1781_v39 = vsel %vm1052_vm1, %v1776_v38, 0  ;;  %7137 = vmatmul.mubr.msk.bf16.vlgmr.msra.gmra.mxu0 %vm1199_vm4, %v1575_v35 }
 0x709   : > { %7147 = vmatpush3.bf16.xpose.msra.mxu0 %v1781_v39  ;;  %7148 = vmatprep.mubr.msk.bf16.mxu0 %vm8431_vm0, %v8430_v8 }
 0x70a   : > { %7158 = vmatprep.subr.bf16.mxu0 %v8430_v8 }
 0x70b   : > { %v1826_v53 = vpop.permute.xlu0 %1825 }
 0x70c   : > { %v1831_v55 = vsel %vm1052_vm1, %v1826_v53, 0 }
 0x70f   : > { %v1824_v56 = vpop.permute.xlu0 %1823 }
 0x710   : > { %7149 = vmatmul.mubr.msk.bf16.vlgmr.msra.gmra.mxu0 %vm1052_vm1, %v1774_v43 }
 0x711   : > { %v7892_v46 = vpop.eup %7891  ;;  %7160 = vmatprep.mubr.msk.bf16.mxu0 %vm8431_vm0, %v8430_v8 }
 0x712   : > { %v1571_v48 = vmul.f32 %v7892_v46, %v7886_v16 }
 0x714   : > { %v1574_v50 = vpack.c.bf16 %v1571_v48, %v1571_v48 }
 0x716   : > { %7131 = vmatmul.mubr.msk.bf16.vlgmr.msra.gmra.mxu1 %vm1199_vm4, %v1574_v50 }
 0x717   : > { %7141 = vmatpush3.bf16.xpose.msra.mxu1 %v1731_v52  ;;  %7142 = vmatprep.mubr.msk.bf16.mxu1 %vm8431_vm0, %v8430_v8 }
 0x718   : > { %7152 = vmatprep.subr.bf16.mxu1 %v8430_v8 }
 0x71e   : > { %7143 = vmatmul.mubr.msk.bf16.vlgmr.msra.gmra.mxu1 %vm1052_vm1, %v1724_v41 }
 0x71f   : > { %7153 = vmatpush3.bf16.xpose.msra.mxu1 %v1831_v55  ;;  %7154 = vmatprep.mubr.msk.bf16.mxu1 %vm8431_vm0, %v8430_v8 }
 0x720   : > { %7164 = vmatprep.subr.bf16.mxu1 %v8430_v8 }
 0x726   : > { %7155 = vmatmul.mubr.msk.bf16.vlgmr.msra.gmra.mxu1 %vm1052_vm1, %v1824_v56 }
 0x727   : > { %7166 = vmatprep.mubr.msk.bf16.mxu1 %vm8431_vm0, %v8430_v8 }
 0x7a1   : > { %v8971_v19 = vpop.f32.mrf.mxu0 }
 0x7a3   : > { %v7126_v57 = vpop.f32.mrf.mxu0 }
 0x7a5   : > { %v1622_v58 = vpop.f32.mrf.mxu0 }
 0x7a7   : > { %v7127_v59 = vpop.f32.mrf.mxu0 }
 0x7c8   : > { %v8973_v60 = vpop.f32.mrf.mxu0 }
 0x7ca   : > { %v7138_v61 = vpop.f32.mrf.mxu0 }
 0x7cc   : > { %v1720_v62 = vpop.f32.mrf.mxu0 }
 0x7ce   : > { %v7139_v63 = vpop.f32.mrf.mxu0 }
 0x7d0   : > { %v1817_v0 = vpop.f32.mrf.mxu0 }
 0x7d1   : > { %v1874_v1 = vmul.f32 0.17677669, %v1817_v0 }
 0x7d2   : > { %v7150_v2 = vpop.f32.mrf.mxu0 }
 0x7d3   : > { %v1877_v5 = vsel %vm8846_vm3, %v1874_v1, -1e+30 }
 0x7d4   : > { %v1820_v9 = vpop.f32.mrf.mxu0  ;;  %v1882_v12 = vsel %vm1199_vm4, %v1877_v5, -inf }
 0x7d5   : > { %1883 = vmax.xlane.f32.xlu0 %v1882_v12 }
 0x7d6   : > { %v8978_v15 = vpop.f32.mrf.mxu1  ;;  %v7151_v16 = vpop.f32.mrf.mxu0 }
 0x7d7   : > { %v7585_v18 = vpack.i.bf16 %v8978_v15, %v8971_v19 }
 0x7d8   : > { %v7132_v20 = vpop.f32.mrf.mxu1 }
 0x7da   : > { %v1671_v21 = vpop.f32.mrf.mxu1 }
 0x7dc   : > { %v7133_v22 = vpop.f32.mrf.mxu1 }
 0x7de   : > { %v1767_v23 = vpop.f32.mrf.mxu1 }
 0x7df   : > { %v1873_v24 = vmul.f32 0.17677669, %v1767_v23 }
 0x7e0   : > { %v7144_v26 = vpop.f32.mrf.mxu1 }
 0x7e1   : > { %v1876_v27 = vsel %vm8846_vm3, %v1873_v24, -1e+30 }
 0x7e2   : > { %v1770_v28 = vpop.f32.mrf.mxu1  ;;  %v1879_v29 = vsel %vm1199_vm4, %v1876_v27, -inf }
 0x7e3   : > { %1880 = vmax.xlane.f32.xlu1 %v1879_v29 }
 0x7e4   : > { %v7145_v30 = vpop.f32.mrf.mxu1 }
 0x7e6   : > { %v1867_v31 = vpop.f32.mrf.mxu1 }
 0x7e7   : > { %v1875_v33 = vmul.f32 0.17677669, %v1867_v31 }
 0x7e8   : > { %v7156_v34 = vpop.f32.mrf.mxu1 }
 0x7e9   : > { %v1878_v35 = vsel %vm8846_vm3, %v1875_v33, -1e+30 }
 0x7ea   : > { %v1870_v38 = vpop.f32.mrf.mxu1  ;;  %v1885_v39 = vsel %vm1199_vm4, %v1878_v35, -inf }
 0x7eb   : > { %1886 = vmax.xlane.f32.xlu0 %v1885_v39 }
 0x7ec   : > { %v7157_v41 = vpop.f32.mrf.mxu1 }
 0x7f4   : > { %1915 = vrot.lane.b32.xlu1 %v8816_v44, %s8433_s30 }
 0x7f8   : > { %2061 = vrot.lane.b32.xlu1 %v8802_v25, %s8434_s27 }
 0x7fc   : > { %2011 = vrot.lane.b32.xlu1 %v8876_v45, %s8433_s30 }
 0x85e   : > { %v1884_v43 = vpop.xlane.xlu0 %1883 }
 0x85f   : > { %v1889_v46 = vsub.f32 %v1877_v5, %v1884_v43 }
 0x861   : > { %v1893_v48 = vmul.f32 1.442695, %v1889_v46 }
 0x863   : > { %7893 = vpow2.f32 %v1893_v48 }
 0x86c   : > { %v1881_v50 = vpop.xlane.xlu1 %1880 }
 0x86d   : > { %v1888_v52 = vsub.f32 %v1876_v27, %v1881_v50 }
 0x86f   : > { %v1891_v53 = vmul.f32 1.442695, %v1888_v52 }
 0x870   : > { %v7894_v55 = vpop.eup %7893  ;;  %v1916_v56 = vpop.permute.xlu1 %1915 }
 0x871   : > { %7895 = vpow2.f32 %v1891_v53  ;;  %v1921_v57 = vsel %vm1242_vm2, %v1916_v56, 0  ;;  %v1900_v58 = vsel %vm1199_vm4, %v7894_v55, 0.0 }
 0x872   : > { %1901 = vadd.xlane.f32.xlu1 %v1900_v58  ;;  %7159 = vmatpush3.bf16.msra.mxu0 %v1921_v57 }
 0x873   : > { %7170 = vmatprep.subr.bf16.mxu0 %v8430_v8 }
 0x874   : > { %v1887_v61 = vpop.xlane.xlu0 %1886 }
 0x875   : > { %v1890_v62 = vsub.f32 %v1878_v35, %v1887_v61 }
 0x877   : > { %v1895_v63 = vmul.f32 1.442695, %v1890_v62 }
 0x879   : > { %7897 = vpow2.f32 %v1895_v63 }
 0x87e   : > { %v7896_v25 = vpop.eup %7895 }
 0x87f   : > { %v1897_v59 = vsel %vm1199_vm4, %v7896_v25, 0.0 }
 0x880   : > { %1898 = vadd.xlane.f32.xlu0 %v1897_v59 }
 0x883   : > { %2111 = vrot.lane.b32.xlu1 %v8806_v32, %s8434_s27  ;;  %v2062_v32 = vpop.permute.xlu1 %2061 }
 0x886   : > { %v7898_v0 = vpop.eup %7897 }
 0x887   : > { %2161 = vrot.lane.b32.xlu1 %v8813_v42, %s8434_s27  ;;  %v1903_v1 = vsel %vm1199_vm4, %v7898_v0, 0.0  ;;  %v2012_v42 = vpop.permute.xlu1 %2011 }
 0x888   : > { %v2017_v23 = vsel %vm1242_vm2, %v2012_v42, 0 }
 0x88b   : > { %2159 = vrot.lane.b32.xlu1 %v8835_v51, %s8434_s27 }
 0x896   : > { %1963 = vrot.lane.b32.xlu0 %v8827_v49, %s8433_s30 }
 0x8b5   : > { %1904 = vadd.xlane.f32.xlu0 %v1903_v1 }
 0x8cb   : > { %2059 = vrot.lane.b32.xlu0 %v8811_v40, %s8434_s27  ;;  %v2067_v40 = vsel %vm1052_vm1, %v2062_v32, 0 }
 0x8cf   : > { %2109 = vrot.lane.b32.xlu0 %v8824_v47, %s8434_s27 }
 0x8fb   : > { %v1902_v51 = vpop.xlane.xlu1 %1901 }
 0x8fc   : > { %7899 = vrcp.f32 %v1902_v51 }
 0x8ff   : > { %v2112_v24 = vpop.permute.xlu1 %2111 }
 0x900   : > { %v2117_v35 = vsel %vm1052_vm1, %v2112_v24, 0 }
 0x903   : > { %v2162_v27 = vpop.permute.xlu1 %2161 }
 0x904   : > { %v2167_v29 = vsel %vm1052_vm1, %v2162_v27, 0 }
 0x907   : > { %v2160_v30 = vpop.permute.xlu1 %2159 }
 0x909   : > { %v7900_v2 = vpop.eup %7899  ;;  %v1899_v5 = vpop.xlane.xlu0 %1898 }
 0x90a   : > { %7901 = vrcp.f32 %v1899_v5  ;;  %v1910_v9 = vmul.f32 %v7900_v2, %v7894_v55 }
 0x90c   : > { %v1913_v20 = vpack.c.bf16 %v1910_v9, %v1910_v9 }
 0x90d   : > { %v1964_v12 = vpop.permute.xlu0 %1963 }
 0x90e   : > { %v1969_v16 = vsel %vm1242_vm2, %v1964_v12, 0 }
 0x90f   : > { %7165 = vmatpush3.bf16.msra.mxu1 %v1969_v16 }
 0x910   : > { %7176 = vmatprep.subr.bf16.mxu1 %v8430_v8 }
 0x912   : > { %7167 = vmatmul.mubr.msk.bf16.vlgmr.msra.gmra.mxu1 %vm1199_vm4, %v1913_v20 }
 0x913   : > { %7177 = vmatpush3.bf16.xpose.msra.mxu1 %v2067_v40  ;;  %7178 = vmatprep.mubr.msk.bf16.mxu1 %vm8431_vm0, %v8430_v8 }
 0x914   : > { %7188 = vmatprep.subr.bf16.mxu1 %v8430_v8 }
 0x917   : > { %v7902_v47 = vpop.eup %7901 }
 0x918   : > { %v1909_v21 = vmul.f32 %v7902_v47, %v7896_v25 }
 0x91a   : > { %v1912_v22 = vpack.c.bf16 %v1909_v21, %v1909_v21 }
 0x91c   : > { %7161 = vmatmul.mubr.msk.bf16.vlgmr.msra.gmra.mxu0 %vm1199_vm4, %v1912_v22 }
 0x91d   : > { %7171 = vmatpush3.bf16.msra.mxu0 %v2017_v23  ;;  %7172 = vmatprep.mubr.msk.bf16.mxu0 %vm8431_vm0, %v8430_v8 }
 0x91e   : > { %7182 = vmatprep.subr.bf16.mxu0 %v8430_v8 }
 0x93e   : > { %v1905_v26 = vpop.xlane.xlu0 %1904 }
 0x93f   : > { %7903 = vrcp.f32 %v1905_v26 }
 0x942   : > { %v2060_v28 = vpop.permute.xlu0 %2059 }
 0x943   : > { %7179 = vmatmul.mubr.msk.bf16.vlgmr.msra.gmra.mxu1 %vm1052_vm1, %v2060_v28 }
 0x944   : > { %7189 = vmatpush3.bf16.xpose.msra.mxu1 %v2167_v29  ;;  %7190 = vmatprep.mubr.msk.bf16.mxu1 %vm8431_vm0, %v8430_v8 }
 0x945   : > { %7200 = vmatprep.subr.bf16.mxu1 %v8430_v8 }
 0x946   : > { %v2110_v38 = vpop.permute.xlu0 %2109 }
 0x94b   : > { %7191 = vmatmul.mubr.msk.bf16.vlgmr.msra.gmra.mxu1 %vm1052_vm1, %v2160_v30 }
 0x94c   : > { %v7904_v31 = vpop.eup %7903  ;;  %7202 = vmatprep.mubr.msk.bf16.mxu1 %vm8431_vm0, %v8430_v8 }
 0x94d   : > { %v1911_v33 = vmul.f32 %v7904_v31, %v7898_v0 }
 0x94f   : > { %v1914_v34 = vpack.c.bf16 %v1911_v33, %v1911_v33 }
 0x951   : > { %7173 = vmatmul.mubr.msk.bf16.vlgmr.msra.gmra.mxu0 %vm1199_vm4, %v1914_v34 }
 0x952   : > { %7183 = vmatpush3.bf16.xpose.msra.mxu0 %v2117_v35  ;;  %7184 = vmatprep.mubr.msk.bf16.mxu0 %vm8431_vm0, %v8430_v8 }
 0x953   : > { %7194 = vmatprep.subr.bf16.mxu0 %v8430_v8 }
 0x959   : > { %7185 = vmatmul.mubr.msk.bf16.vlgmr.msra.gmra.mxu0 %vm1052_vm1, %v2110_v38 }
 0x95a   : > { %7196 = vmatprep.mubr.msk.bf16.mxu0 %vm8431_vm0, %v8430_v8 }
 0x9d2   : > { %v9039_v39 = vpop.f32.mrf.mxu1 }
 0x9d4   : > { %v7168_v41 = vpop.f32.mrf.mxu1 }
 0x9d6   : > { %v2008_v43 = vpop.f32.mrf.mxu1 }
 0x9d8   : > { %v7169_v46 = vpop.f32.mrf.mxu1 }
 0x9dc   : > { %v1957_v48 = vpop.f32.mrf.mxu0 }
 0x9dd   : > { %v7590_v50 = vpack.i.bf16 %v9039_v39, %v1957_v48 }
 0x9de   : > { %v7162_v52 = vpop.f32.mrf.mxu0 }
 0x9e0   : > { %v1960_v53 = vpop.f32.mrf.mxu0 }
 0x9e2   : > { %v7163_v55 = vpop.f32.mrf.mxu0 }
 0xa03   : > { %v2103_v56 = vpop.f32.mrf.mxu1 }
 0xa04   : > { %v2209_v57 = vmul.f32 0.17677669, %v2103_v56 }
 0xa05   : > { %v7180_v58 = vpop.f32.mrf.mxu1 }
 0xa06   : > { %v2212_v25 = vsel %vm8846_vm3, %v2209_v57, -1e+30 }
 0xa07   : > { %v2106_v59 = vpop.f32.mrf.mxu1  ;;  %v2215_v61 = vsel %vm1199_vm4, %v2212_v25, -inf }
 0xa08   : > { %2216 = vmax.xlane.f32.xlu0 %v2215_v61 }
 0xa09   : > { %v7181_v62 = vpop.f32.mrf.mxu1 }
 0xa0b   : > { %v2203_v63 = vpop.f32.mrf.mxu1 }
 0xa0c   : > { %v2211_v0 = vmul.f32 0.17677669, %v2203_v63  ;;  %v7647_v63 = vld [vmem:[#allocation9 + $0x38] sm:$0xff]  }
 0xa0d   : > { %v7192_v1 = vpop.f32.mrf.mxu1 }
 0xa0e   : > { %v2214_v32 = vsel %vm8846_vm3, %v2211_v0, -1e+30  ;;  %v7648_v0 = vld [vmem:[#allocation9 + $0x30] sm:$0xff]   ;;  %v7649_v1 = vld [vmem:[#allocation9 + $0x28] sm:$0xff]  }
 0xa0f   : > { %v2206_v42 = vpop.f32.mrf.mxu1  ;;  %v2221_v51 = vsel %vm1199_vm4, %v2214_v32, -inf }
 0xa10   : > { %2222 = vmax.xlane.f32.xlu0 %v2221_v51  ;;  %v7651_v42 = vld [vmem:[#allocation9 + $0x18] sm:$0xff]   ;;  %v7652_v51 = vld [vmem:[#allocation9 + $0x10] sm:$0xff]  }
 0xa11   : > { %v2053_v2 = vpop.f32.mrf.mxu0  ;;  %v7193_v5 = vpop.f32.mrf.mxu1 }
 0xa13   : > { %v7174_v9 = vpop.f32.mrf.mxu0 }
 0xa14   : > { %v7654_v9 = vld [vmem:[#allocation9] sm:$0xff]  }
 0xa15   : > { %v2056_v12 = vpop.f32.mrf.mxu0 }
 0xa17   : > { %v7175_v16 = vpop.f32.mrf.mxu0 }
 0xa19   : > { %v2153_v20 = vpop.f32.mrf.mxu0 }
 0xa1a   : > { %v2210_v40 = vmul.f32 0.17677669, %v2153_v20 }
 0xa1b   : > { %v7186_v47 = vpop.f32.mrf.mxu0 }
 0xa1c   : > { %v2213_v21 = vsel %vm8846_vm3, %v2210_v40, -1e+30 }
 0xa1d   : > { %v2156_v22 = vpop.f32.mrf.mxu0  ;;  %v2218_v23 = vsel %vm1199_vm4, %v2213_v21, -inf }
 0xa1e   : > { %2219 = vmax.xlane.f32.xlu1 %v2218_v23 }
 0xa1f   : > { %v7187_v24 = vpop.f32.mrf.mxu0 }
 0xa2f   : > { %2299 = vrot.lane.b32.xlu1 %v8827_v49, %s8434_s27 }
 0xa91   : > { %v2217_v26 = vpop.xlane.xlu0 %2216 }
 0xa92   : > { %v2224_v27 = vsub.f32 %v2212_v25, %v2217_v26 }
 0xa94   : > { %v2227_v28 = vmul.f32 1.442695, %v2224_v27 }
 0xa96   : > { %7905 = vpow2.f32 %v2227_v28 }
 0xa99   : > { %v2223_v29 = vpop.xlane.xlu0 %2222 }
 0xa9a   : > { %v2226_v30 = vsub.f32 %v2214_v32, %v2223_v29  ;;  %v7650_v32 = vld [vmem:[#allocation9 + $0x20] sm:$0xff]  }
 0xa9c   : > { %v2231_v31 = vmul.f32 1.442695, %v2226_v30 }
 0xa9e   : > { %7907 = vpow2.f32 %v2231_v31 }
 0xaa3   : > { %v7906_v33 = vpop.eup %7905 }
 0xaa4   : > { %v2233_v34 = vsel %vm1199_vm4, %v7906_v33, 0.0 }
 0xaa5   : > { %2234 = vadd.xlane.f32.xlu0 %v2233_v34 }
 0xaa7   : > { %v2220_v35 = vpop.xlane.xlu1 %2219 }
 0xaa8   : > { %v2225_v38 = vsub.f32 %v2213_v21, %v2220_v35 }
 0xaaa   : > { %v2229_v39 = vmul.f32 1.442695, %v2225_v38 }
 0xaab   : > { %v7908_v41 = vpop.eup %7907  ;;  %v2300_v43 = vpop.permute.xlu1 %2299 }
 0xaac   : > { %7909 = vpow2.f32 %v2229_v39  ;;  %v2305_v49 = vsel %vm1242_vm2, %v2300_v43, 0  ;;  %v2239_v46 = vsel %vm1199_vm4, %v7908_v41, 0.0 }
 0xaad   : > { %7201 = vmatpush3.bf16.msra.mxu1 %v2305_v49  ;;  %2240 = vadd.xlane.f32.xlu1 %v2239_v46 }
 0xaae   : > { %7212 = vmatprep.subr.bf16.mxu1 %v7647_v63 }
 0xab9   : > { %v7910_v48 = vpop.eup %7909 }
 0xaba   : > { %v2236_v52 = vsel %vm1199_vm4, %v7910_v48, 0.0 }
 0xabb   : > { %2237 = vadd.xlane.f32.xlu0 %v2236_v52 }
 0xabe   : > { %2347 = vrot.lane.b32.xlu1 %v8876_v45, %s8434_s27 }
 0xac2   : > { %7586 = vrot.lane.b32.xlu1 %v7585_v18, %s8434_s27 }
 0xac6   : > { %7591 = vrot.lane.b32.xlu1 %v7590_v50, %s8433_s30 }
 0xad1   : > { %2251 = vrot.lane.b32.xlu0 %v8816_v44, %s8434_s27 }
 0xad5   : > { %2402 = vrot.lane.b32.xlu0 %v8973_v60, %s8434_s27 }
 0xad9   : > { %2414 = vrot.lane.b32.xlu0 %v2053_v2, %s8433_s30  ;;  %v7653_v2 = vld [vmem:[#allocation9 + $0x8] sm:$0xff]  }
 0xb2e   : > { %v2235_v53 = vpop.xlane.xlu0 %2234 }
 0xb2f   : > { %7911 = vrcp.f32 %v2235_v53 }
 0xb36   : > { %v2241_v55 = vpop.xlane.xlu1 %2240 }
 0xb37   : > { %7913 = vrcp.f32 %v2241_v55 }
 0xb3a   : > { %v2348_v18 = vpop.permute.xlu1 %2347 }
 0xb3b   : > { %v2353_v60 = vsel %vm1242_vm2, %v2348_v18, 0 }
 0xb3c   : > { %v7912_v45 = vpop.eup %7911 }
 0xb3d   : > { %v2245_v57 = vmul.f32 %v7912_v45, %v7906_v33 }
 0xb3e   : > { %v7587_v29 = vpop.permute.xlu1 %7586 }
 0xb3f   : > { %v2248_v50 = vpack.c.bf16 %v2245_v57, %v2245_v57  ;;  %v7589_v34 = vunpack.i.h.bf16 %v7587_v29  ;;  %v7588_v35 = vunpack.i.l.bf16 %v7587_v29  ;;  %v7670_v29 = vld [vmem:[#allocation15 + $0xa8] ss:$16 sps:$4 sm:$0xff]  }
 0xb41   : > { %v2432_v43 = vsel %vm1052_vm1, %v8907_v14, %v7589_v34  ;;  %v7676_v34 = vld [vmem:[#allocation15 + $0x88] ss:$16 sps:$4 sm:$0xff]  }
 0xb42   : > { %v7592_v31 = vpop.permute.xlu1 %7591 }
 0xb43   : > { %v7594_v38 = vunpack.i.h.bf16 %v7592_v31  ;;  %v7593_v39 = vunpack.i.l.bf16 %v7592_v31  ;;  %v7678_v31 = vld [vmem:[#allocation15 + $0x8c] ss:$16 sps:$4 sm:$0xff]  }
 0xb44   : > { %v2238_v56 = vpop.xlane.xlu0 %2237  ;;  %v7914_v44 = vpop.eup %7913 }
 0xb45   : > { %7915 = vrcp.f32 %v2238_v56  ;;  %v2247_v58 = vmul.f32 %v7914_v44, %v7908_v41  ;;  %v2436_v56 = vsel %vm2434_vm5, %v2432_v43, %v7594_v38  ;;  %v6555_v44 = vld [vmem:[%s9680_s6] ss:$0 sm:$0xff]  ;;  %v7681_v38 = vld [vmem:[#allocation15 + $0x64] ss:$16 sps:$4 sm:$0xff]  }
 0xb46   : > { %v7687_v43 = vld [vmem:[#allocation15 + $0x44] ss:$16 sps:$4 sm:$0xff]  }
 0xb47   : > { %v2250_v59 = vpack.c.bf16 %v2247_v58, %v2247_v58 }
 0xb48   : > { %v2252_v19 = vpop.permute.xlu0 %2251 }
 0xb49   : > { %v2257_v15 = vsel %vm1242_vm2, %v2252_v19, 0 }
 0xb4a   : > { %7195 = vmatpush3.bf16.msra.mxu0 %v2257_v15 }
 0xb4b   : > { %7206 = vmatprep.subr.bf16.mxu0 %v8430_v8 }
 0xb4c   : > { %v2403_v30 = vpop.permute.xlu0 %2402 }
 0xb4d   : > { %7197 = vmatmul.mubr.msk.bf16.vlgmr.msra.gmra.mxu0 %vm1199_vm4, %v2248_v50  ;;  %v2433_v49 = vsel %vm1052_vm1, %v8915_v37, %v2403_v30  ;;  %v7675_v30 = vld [vmem:[#allocation15 + $0x84] ss:$16 sps:$4 sm:$0xff]  }
 0xb4e   : > { %7207 = vmatpush3.bf16.msra.mxu0 %v2353_v60  ;;  %7208 = vmatprep.mubr.msk.bf16.mxu0 %vm8431_vm0, %v8430_v8 }
 0xb50   : > { %v2415_v33 = vpop.permute.xlu0 %2414 }
 0xb51   : > { %v2437_v52 = vsel %vm2434_vm5, %v2433_v49, %v2415_v33  ;;  %v7673_v33 = vld [vmem:[#allocation15 + $0x80] ss:$16 sps:$4 sm:$0xff]   ;;  %v7690_v49 = vld [vmem:[#allocation15 + $0x4c] ss:$16 sps:$4 sm:$0xff]  }
 0xb52   : > { %v7916_v25 = vpop.eup %7915 }
 0xb53   : > { %v2246_v61 = vmul.f32 %v7916_v25, %v7910_v48  ;;  %v2431_v48 = vsel %vm1052_vm1, %v8905_v7, %v7588_v35  ;;  %v7679_v35 = vld [vmem:[#allocation15 + $0x60] ss:$16 sps:$4 sm:$0xff]  }
 0xb54   : > { %v2435_v45 = vsel %vm2434_vm5, %v2431_v48, %v7593_v39  ;;  %v7682_v39 = vld [vmem:[#allocation15 + $0x68] ss:$16 sps:$4 sm:$0xff]  }
 0xb55   : > { %7209 = vmatmul.mubr.msk.bf16.vlgmr.msra.gmra.mxu0 %vm1199_vm4, %v2250_v59  ;;  %v2249_v62 = vpack.c.bf16 %v2246_v61, %v2246_v61  ;;  %v7688_v48 = vld [vmem:[#allocation15 + $0x48] ss:$16 sps:$4 sm:$0xff]  }
 0xb56   : > { %2870 = vmatprep.mubr.bf16.mxu0 %v8429_v36 }
 0xb57   : > { %7203 = vmatmul.mubr.msk.bf16.vlgmr.msra.gmra.mxu1 %vm1199_vm4, %v2249_v62 }
 0xb58   : > { %7213 = vmatpush3.bf16.msra.mxu1 %v7647_v63 }
 0xb59   : > { %7214 = vmatprep.subr.bf16.mxu1 %v7648_v0 }
 0xb5c   : > { %7215 = vmatpush3.bf16.msra.mxu1 %v7648_v0  ;;  %v7657_v0 = vld [vmem:[#allocation15 + $0xe4] ss:$16 sps:$4 sm:$0xff]  }
 0xb5d   : > { %7216 = vmatprep.subr.bf16.mxu1 %v7649_v1  ;;  %2838 = vmatprep.subr.bf16.mxu0 %v7657_v0  ;;  %v6556_v0 = vld [vmem:[#allocation14] ss:$0 sm:$0xff] }
 0xb60   : > { %7217 = vmatpush3.bf16.msra.mxu1 %v7649_v1  ;;  %v7658_v1 = vld [vmem:[#allocation15 + $0xe8] ss:$16 sps:$4 sm:$0xff]  }
 0xb61   : > { %7218 = vmatprep.subr.bf16.mxu1 %v7650_v32 }
 0xb64   : > { %7219 = vmatpush3.bf16.msra.mxu1 %v7650_v32  ;;  %v7660_v32 = vld [vmem:[#allocation15 + $0xec] ss:$16 sps:$4 sm:$0xff]  }
 0xb65   : > { %7220 = vmatprep.subr.bf16.mxu1 %v7651_v42 }
 0xb68   : > { %7221 = vmatpush3.bf16.msra.mxu1 %v7651_v42 }
 0xb69   : > { %7222 = vmatprep.subr.bf16.mxu1 %v7652_v51 }
 0xb6c   : > { %7223 = vmatpush3.bf16.msra.mxu1 %v7652_v51 }
 0xb6d   : > { %7224 = vmatprep.subr.bf16.mxu1 %v7653_v2 }
 0xb70   : > { %7225 = vmatpush3.bf16.msra.mxu1 %v7653_v2 }
 0xb71   : > { %7226 = vmatprep.subr.bf16.mxu1 %v7654_v9 }
 0xb74   : > { %7227 = vmatpush3.bf16.msra.mxu1 %v7654_v9 }
 0xb75   : > { %2889 = vmatprep.subr.bf16.mxu1 %v7660_v32 }
 0xc0d   : > { %v2293_v5 = vpop.f32.mrf.mxu0 }
 0xc0f   : > { %v7198_v12 = vpop.f32.mrf.mxu0 }
 0xc11   : > { %v2296_v16 = vpop.f32.mrf.mxu0 }
 0xc13   : > { %v7199_v20 = vpop.f32.mrf.mxu0 }
 0xc15   : > { %v2389_v40 = vpop.f32.mrf.mxu0 }
 0xc16   : > { %2426 = vrot.lane.b32.xlu0 %v2389_v40, %s8432_s28 }
 0xc17   : > { %v2341_v47 = vpop.f32.mrf.mxu1  ;;  %v7210_v21 = vpop.f32.mrf.mxu0 }
 0xc18   : > { %v7595_v22 = vpack.i.bf16 %v2341_v47, %v2293_v5  ;;  %v7663_v21 = vld [vmem:[#allocation15 + $0xc4] ss:$16 sps:$4 sm:$0xff]  }
 0xc19   : > { %v7204_v23 = vpop.f32.mrf.mxu1  ;;  %v2392_v24 = vpop.f32.mrf.mxu0 }
 0xc1a   : > { %7596 = vrot.lane.b32.xlu1 %v7595_v22, %s8432_s28  ;;  %v7666_v22 = vld [vmem:[#allocation15 + $0xcc] ss:$16 sps:$4 sm:$0xff]   ;;  %v7661_v23 = vld [vmem:[#allocation15 + $0xc0] ss:$16 sps:$4 sm:$0xff]   ;;  %v7664_v24 = vld [vmem:[#allocation15 + $0xc8] ss:$16 sps:$4 sm:$0xff]  }
 0xc1b   : > { %v2344_v26 = vpop.f32.mrf.mxu1  ;;  %v7211_v27 = vpop.f32.mrf.mxu0 }
 0xc1c   : > { %v7669_v26 = vld [vmem:[#allocation15 + $0xa4] ss:$16 sps:$4 sm:$0xff]   ;;  %v7672_v27 = vld [vmem:[#allocation15 + $0xac] ss:$16 sps:$4 sm:$0xff]  }
 0xc1d   : > { %v7205_v28 = vpop.f32.mrf.mxu1 }
 0xc1e   : > { %v7667_v28 = vld [vmem:[#allocation15 + $0xa0] ss:$16 sps:$4 sm:$0xff]  }
 0xc88   : > { %v2427_v41 = vpop.permute.xlu0 %2426 }
 0xc89   : > { %v2441_v57 = vsel %vm2438_vm6, %v2437_v52, %v2427_v41  ;;  %v7684_v41 = vld [vmem:[#allocation15 + $0x6c] ss:$16 sps:$4 sm:$0xff]   ;;  %v7693_v52 = vld [vmem:[#allocation15 + $0x24] ss:$16 sps:$4 sm:$0xff]  }
 0xc8a   : > { %v2459_v37 = vpack.c.bf16 %v2441_v57, %v2441_v57  ;;  %v7702_v57 = vld [vmem:[#allocation15 + $0xc] ss:$16 sps:$4 sm:$0xff]  }
 0xc8c   : > { %v7597_v46 = vpop.permute.xlu1 %7596 }
 0xc8d   : > { %v7599_v53 = vunpack.i.h.bf16 %v7597_v46  ;;  %v7598_v55 = vunpack.i.l.bf16 %v7597_v46  ;;  %v7685_v46 = vld [vmem:[#allocation15 + $0x40] ss:$16 sps:$4 sm:$0xff]  }
 0xc8f   : > { %v2439_v19 = vsel %vm2438_vm6, %v2435_v45, %v7598_v55  ;;  %v2440_v14 = vsel %vm2438_vm6, %v2436_v56, %v7599_v53  ;;  %v7696_v53 = vld [vmem:[#allocation15 + $0x2c] ss:$16 sps:$4 sm:$0xff]   ;;  %v7691_v55 = vld [vmem:[#allocation15 + $0x20] ss:$16 sps:$4 sm:$0xff]   ;;  %v7694_v45 = vld [vmem:[#allocation15 + $0x28] ss:$16 sps:$4 sm:$0xff]  }
 0xc90   : > { %v2458_v15 = vpack.c.bf16 %v2440_v14, %v2439_v19  ;;  %v7699_v56 = vld [vmem:[#allocation15 + $0x4] ss:$16 sps:$4 sm:$0xff]   ;;  %v7697_v19 = vld [vmem:[#allocation15] ss:$16 sps:$4 sm:$0xff]   ;;  %v7700_v14 = vld [vmem:[#allocation15 + $0x8] ss:$16 sps:$4 sm:$0xff]  }
 0xc92   : > { %7228 = vmatprep.mubr.bf16.mxu1 %v2458_v15 }
 0xc93   : > { %7229 = vmatmul.mubr.bf16.vlgmr.msra.gmra.mxu1 %v2459_v37 }
 0xc94   : > { %2921 = vmatprep.mubr.bf16.mxu1 %v8429_v36  ;;  %2890 = vmatpush1.bf16.msra.mxu1 %v7658_v1 }
 0xc95   : > { %2891 = vmatprep.subr.bf16.mxu1 %v7666_v22  ;;  %v7704_v22 = vld [vmem:[#allocation17 + $0xf8] sm:$0xff]  }
 0xc98   : > { %2892 = vmatpush1.bf16.msra.mxu1 %v7664_v24  ;;  %v7706_v24 = vld [vmem:[#allocation17 + $0xb8] sm:$0xff]  }
 0xc99   : > { %2893 = vmatprep.subr.bf16.mxu1 %v7672_v27  ;;  %v7709_v27 = vld [vmem:[#allocation17 + $0x30] sm:$0xff]  }
 0xc9c   : > { %2894 = vmatpush1.bf16.msra.mxu1 %v7670_v29  ;;  %v7711_v29 = vld [vmem:[#allocation17 + $0x68] sm:$0xff]  }
 0xc9d   : > { %2895 = vmatprep.subr.bf16.mxu1 %v7678_v31  ;;  %v7713_v31 = vld [vmem:[#allocation17 + $0x28] sm:$0xff]  }
 0xca0   : > { %2896 = vmatpush1.bf16.msra.mxu1 %v7676_v34  ;;  %v7715_v34 = vld [vmem:[#allocation17 + $0x60] sm:$0xff]  }
 0xca1   : > { %2897 = vmatprep.subr.bf16.mxu1 %v7684_v41  ;;  %v7719_v41 = vld [vmem:[#allocation17 + $0x58] sm:$0xff]  }
 0xca4   : > { %2898 = vmatpush1.bf16.msra.mxu1 %v7682_v39  ;;  %v7718_v39 = vld [vmem:[#allocation17 + $0xa0] sm:$0xff]  }
 0xca5   : > { %2899 = vmatprep.subr.bf16.mxu1 %v7690_v49  ;;  %v7721_v49 = vld [vmem:[#allocation17 + $0x18] sm:$0xff]  }
 0xca8   : > { %2900 = vmatpush1.bf16.msra.mxu1 %v7688_v48  ;;  %v7723_v48 = vld [vmem:[#allocation17 + $0x50] sm:$0xff]  }
 0xca9   : > { %2901 = vmatprep.subr.bf16.mxu1 %v7696_v53  ;;  %v7725_v53 = vld [vmem:[#allocation17 + $0x10] sm:$0xff]  }
 0xcac   : > { %2902 = vmatpush1.bf16.msra.mxu1 %v7694_v45  ;;  %v7727_v45 = vld [vmem:[#allocation17 + $0x48] sm:$0xff]  }
 0xcad   : > { %2903 = vmatprep.subr.bf16.mxu1 %v7702_v57  ;;  %v7729_v57 = vld [vmem:[#allocation17 + $0x8] sm:$0xff]  }
 0xcb0   : > { %2904 = vmatpush1.bf16.msra.mxu1 %v7700_v14  ;;  %v7731_v14 = vld [vmem:[#allocation17 + $0x40] sm:$0xff]  }
 0xcb1   : > { %6887 = vmatprep.subr.bf16.mxu1 %v7704_v22 }
 0xd53   : > { %v7230_v7 = vpop.f32.mrf.mxu1 }
 0xd54   : > { %v2558_v61 = vadd.f32 %v7230_v7, %v8750_v4 }
 0xd55   : > { %v2542_v18 = vpop.f32.mrf.mxu1 }
 0xd56   : > { %v2556_v50 = vadd.f32 %v2542_v18, %v8748_v3  ;;  %v9105_v63 = vadd.f32 %v6555_v44, %v2558_v61  ;;  %v7655_v3 = vld [vmem:[#allocation15 + $0xe0] ss:$16 sps:$4 sm:$0xff]  }
 0xd57   : > { %v7231_v60 = vpop.f32.mrf.mxu1  ;;  %2839 = vmatpush1.bf16.msra.mxu0 %v7655_v3 }
 0xd58   : > { %v9097_v58 = vadd.f32 %v6555_v44, %v2556_v50  ;;  %2840 = vmatprep.subr.bf16.mxu0 %v7663_v21  ;;  %v7703_v21 = vld [vmem:[#allocation17 + $0x78] sm:$0xff]  }
 0xd59   : > { %v2545_v25 = vpop.f32.mrf.mxu1 }
 0xd5a   : > { %v2557_v59 = vadd.f32 %v2545_v25, %v8754_v6  ;;  %2571 = vadd.xlane.f32.xlu1 %v9097_v58 }
 0xd5b   : > { %2841 = vmatpush1.bf16.msra.mxu0 %v7661_v23  ;;  %v7705_v23 = vld [vmem:[#allocation17 + $0x38] sm:$0xff]  }
 0xd5c   : > { %v9102_v62 = vadd.f32 %v6555_v44, %v2557_v59  ;;  %2842 = vmatprep.subr.bf16.mxu0 %v7669_v26  ;;  %v7708_v26 = vld [vmem:[#allocation17 + $0xf0] sm:$0xff]  }
 0xd5e   : > { %2573 = vadd.xlane.f32.xlu0 %v9102_v62 }
 0xd5f   : > { %2843 = vmatpush1.bf16.msra.mxu0 %v7667_v28  ;;  %v7710_v28 = vld [vmem:[#allocation17 + $0xb0] sm:$0xff]  }
 0xd60   : > { %2844 = vmatprep.subr.bf16.mxu0 %v7675_v30  ;;  %v7712_v30 = vld [vmem:[#allocation17 + $0xe8] sm:$0xff]  }
 0xd62   : > { %2575 = vadd.xlane.f32.xlu0 %v9105_v63 }
 0xd63   : > { %2845 = vmatpush1.bf16.msra.mxu0 %v7673_v33  ;;  %v7714_v33 = vld [vmem:[#allocation17 + $0xa8] sm:$0xff]  }
 0xd64   : > { %2846 = vmatprep.subr.bf16.mxu0 %v7681_v38  ;;  %v7717_v38 = vld [vmem:[#allocation17 + $0x20] sm:$0xff]  }
 0xd67   : > { %2847 = vmatpush1.bf16.msra.mxu0 %v7679_v35  ;;  %v7716_v35 = vld [vmem:[#allocation17 + $0xe0] sm:$0xff]  }
 0xd68   : > { %2848 = vmatprep.subr.bf16.mxu0 %v7687_v43  ;;  %v7720_v43 = vld [vmem:[#allocation17 + $0xd8] sm:$0xff]  }
 0xd6b   : > { %2849 = vmatpush1.bf16.msra.mxu0 %v7685_v46  ;;  %v7722_v46 = vld [vmem:[#allocation17 + $0x98] sm:$0xff]  }
 0xd6c   : > { %2850 = vmatprep.subr.bf16.mxu0 %v7693_v52  ;;  %v7724_v52 = vld [vmem:[#allocation17 + $0xd0] sm:$0xff]  }
 0xd6f   : > { %2851 = vmatpush1.bf16.msra.mxu0 %v7691_v55  ;;  %v7726_v55 = vld [vmem:[#allocation17 + $0x90] sm:$0xff]  }
 0xd70   : > { %2852 = vmatprep.subr.bf16.mxu0 %v7699_v56  ;;  %v7728_v56 = vld [vmem:[#allocation17 + $0xc8] sm:$0xff]  }
 0xd73   : > { %2853 = vmatpush1.bf16.msra.mxu0 %v7697_v19  ;;  %v7730_v19 = vld [vmem:[#allocation17 + $0x88] sm:$0xff]  }
 0xd74   : > { %6859 = vmatprep.subr.bf16.mxu0 %v7703_v21 }
 0xde3   : > { %v2572_v6 = vpop.xlane.xlu1 %2571 }
 0xde4   : > { %v2577_v42 = vmul.f32 0.0078125, %v2572_v6 }
 0xde6   : > { %v9109_v4 = vsub.f32 %v9097_v58, %v2577_v42  ;;  %v6557_v42 = vld [vmem:[%s9684_s10] ss:$0 sm:$0xff] }
 0xde7   : > { %v2574_v51 = vpop.xlane.xlu0 %2573 }
 0xde8   : > { %v2578_v2 = vmul.f32 0.0078125, %v2574_v51  ;;  %v2583_v5 = vmul.f32 %v9109_v4, %v9109_v4 }
 0xdea   : > { %v9114_v9 = vsub.f32 %v9102_v62, %v2578_v2  ;;  %2586 = vadd.xlane.f32.xlu0 %v2583_v5 }
 0xdeb   : > { %v2576_v12 = vpop.xlane.xlu0 %2575 }
 0xdec   : > { %v2579_v16 = vmul.f32 0.0078125, %v2576_v12  ;;  %v2584_v20 = vmul.f32 %v9114_v9, %v9114_v9 }
 0xdee   : > { %v9119_v40 = vsub.f32 %v9105_v63, %v2579_v16  ;;  %2588 = vadd.xlane.f32.xlu1 %v2584_v20 }
 0xdf0   : > { %v2585_v47 = vmul.f32 %v9119_v40, %v9119_v40 }
 0xdf2   : > { %2590 = vadd.xlane.f32.xlu0 %v2585_v47 }
 0xe73   : > { %v2587_v15 = vpop.xlane.xlu0 %2586 }
 0xe74   : > { %v2592_v37 = vmul.f32 0.0078125, %v2587_v15  ;;  %v7732_v15 = vld [vmem:[#allocation17 + $0xc0] sm:$0xff]  }
 0xe76   : > { %v2595_v7 = vadd.f32 1e-05, %v2592_v37  ;;  %v7733_v37 = vld [vmem:[#allocation17] sm:$0xff]  }
 0xe77   : > { %v2589_v18 = vpop.xlane.xlu1 %2588 }
 0xe78   : > { %7917 = vrsqrt.f32 %v2595_v7  ;;  %v2593_v50 = vmul.f32 0.0078125, %v2589_v18  ;;  %v7734_v7 = vld [vmem:[#allocation17 + $0x80] sm:$0xff]  }
 0xe79   : > { %v2656_v18 = vld [vmem:[%s9745_s1] sm:$0xf] }
 0xe7a   : > { %v2596_v44 = vadd.f32 1e-05, %v2593_v50  ;;  %v2672_v50 = vsub.s32 3, %v8783_v10 }
 0xe7b   : > { %v2591_v60 = vpop.xlane.xlu0 %2590 }
 0xe7c   : > { %7919 = vrsqrt.f32 %v2596_v44  ;;  %v2594_v25 = vmul.f32 0.0078125, %v2591_v60  ;;  %v2661_v44 = vrot.slane %v2656_v18, %v8797_v17  ;;  %v2669_v60 = vrot.slane %v2656_v18, %v8786_v11 }
 0xe7e   : > { %v2597_v59 = vadd.f32 1e-05, %v2594_v25  ;;  %v2665_v25 = vrot.slane %v2656_v18, %v8792_v13 }
 0xe80   : > { %7921 = vrsqrt.f32 %v2597_v59  ;;  %v2673_v59 = vrot.slane %v2656_v18, %v2672_v50 }
 0xe85   : > { %v7918_v61 = vpop.eup %7917 }
 0xe86   : > { %v2601_v3 = vmul.f32 %v7918_v61, %v9109_v4 }
 0xe88   : > { %v2610_v6 = vmul.f32 %v6556_v0, %v2601_v3 }
 0xe89   : > { %v7920_v1 = vpop.eup %7919 }
 0xe8a   : > { %v2602_v32 = vmul.f32 %v7920_v1, %v9114_v9  ;;  %v2619_v5 = vadd.f32 %v6557_v42, %v2610_v6 }
 0xe8c   : > { %v2611_v51 = vmul.f32 %v6556_v0, %v2602_v32 }
 0xe8d   : > { %v7922_v2 = vpop.eup %7921 }
 0xe8e   : > { %v2620_v12 = vadd.f32 %v6557_v42, %v2611_v51  ;;  %v2603_v16 = vmul.f32 %v7922_v2, %v9119_v40  ;;  %v7707_v40 = vld [vmem:[#allocation17 + $0x70] sm:$0xff]  }
 0xe90   : > { %v2654_v20 = vpack.c.bf16 %v2620_v12, %v2619_v5  ;;  %v2612_v47 = vmul.f32 %v6556_v0, %v2603_v16 }
 0xe92   : > { %2871 = vmatmul.mubr.bf16.vlgmr.msra.gmra.mxu0 %v2654_v20  ;;  %2922 = vmatmul.mubr.bf16.vlgmr.msra.gmra.mxu1 %v2654_v20  ;;  %v2621_v4 = vadd.f32 %v6557_v42, %v2612_v47 }
 0xe93   : > { %2880 = vmatprep.mubr.bf16.mxu0 %v8429_v36  ;;  %2931 = vmatprep.mubr.bf16.mxu1 %v8429_v36 }
 0xe94   : > { %v2655_v9 = vpack.c.bf16 %v2621_v4, %v2621_v4  ;;  %6860 = vmatpush3.bf16.msra.mxu0 %v7705_v23  ;;  %6888 = vmatpush3.bf16.msra.mxu1 %v7706_v24 }
 0xe95   : > { %6861 = vmatprep.subr.bf16.mxu0 %v7707_v40  ;;  %6889 = vmatprep.subr.bf16.mxu1 %v7708_v26 }
 0xe98   : > { %6862 = vmatpush3.bf16.msra.mxu0 %v7709_v27  ;;  %6890 = vmatpush3.bf16.msra.mxu1 %v7710_v28 }
 0xe99   : > { %6863 = vmatprep.subr.bf16.mxu0 %v7711_v29  ;;  %6891 = vmatprep.subr.bf16.mxu1 %v7712_v30 }
 0xe9a   : > { %2881 = vmatmul.mubr.bf16.gmra.mxu0 %v2655_v9  ;;  %2932 = vmatmul.mubr.bf16.gmra.mxu1 %v2655_v9 }
 0xe9c   : > { %6864 = vmatpush3.bf16.msra.mxu0 %v7713_v31  ;;  %6892 = vmatpush3.bf16.msra.mxu1 %v7714_v33 }
 0xe9d   : > { %6865 = vmatprep.subr.bf16.mxu0 %v7715_v34  ;;  %6893 = vmatprep.subr.bf16.mxu1 %v7716_v35 }
 0xea0   : > { %6866 = vmatpush3.bf16.msra.mxu0 %v7717_v38  ;;  %6894 = vmatpush3.bf16.msra.mxu1 %v7718_v39 }
 0xea1   : > { %6867 = vmatprep.subr.bf16.mxu0 %v7719_v41  ;;  %6895 = vmatprep.subr.bf16.mxu1 %v7720_v43 }
 0xea4   : > { %6868 = vmatpush3.bf16.msra.mxu0 %v7721_v49  ;;  %6896 = vmatpush3.bf16.msra.mxu1 %v7722_v46 }
 0xea5   : > { %6869 = vmatprep.subr.bf16.mxu0 %v7723_v48  ;;  %6897 = vmatprep.subr.bf16.mxu1 %v7724_v52 }
 0xea8   : > { %6870 = vmatpush3.bf16.msra.mxu0 %v7725_v53  ;;  %6898 = vmatpush3.bf16.msra.mxu1 %v7726_v55 }
 0xea9   : > { %6871 = vmatprep.subr.bf16.mxu0 %v7727_v45  ;;  %6899 = vmatprep.subr.bf16.mxu1 %v7728_v56 }
 0xeac   : > { %6872 = vmatpush3.bf16.msra.mxu0 %v7729_v57  ;;  %6900 = vmatpush3.bf16.msra.mxu1 %v7730_v19 }
 0xead   : > { %6873 = vmatprep.subr.bf16.mxu0 %v7731_v14  ;;  %6901 = vmatprep.subr.bf16.mxu1 %v7732_v15 }
 0xeb0   : > { %6874 = vmatpush3.bf16.msra.mxu0 %v7733_v37  ;;  %6902 = vmatpush3.bf16.msra.mxu1 %v7734_v7 }
 0xf52   : > { %v2872_v61 = vpop.f32.mrf.mxu0  ;;  %v2923_v3 = vpop.f32.mrf.mxu1 }
 0xf53   : > { %v9140_v0 = vadd.f32 %v2872_v61, %v2661_v44  ;;  %v9142_v1 = vadd.f32 %v2923_v3, %v2669_v60 }
 0xf54   : > { %v2874_v32 = vpop.f32.mrf.mxu0  ;;  %v2925_v6 = vpop.f32.mrf.mxu1 }
 0xf55   : > { %v6590_v42 = vmul.f32 -1.702, %v9140_v0  ;;  %v6592_v51 = vmul.f32 -1.702, %v9142_v1  ;;  %v9146_v2 = vadd.f32 %v2874_v32, %v2665_v25  ;;  %v9148_v5 = vadd.f32 %v2925_v6, %v2673_v59 }
 0xf56   : > { %v2876_v12 = vpop.f32.mrf.mxu0  ;;  %v2927_v16 = vpop.f32.mrf.mxu1 }
 0xf57   : > { %v2964_v20 = vmul.f32 1.442695, %v6590_v42  ;;  %v2968_v47 = vmul.f32 1.442695, %v6592_v51  ;;  %v6591_v4 = vmul.f32 -1.702, %v9146_v2  ;;  %v9151_v9 = vadd.f32 %v2876_v12, %v2661_v44 }
 0xf58   : > { %v6593_v21 = vmul.f32 -1.702, %v9148_v5  ;;  %v9154_v22 = vadd.f32 %v2927_v16, %v2669_v60  ;;  %v2878_v23 = vpop.f32.mrf.mxu0  ;;  %v2929_v24 = vpop.f32.mrf.mxu1 }
 0xf59   : > { %7923 = vpow2.f32 %v2964_v20  ;;  %v2966_v40 = vmul.f32 1.442695, %v6591_v4  ;;  %v6594_v26 = vmul.f32 -1.702, %v9151_v9  ;;  %v9157_v27 = vadd.f32 %v2878_v23, %v2665_v25 }
 0xf5a   : > { %7925 = vpow2.f32 %v2968_v47  ;;  %v2970_v28 = vmul.f32 1.442695, %v6593_v21  ;;  %v6596_v29 = vmul.f32 -1.702, %v9154_v22  ;;  %v9160_v30 = vadd.f32 %v2929_v24, %v2673_v59  ;;  %v2882_v31 = vpop.f32.mrf.mxu0  ;;  %v2933_v33 = vpop.f32.mrf.mxu1 }
 0xf5b   : > { %7927 = vpow2.f32 %v2966_v40  ;;  %v2972_v34 = vmul.f32 1.442695, %v6594_v26  ;;  %v6595_v35 = vmul.f32 -1.702, %v9157_v27  ;;  %v9163_v38 = vadd.f32 %v2882_v31, %v2661_v44 }
 0xf5c   : > { %7929 = vpow2.f32 %v2970_v28  ;;  %v2976_v39 = vmul.f32 1.442695, %v6596_v29  ;;  %v6597_v41 = vmul.f32 -1.702, %v9160_v30  ;;  %v9166_v43 = vadd.f32 %v2933_v33, %v2669_v60  ;;  %v2884_v49 = vpop.f32.mrf.mxu0  ;;  %v2935_v46 = vpop.f32.mrf.mxu1 }
 0xf5d   : > { %7931 = vpow2.f32 %v2972_v34  ;;  %v2974_v48 = vmul.f32 1.442695, %v6595_v35  ;;  %v6598_v52 = vmul.f32 -1.702, %v9163_v38  ;;  %v9169_v53 = vadd.f32 %v2884_v49, %v2665_v25 }
 0xf5e   : > { %7933 = vpow2.f32 %v2976_v39  ;;  %v2978_v55 = vmul.f32 1.442695, %v6597_v41  ;;  %v6600_v45 = vmul.f32 -1.702, %v9166_v43  ;;  %v9172_v56 = vadd.f32 %v2935_v46, %v2673_v59  ;;  %v2886_v57 = vpop.f32.mrf.mxu0  ;;  %v2937_v19 = vpop.f32.mrf.mxu1 }
 0xf5f   : > { %7935 = vpow2.f32 %v2974_v48  ;;  %v2980_v14 = vmul.f32 1.442695, %v6598_v52  ;;  %v6599_v15 = vmul.f32 -1.702, %v9169_v53 }
 0xf60   : > { %7937 = vpow2.f32 %v2978_v55  ;;  %v2984_v37 = vmul.f32 1.442695, %v6600_v45  ;;  %v6601_v7 = vmul.f32 -1.702, %v9172_v56  ;;  %v2887_v18 = vpop.f32.mrf.mxu0  ;;  %v2938_v44 = vpop.f32.mrf.mxu1 }
 0xf61   : > { %7939 = vpow2.f32 %v2980_v14  ;;  %v2982_v60 = vmul.f32 1.442695, %v6599_v15 }
 0xf62   : > { %7941 = vpow2.f32 %v2984_v37  ;;  %v2986_v25 = vmul.f32 1.442695, %v6601_v7 }
 0xf63   : > { %7943 = vpow2.f32 %v2982_v60 }
 0xf64   : > { %7945 = vpow2.f32 %v2986_v25 }
 0xf66   : > { %v7924_v59 = vpop.eup %7923 }
 0xf67   : > { %v7926_v61 = vpop.eup %7925  ;;  %v2988_v3 = vadd.f32 1.0, %v7924_v59 }
 0xf68   : > { %v7928_v32 = vpop.eup %7927  ;;  %v2990_v6 = vadd.f32 1.0, %v7926_v61 }
 0xf69   : > { %v7930_v42 = vpop.eup %7929  ;;  %7947 = vrcp.f32 %v2988_v3  ;;  %v2989_v51 = vadd.f32 1.0, %v7928_v32 }
 0xf6a   : > { %v7932_v12 = vpop.eup %7931  ;;  %7949 = vrcp.f32 %v2990_v6  ;;  %v2991_v16 = vadd.f32 1.0, %v7930_v42 }
 0xf6b   : > { %v7934_v20 = vpop.eup %7933  ;;  %7951 = vrcp.f32 %v2989_v51  ;;  %v2992_v47 = vadd.f32 1.0, %v7932_v12 }
 0xf6c   : > { %v7936_v4 = vpop.eup %7935  ;;  %7953 = vrcp.f32 %v2991_v16  ;;  %v2994_v21 = vadd.f32 1.0, %v7934_v20 }
 0xf6d   : > { %v7938_v23 = vpop.eup %7937  ;;  %7955 = vrcp.f32 %v2992_v47  ;;  %v2993_v24 = vadd.f32 1.0, %v7936_v4 }
 0xf6e   : > { %v7940_v40 = vpop.eup %7939  ;;  %7957 = vrcp.f32 %v2994_v21  ;;  %v2995_v26 = vadd.f32 1.0, %v7938_v23 }
 0xf6f   : > { %v7942_v28 = vpop.eup %7941  ;;  %7959 = vrcp.f32 %v2993_v24  ;;  %v2996_v29 = vadd.f32 1.0, %v7940_v40  ;;  %v6634_v40 = vld [vmem:[%s9688_s14] ss:$0 sm:$0xff] }
 0xf70   : > { %v7944_v31 = vpop.eup %7943  ;;  %7961 = vrcp.f32 %v2995_v26  ;;  %v2998_v34 = vadd.f32 1.0, %v7942_v28 }
 0xf71   : > { %v7946_v33 = vpop.eup %7945  ;;  %v2997_v35 = vadd.f32 1.0, %v7944_v31  ;;  %7963 = vrcp.f32 %v2996_v29 }
 0xf72   : > { %v2999_v39 = vadd.f32 1.0, %v7946_v33 }
 0xf73   : > { %7965 = vrcp.f32 %v2997_v35 }
 0xf74   : > { %7967 = vrcp.f32 %v2999_v39 }
 0xf75   : > { %7969 = vrcp.f32 %v2998_v34 }
 0xf76   : > { %v7948_v41 = vpop.eup %7947 }
 0xf77   : > { %v7950_v49 = vpop.eup %7949  ;;  %v3024_v7 = vmul.f32 %v7948_v41, %v9140_v0 }
 0xf78   : > { %v7952_v46 = vpop.eup %7951  ;;  %v3026_v25 = vmul.f32 %v7950_v49, %v9142_v1 }
 0xf79   : > { %v7954_v48 = vpop.eup %7953  ;;  %v3025_v14 = vmul.f32 %v7952_v46, %v9146_v2 }
 0xf7a   : > { %v7956_v52 = vpop.eup %7955  ;;  %v3027_v18 = vmul.f32 %v7954_v48, %v9148_v5 }
 0xf7b   : > { %v7958_v55 = vpop.eup %7957  ;;  %v3028_v57 = vmul.f32 %v7956_v52, %v9151_v9 }
 0xf7c   : > { %v7960_v45 = vpop.eup %7959  ;;  %v3030_v15 = vmul.f32 %v7958_v55, %v9154_v22 }
 0xf7d   : > { %v7962_v19 = vpop.eup %7961  ;;  %v3029_v37 = vmul.f32 %v7960_v45, %v9157_v27  ;;  %v3100_v3 = vpack.c.bf16 %v3028_v57, %v3024_v7 }
 0xf7e   : > { %v3031_v44 = vmul.f32 %v7962_v19, %v9160_v30  ;;  %v7964_v60 = vpop.eup %7963  ;;  %v3102_v6 = vpack.c.bf16 %v3030_v15, %v3026_v25  ;;  %v7735_v15 = vld [vmem:[#allocation8 + $0x168] ss:$12 sps:$4 sm:$0xff]  }
 0xf7f   : > { %v3101_v59 = vpack.c.bf16 %v3029_v37, %v3025_v14  ;;  %v3032_v5 = vmul.f32 %v7964_v60, %v9163_v38 }
 0xf80   : > { %v7966_v61 = vpop.eup %7965  ;;  %v3103_v9 = vpack.c.bf16 %v3031_v44, %v3027_v18 }
 0xf81   : > { %v7968_v32 = vpop.eup %7967  ;;  %v3033_v2 = vmul.f32 %v7966_v61, %v9169_v53  ;;  %3332 = vmatprep.mubr.bf16.mxu0 %v3101_v59  ;;  %v3104_v42 = vpack.c.bf16 %v3032_v5, %v3032_v5  ;;  %v7742_v5 = vld [vmem:[#allocation8 + $0x138] ss:$12 sps:$4 sm:$0xff]  }
 0xf82   : > { %v7970_v22 = vpop.eup %7969  ;;  %v3035_v27 = vmul.f32 %v7968_v32, %v9172_v56  ;;  %3380 = vmatprep.mubr.bf16.mxu1 %v3103_v9  ;;  %3333 = vmatmul.mubr.bf16.vlgmr.msra.gmra.mxu0 %v3100_v3 }
 0xf83   : > { %v3105_v0 = vpack.c.bf16 %v3033_v2, %v3033_v2  ;;  %3381 = vmatmul.mubr.bf16.vlgmr.msra.gmra.mxu1 %v3102_v6  ;;  %v3034_v1 = vmul.f32 %v7970_v22, %v9166_v43  ;;  %v7740_v6 = vld [vmem:[#allocation8 + $0x154] ss:$12 sps:$4 sm:$0xff]   ;;  %v7741_v2 = vld [vmem:[#allocation8 + $0x170] ss:$12 sps:$4 sm:$0xff]  }
 0xf84   : > { %v3107_v30 = vpack.c.bf16 %v3035_v27, %v3035_v27  ;;  %v7738_v22 = vld [vmem:[#allocation8 + $0x150] ss:$12 sps:$4 sm:$0xff]   ;;  %7232 = vmatprep.subr.bf16.mxu1 %v7741_v2 }
 0xf85   : > { %3340 = vmatprep.mubr.bf16.mxu0 %v3105_v0  ;;  %v3106_v51 = vpack.c.bf16 %v3034_v1, %v3034_v1  ;;  %7233 = vmatpush3.bf16.msra.mxu1 %v7741_v2  ;;  %v7744_v27 = vld [vmem:[#allocation8 + $0x13c] ss:$12 sps:$4 sm:$0xff]   ;;  %v7745_v0 = vld [vmem:[#allocation8 + $0x158] ss:$12 sps:$4 sm:$0xff]   ;;  %v7749_v1 = vld [vmem:[#allocation8 + $0x140] ss:$12 sps:$4 sm:$0xff]  }
 0xf86   : > { %3388 = vmatprep.mubr.bf16.mxu1 %v3107_v30  ;;  %7234 = vmatprep.subr.bf16.mxu1 %v7745_v0  ;;  %v7748_v30 = vld [vmem:[#allocation8 + $0x124] ss:$12 sps:$4 sm:$0xff]  }
 0xf89   : > { %7235 = vmatpush3.bf16.msra.mxu1 %v7745_v0 }
 0xf8a   : > { %3341 = vmatmul.mubr.bf16.gmra.mxu0 %v3104_v42  ;;  %v7746_v42 = vld [vmem:[#allocation8 + $0x120] ss:$12 sps:$4 sm:$0xff]   ;;  %7236 = vmatprep.subr.bf16.mxu1 %v7749_v1 }
 0xf8b   : > { %3389 = vmatmul.mubr.bf16.gmra.mxu1 %v3106_v51  ;;  %3677 = vmatprep.mubr.bf16.mxu0 %v8429_v36  ;;  %v7752_v51 = vld [vmem:[#allocation8 + $0x10c] ss:$12 sps:$4 sm:$0xff]  }
 0xf8d   : > { %7237 = vmatpush3.bf16.msra.mxu1 %v7749_v1 }
0x1042   : > { %v6875_v53 = vpop.f32.mrf.mxu0 }
0x1043   : > { %v6903_v12 = vpop.f32.mrf.mxu1 }
0x1044   : > { %v6876_v56 = vpop.f32.mrf.mxu0 }
0x1045   : > { %v6877_v16 = vadd.f32 %v6876_v56, %v6875_v53  ;;  %v6904_v20 = vpop.f32.mrf.mxu1  ;;  %v7753_v53 = vld [vmem:[#allocation8 + $0x128] ss:$12 sps:$4 sm:$0xff]  }
0x1046   : > { %v6905_v47 = vadd.f32 %v6904_v20, %v6903_v12  ;;  %v6878_v4 = vpop.f32.mrf.mxu0  ;;  %v7750_v12 = vld [vmem:[#allocation8 + $0x108] ss:$12 sps:$4 sm:$0xff]   ;;  %7238 = vmatprep.subr.bf16.mxu1 %v7753_v53  ;;  %v7754_v20 = vld [vmem:[#allocation8 + $0xf0] ss:$12 sps:$4 sm:$0xff]  }
0x1047   : > { %v6906_v21 = vpop.f32.mrf.mxu1  ;;  %7239 = vmatpush3.bf16.msra.mxu1 %v7753_v53  ;;  %v7756_v56 = vld [vmem:[#allocation8 + $0xf4] ss:$12 sps:$4 sm:$0xff]  }
0x1048   : > { %v3383_v38 = vadd.f32 %v6905_v47, %v6877_v16  ;;  %v6879_v23 = vpop.f32.mrf.mxu0  ;;  %v7757_v16 = vld [vmem:[#allocation8 + $0x110] ss:$12 sps:$4 sm:$0xff]  }
0x1049   : > { %v6880_v24 = vadd.f32 %v6879_v23, %v6878_v4  ;;  %v6907_v43 = vpop.f32.mrf.mxu1  ;;  %7240 = vmatprep.subr.bf16.mxu1 %v7757_v16  ;;  %v7760_v47 = vld [vmem:[#allocation8 + $0xdc] ss:$12 sps:$4 sm:$0xff]   ;;  %v7761_v4 = vld [vmem:[#allocation8 + $0xf8] ss:$12 sps:$4 sm:$0xff]   ;;  %v7765_v23 = vld [vmem:[#allocation8 + $0xe0] ss:$12 sps:$4 sm:$0xff]  }
0x104a   : > { %v3396_v26 = vadd.f32 %v3383_v38, %v9097_v58  ;;  %v6908_v28 = vadd.f32 %v6907_v43, %v6906_v21  ;;  %v6881_v29 = vpop.f32.mrf.mxu0  ;;  %v7758_v21 = vld [vmem:[#allocation8 + $0xd8] ss:$12 sps:$4 sm:$0xff]   ;;  %v7766_v43 = vld [vmem:[#allocation8 + $0xc8] ss:$12 sps:$4 sm:$0xff]  }
0x104b   : > { %v6909_v31 = vpop.f32.mrf.mxu1  ;;  %7241 = vmatpush3.bf16.msra.mxu1 %v7757_v16  ;;  %v7764_v38 = vld [vmem:[#allocation8 + $0xc4] ss:$12 sps:$4 sm:$0xff]  }
0x104c   : > { %v3386_v33 = vadd.f32 %v6908_v28, %v6880_v24  ;;  %v6882_v34 = vpop.f32.mrf.mxu0  ;;  %v9193_v35 = vadd.f32 %v6634_v40, %v3396_v26  ;;  %7242 = vmatprep.subr.bf16.mxu1 %v7761_v4  ;;  %v7762_v24 = vld [vmem:[#allocation8 + $0xc0] ss:$12 sps:$4 sm:$0xff]  }
0x104d   : > { %v6883_v39 = vadd.f32 %v6882_v34, %v6881_v29  ;;  %v6910_v41 = vpop.f32.mrf.mxu1 }
0x104e   : > { %v3397_v49 = vadd.f32 %v3386_v33, %v9102_v62  ;;  %v6911_v46 = vadd.f32 %v6910_v41, %v6909_v31  ;;  %3413 = vadd.xlane.f32.xlu1 %v9193_v35  ;;  %v6884_v48 = vpop.f32.mrf.mxu0  ;;  %v7737_v62 = vld [vmem:[#allocation8 + $0x16c] ss:$12 sps:$4 sm:$0xff]  }
0x104f   : > { %v6912_v52 = vpop.f32.mrf.mxu1  ;;  %3645 = vmatprep.subr.bf16.mxu0 %v7737_v62  ;;  %7243 = vmatpush3.bf16.msra.mxu1 %v7761_v4  ;;  %v6635_v48 = vld [vmem:[#allocation11 + $0x1] ss:$0 sm:$0xff] }
0x1050   : > { %v3391_v55 = vadd.f32 %v6911_v46, %v6883_v39  ;;  %v6885_v45 = vpop.f32.mrf.mxu0  ;;  %v9197_v57 = vadd.f32 %v6634_v40, %v3397_v49  ;;  %3646 = vmatpush1.bf16.msra.mxu0 %v7735_v15  ;;  %7244 = vmatprep.subr.bf16.mxu1 %v7765_v23 }
0x1051   : > { %v6913_v58 = vpop.f32.mrf.mxu1  ;;  %3647 = vmatprep.subr.bf16.mxu0 %v7740_v6 }
0x1052   : > { %v3398_v19 = vadd.f32 %v3391_v55, %v9105_v63  ;;  %3415 = vadd.xlane.f32.xlu0 %v9197_v57  ;;  %v6636_v58 = vld [vmem:[#allocation12 + $0x1] ss:$0 sm:$0xff] }
0x1053   : > { %7245 = vmatpush3.bf16.msra.mxu1 %v7765_v23 }
0x1054   : > { %v9201_v14 = vadd.f32 %v6634_v40, %v3398_v19  ;;  %3648 = vmatpush1.bf16.msra.mxu0 %v7738_v22  ;;  %7246 = vmatprep.subr.bf16.mxu1 %v7766_v43 }
0x1055   : > { %3649 = vmatprep.subr.bf16.mxu0 %v7744_v27 }
0x1056   : > { %3417 = vadd.xlane.f32.xlu1 %v9201_v14 }
0x1057   : > { %7247 = vmatpush3.bf16.msra.mxu1 %v7766_v43 }
0x1058   : > { %3650 = vmatpush1.bf16.msra.mxu0 %v7742_v5  ;;  %7270 = vmatprep.subr.bf16.mxu1 %v8430_v8 }
0x1059   : > { %3651 = vmatprep.subr.bf16.mxu0 %v7748_v30 }
0x105c   : > { %3652 = vmatpush1.bf16.msra.mxu0 %v7746_v42 }
0x105d   : > { %3653 = vmatprep.subr.bf16.mxu0 %v7752_v51 }
0x1060   : > { %3654 = vmatpush1.bf16.msra.mxu0 %v7750_v12 }
0x1061   : > { %3655 = vmatprep.subr.bf16.mxu0 %v7756_v56 }
0x1064   : > { %3656 = vmatpush1.bf16.msra.mxu0 %v7754_v20 }
0x1065   : > { %3657 = vmatprep.subr.bf16.mxu0 %v7760_v47 }
0x1068   : > { %3658 = vmatpush1.bf16.msra.mxu0 %v7758_v21 }
0x1069   : > { %3659 = vmatprep.subr.bf16.mxu0 %v7764_v38 }
0x106c   : > { %3660 = vmatpush1.bf16.msra.mxu0 %v7762_v24 }
0x106d   : > { %7252 = vmatprep.subr.bf16.mxu0 %v8430_v8 }
0x10d7   : > { %v3414_v37 = vpop.xlane.xlu1 %3413 }
0x10d8   : > { %v3419_v7 = vmul.f32 0.0078125, %v3414_v37 }
0x10da   : > { %v9205_v18 = vsub.f32 %v9193_v35, %v3419_v7 }
0x10db   : > { %v3416_v44 = vpop.xlane.xlu0 %3415 }
0x10dc   : > { %v3420_v60 = vmul.f32 0.0078125, %v3416_v44  ;;  %v3425_v63 = vmul.f32 %v9205_v18, %v9205_v18 }
0x10de   : > { %v9210_v25 = vsub.f32 %v9197_v57, %v3420_v60  ;;  %3428 = vadd.xlane.f32.xlu0 %v3425_v63 }
0x10df   : > { %v3418_v59 = vpop.xlane.xlu1 %3417 }
0x10e0   : > { %v3421_v61 = vmul.f32 0.0078125, %v3418_v59  ;;  %v3426_v3 = vmul.f32 %v9210_v25, %v9210_v25 }
0x10e2   : > { %v9215_v9 = vsub.f32 %v9201_v14, %v3421_v61  ;;  %3430 = vadd.xlane.f32.xlu1 %v3426_v3 }
0x10e4   : > { %v3427_v32 = vmul.f32 %v9215_v9, %v9215_v9 }
0x10e6   : > { %3432 = vadd.xlane.f32.xlu0 %v3427_v32 }
0x1167   : > { %v3429_v40 = vpop.xlane.xlu0 %3428 }
0x1168   : > { %v3434_v26 = vmul.f32 0.0078125, %v3429_v40 }
0x116a   : > { %v3437_v28 = vadd.f32 1e-05, %v3434_v26 }
0x116b   : > { %v3431_v29 = vpop.xlane.xlu1 %3430 }
0x116c   : > { %7971 = vrsqrt.f32 %v3437_v28  ;;  %v3435_v31 = vmul.f32 0.0078125, %v3431_v29 }
0x116e   : > { %v3438_v33 = vadd.f32 1e-05, %v3435_v31 }
0x116f   : > { %v3433_v34 = vpop.xlane.xlu0 %3432 }
0x1170   : > { %7973 = vrsqrt.f32 %v3438_v33  ;;  %v3436_v39 = vmul.f32 0.0078125, %v3433_v34 }
0x1172   : > { %v3439_v41 = vadd.f32 1e-05, %v3436_v39 }
0x1174   : > { %7975 = vrsqrt.f32 %v3439_v41 }
0x1179   : > { %v7972_v49 = vpop.eup %7971 }
0x117a   : > { %v3443_v46 = vmul.f32 %v7972_v49, %v9205_v18 }
0x117c   : > { %v3452_v45 = vmul.f32 %v6635_v48, %v3443_v46 }
0x117d   : > { %v7974_v52 = vpop.eup %7973 }
0x117e   : > { %v3444_v55 = vmul.f32 %v7974_v52, %v9210_v25  ;;  %v3461_v37 = vadd.f32 %v6636_v58, %v3452_v45  ;;  %v6637_v25 = vld [vmem:[%s9678_s4 + $0x3] sm:$0x7] }
0x117f   : > { %v3509_v59 = vrot.slane %v6637_v25, %v8792_v13  ;;  %v3513_v3 = vrot.slane %v6637_v25, %v8786_v11  ;;  %v3505_v0 = vrot.slane %v6637_v25, %v8797_v17 }
0x1180   : > { %v3453_v19 = vmul.f32 %v6635_v48, %v3444_v55 }
0x1181   : > { %v7976_v15 = vpop.eup %7975 }
0x1182   : > { %v3445_v62 = vmul.f32 %v7976_v15, %v9215_v9  ;;  %v3462_v7 = vadd.f32 %v6636_v58, %v3453_v19 }
0x1184   : > { %v3497_v44 = vpack.c.bf16 %v3462_v7, %v3461_v37  ;;  %v3454_v60 = vmul.f32 %v6635_v48, %v3445_v62 }
0x1186   : > { %3678 = vmatmul.mubr.bf16.vlgmr.msra.gmra.mxu0 %v3497_v44  ;;  %7248 = vmatprep.mubr.bf16.mxu1 %v3497_v44  ;;  %v3463_v63 = vadd.f32 %v6636_v58, %v3454_v60 }
0x1187   : > { %3687 = vmatprep.mubr.bf16.mxu0 %v8429_v36 }
0x1188   : > { %v3498_v18 = vpack.c.bf16 %v3463_v63, %v3463_v63 }
0x118a   : > { %7249 = vmatmul.mubr.bf16.vlgmr.msra.gmra.mxu1 %v3498_v18 }
0x118b   : > { %7272 = vmatprep.mubr.msk.bf16.mxu1 %vm8431_vm0, %v8430_v8 }
0x118e   : > { %3688 = vmatmul.mubr.bf16.gmra.mxu0 %v3498_v18 }
0x118f   : > { %7254 = vmatprep.mubr.msk.bf16.mxu0 %vm8431_vm0, %v8430_v8 }
0x1246   : > { %v3679_v61 = vpop.f32.mrf.mxu0 }
0x1247   : > { %v3680_v16 = vadd.f32 %v3679_v61, %v3505_v0 }
0x1248   : > { %v3681_v9 = vpop.f32.mrf.mxu0 }
0x1249   : > { %v3682_v32 = vadd.f32 %v3681_v9, %v3509_v59  ;;  %v9249_v38 = vpack.c.bf16 %v3680_v16, %v3680_v16 }
0x124a   : > { %v3683_v6 = vpop.f32.mrf.mxu0  ;;  %v7250_v2 = vpop.f32.mrf.mxu1 }
0x124b   : > { %v9234_v22 = vpack.c.bf16 %v3682_v32, %v3682_v32  ;;  %v9236_v27 = vadd.f32 %v7250_v2, %v3513_v3  ;;  %v3684_v40 = vadd.f32 %v3683_v6, %v3505_v0 }
0x124c   : > { %v3685_v5 = vpop.f32.mrf.mxu0  ;;  %v3730_v30 = vpop.f32.mrf.mxu1 }
0x124d   : > { %v3731_v1 = vadd.f32 %v3730_v30, %v3513_v3  ;;  %v3686_v42 = vadd.f32 %v3685_v5, %v3509_v59  ;;  %v3754_v12 = vsel %vm1052_vm1, %v9234_v22, 0  ;;  %v9260_v29 = vpack.c.bf16 %v3684_v40, %v3684_v40 }
0x124e   : > { %v3689_v51 = vpop.f32.mrf.mxu0  ;;  %v7251_v53 = vpop.f32.mrf.mxu1  ;;  %7253 = vmatpush3.bf16.xpose.msra.mxu0 %v3754_v12 }
0x124f   : > { %v9241_v56 = vpack.c.bf16 %v3731_v1, %v3731_v1  ;;  %7258 = vmatprep.subr.bf16.mxu0 %v8430_v8  ;;  %v9246_v4 = vpack.c.bf16 %v3686_v42, %v3686_v42  ;;  %v3690_v34 = vadd.f32 %v3689_v51, %v3505_v0 }
0x1250   : > { %v3691_v20 = vpop.f32.mrf.mxu0  ;;  %v3733_v28 = vpop.f32.mrf.mxu1 }
0x1251   : > { %v3937_v47 = vsel %vm1242_vm2, %v9241_v56, 0  ;;  %v3692_v24 = vadd.f32 %v3691_v20, %v3509_v59  ;;  %v3800_v43 = vsel %vm1052_vm1, %v9246_v4, 0  ;;  %v3734_v31 = vadd.f32 %v3733_v28, %v3513_v3 }
0x1252   : > { %v3693_v21 = vpop.f32.mrf.mxu0  ;;  %7271 = vmatpush3.bf16.msra.mxu1 %v3937_v47  ;;  %v9271_v41 = vpack.c.bf16 %v3690_v34, %v3690_v34 }
0x1253   : > { %7282 = vmatprep.subr.bf16.mxu1 %v8430_v8  ;;  %v9258_v26 = vpack.c.bf16 %v3692_v24, %v3692_v24  ;;  %v9269_v39 = vpack.c.bf16 %v3734_v31, %v3734_v31  ;;  %v9306_v31 = vpack.c.bf16 %v9236_v27, %v9236_v27 }
0x1254   : > { %v3694_v23 = vpop.f32.mrf.mxu0 }
0x1255   : > { %7255 = vmatmul.mubr.msk.bf16.vlgmr.msra.gmra.mxu0 %vm1052_vm1, %v9249_v38  ;;  %v3846_v33 = vsel %vm1052_vm1, %v9258_v26, 0  ;;  %v3983_v49 = vsel %vm1242_vm2, %v9269_v39, 0 }
0x1256   : > { %7259 = vmatpush3.bf16.xpose.msra.mxu0 %v3800_v43  ;;  %7260 = vmatprep.mubr.msk.bf16.mxu0 %vm8431_vm0, %v8430_v8 }
0x1257   : > { %7264 = vmatprep.subr.bf16.mxu0 %v8430_v8 }
0x125d   : > { %7261 = vmatmul.mubr.msk.bf16.vlgmr.msra.gmra.mxu0 %vm1052_vm1, %v9260_v29 }
0x125e   : > { %7265 = vmatpush3.bf16.xpose.msra.mxu0 %v3846_v33  ;;  %7266 = vmatprep.mubr.msk.bf16.mxu0 %vm8431_vm0, %v8430_v8 }
0x125f   : > { %7276 = vmatprep.subr.bf16.mxu0 %v8430_v8 }
0x1265   : > { %7267 = vmatmul.mubr.msk.bf16.vlgmr.msra.gmra.mxu0 %vm1052_vm1, %v9271_v41 }
0x1266   : > { %7277 = vmatpush3.bf16.msra.mxu0 %v3983_v49  ;;  %7278 = vmatprep.mubr.msk.bf16.mxu0 %vm8431_vm0, %v8430_v8 }
0x1267   : > { %7288 = vmatprep.subr.bf16.mxu0 %v8430_v8 }
0x1315   : > { %v3790_v46 = vpop.f32.mrf.mxu0 }
0x1316   : > { %v3888_v48 = vmul.f32 0.17677669, %v3790_v46  ;;  %v4029_v46 = vsel %vm1242_vm2, %v9306_v31, 0 }
0x1317   : > { %v7256_v52 = vpop.f32.mrf.mxu0 }
0x1318   : > { %v3891_v55 = vsel %vm8846_vm3, %v3888_v48, -1e+30 }
0x1319   : > { %v3793_v45 = vpop.f32.mrf.mxu0  ;;  %v3894_v58 = vsel %vm1199_vm4, %v3891_v55, -inf }
0x131a   : > { %3895 = vmax.xlane.f32.xlu1 %v3894_v58 }
0x131b   : > { %v7257_v19 = vpop.f32.mrf.mxu0 }
0x131d   : > { %v3836_v15 = vpop.f32.mrf.mxu0 }
0x131e   : > { %v3889_v62 = vmul.f32 0.17677669, %v3836_v15 }
0x131f   : > { %v7262_v37 = vpop.f32.mrf.mxu0 }
0x1320   : > { %v3892_v7 = vsel %vm8846_vm3, %v3889_v62, -1e+30 }
0x1321   : > { %v3839_v44 = vpop.f32.mrf.mxu0  ;;  %v3897_v60 = vsel %vm1199_vm4, %v3892_v7, -inf }
0x1322   : > { %3898 = vmax.xlane.f32.xlu0 %v3897_v60 }
0x1323   : > { %v7263_v63 = vpop.f32.mrf.mxu0 }
0x1325   : > { %v3882_v18 = vpop.f32.mrf.mxu0 }
0x1326   : > { %v3890_v25 = vmul.f32 0.17677669, %v3882_v18 }
0x1327   : > { %v7268_v59 = vpop.f32.mrf.mxu0 }
0x1328   : > { %v3893_v61 = vsel %vm8846_vm3, %v3890_v25, -1e+30 }
0x1329   : > { %v3885_v3 = vpop.f32.mrf.mxu0  ;;  %v3900_v9 = vsel %vm1199_vm4, %v3893_v61, -inf }
0x132a   : > { %3901 = vmax.xlane.f32.xlu1 %v3900_v9 }
0x132b   : > { %v7269_v32 = vpop.f32.mrf.mxu0 }
0x133b   : > { %4075 = vrot.lane.b32.xlu1 %v9234_v22, %s8432_s28 }
0x13a3   : > { %v3896_v6 = vpop.xlane.xlu1 %3895 }
0x13a4   : > { %v3903_v2 = vsub.f32 %v3891_v55, %v3896_v6 }
0x13a6   : > { %v3906_v0 = vmul.f32 1.442695, %v3903_v2 }
0x13a8   : > { %7977 = vpow2.f32 %v3906_v0 }
0x13ab   : > { %v3899_v5 = vpop.xlane.xlu0 %3898 }
0x13ac   : > { %v3904_v30 = vsub.f32 %v3892_v7, %v3899_v5 }
0x13ae   : > { %v3908_v1 = vmul.f32 1.442695, %v3904_v30 }
0x13b0   : > { %7979 = vpow2.f32 %v3908_v1 }
0x13b3   : > { %v3902_v42 = vpop.xlane.xlu1 %3901 }
0x13b4   : > { %v3905_v51 = vsub.f32 %v3893_v61, %v3902_v42 }
0x13b5   : > { %v7978_v53 = vpop.eup %7977 }
0x13b6   : > { %v3910_v12 = vmul.f32 1.442695, %v3905_v51  ;;  %v3912_v16 = vsel %vm1199_vm4, %v7978_v53, 0.0 }
0x13b7   : > { %3913 = vadd.xlane.f32.xlu0 %v3912_v16  ;;  %v4076_v43 = vpop.permute.xlu1 %4075 }
0x13b8   : > { %7981 = vpow2.f32 %v3910_v12  ;;  %v4081_v45 = vsel %vm1052_vm1, %v4076_v43, 0 }
0x13bd   : > { %v7980_v20 = vpop.eup %7979 }
0x13be   : > { %v3915_v47 = vsel %vm1199_vm4, %v7980_v20, 0.0 }
0x13bf   : > { %3916 = vadd.xlane.f32.xlu1 %v3915_v47 }
0x13c5   : > { %v7982_v21 = vpop.eup %7981 }
0x13c6   : > { %v3918_v23 = vsel %vm1199_vm4, %v7982_v21, 0.0 }
0x13c7   : > { %3919 = vadd.xlane.f32.xlu0 %v3918_v23 }
0x13d0   : > { %4072 = vrot.lane.b32.xlu1 %v9249_v38, %s8432_s28 }
0x13d4   : > { %4179 = vrot.lane.b32.xlu1 %v9258_v26, %s8432_s28 }
0x13d8   : > { %4124 = vrot.lane.b32.xlu1 %v9260_v29, %s8432_s28 }
0x13dd   : > { %4127 = vrot.lane.b32.xlu0 %v9246_v4, %s8432_s28 }
0x13e1   : > { %4176 = vrot.lane.b32.xlu0 %v9271_v41, %s8432_s28 }
0x1440   : > { %v3914_v24 = vpop.xlane.xlu0 %3913 }
0x1441   : > { %7983 = vrcp.f32 %v3914_v24 }
0x1448   : > { %v3917_v40 = vpop.xlane.xlu1 %3916 }
0x1449   : > { %7985 = vrcp.f32 %v3917_v40 }
0x144c   : > { %v4073_v27 = vpop.permute.xlu1 %4072 }
0x144e   : > { %v7984_v28 = vpop.eup %7983 }
0x144f   : > { %v3924_v33 = vmul.f32 %v7984_v28, %v7978_v53 }
0x1450   : > { %v3920_v34 = vpop.xlane.xlu0 %3919  ;;  %v4180_v15 = vpop.permute.xlu1 %4179 }
0x1451   : > { %7987 = vrcp.f32 %v3920_v34  ;;  %v3927_v49 = vpack.c.bf16 %v3924_v33, %v3924_v33  ;;  %v4185_v7 = vsel %vm1052_vm1, %v4180_v15, 0 }
0x1453   : > { %7273 = vmatmul.mubr.msk.bf16.vlgmr.msra.gmra.mxu1 %vm1199_vm4, %v3927_v49 }
0x1454   : > { %7283 = vmatpush3.bf16.msra.mxu1 %v4029_v46  ;;  %7284 = vmatprep.mubr.msk.bf16.mxu1 %vm8431_vm0, %v8430_v8  ;;  %v4128_v62 = vpop.permute.xlu0 %4127  ;;  %v4125_v60 = vpop.permute.xlu1 %4124 }
0x1455   : > { %7294 = vmatprep.subr.bf16.mxu1 %v8430_v8  ;;  %v4133_v44 = vsel %vm1052_vm1, %v4128_v62, 0 }
0x1456   : > { %v7986_v48 = vpop.eup %7985 }
0x1457   : > { %v3925_v52 = vmul.f32 %v7986_v48, %v7980_v20 }
0x1458   : > { %v4177_v63 = vpop.permute.xlu0 %4176 }
0x1459   : > { %v3928_v55 = vpack.c.bf16 %v3925_v52, %v3925_v52 }
0x145b   : > { %7279 = vmatmul.mubr.msk.bf16.vlgmr.msra.gmra.mxu0 %vm1199_vm4, %v3928_v55 }
0x145c   : > { %7289 = vmatpush3.bf16.xpose.msra.mxu0 %v4081_v45  ;;  %7290 = vmatprep.mubr.msk.bf16.mxu0 %vm8431_vm0, %v8430_v8 }
0x145d   : > { %7300 = vmatprep.subr.bf16.mxu0 %v8430_v8 }
0x145e   : > { %v7988_v58 = vpop.eup %7987 }
0x145f   : > { %v3926_v19 = vmul.f32 %v7988_v58, %v7982_v21 }
0x1461   : > { %v3929_v37 = vpack.c.bf16 %v3926_v19, %v3926_v19 }
0x1463   : > { %7285 = vmatmul.mubr.msk.bf16.vlgmr.msra.gmra.mxu1 %vm1199_vm4, %v3929_v37  ;;  %7291 = vmatmul.mubr.msk.bf16.vlgmr.msra.gmra.mxu0 %vm1052_vm1, %v4073_v27 }
0x1464   : > { %7295 = vmatpush3.bf16.xpose.msra.mxu1 %v4133_v44  ;;  %7301 = vmatpush3.bf16.xpose.msra.mxu0 %v4185_v7 }
0x1465   : > { %7296 = vmatprep.mubr.msk.bf16.mxu1 %vm8431_vm0, %v8430_v8  ;;  %7302 = vmatprep.mubr.msk.bf16.mxu0 %vm8431_vm0, %v8430_v8 }
0x1466   : > { %7306 = vmatprep.subr.bf16.mxu1 %v8430_v8  ;;  %7312 = vmatprep.subr.bf16.mxu0 %v8430_v8 }
0x146b   : > { %7297 = vmatmul.mubr.msk.bf16.vlgmr.msra.gmra.mxu1 %vm1052_vm1, %v4125_v60  ;;  %7303 = vmatmul.mubr.msk.bf16.vlgmr.msra.gmra.mxu0 %vm1052_vm1, %v4177_v63 }
0x146c   : > { %7308 = vmatprep.mubr.msk.bf16.mxu1 %vm8431_vm0, %v8430_v8  ;;  %7314 = vmatprep.mubr.msk.bf16.mxu0 %vm8431_vm0, %v8430_v8 }
0x1513   : > { %v9335_v18 = vpop.f32.mrf.mxu1 }
0x1515   : > { %v7274_v25 = vpop.f32.mrf.mxu1 }
0x1517   : > { %v3976_v59 = vpop.f32.mrf.mxu1 }
0x1519   : > { %v7275_v61 = vpop.f32.mrf.mxu1 }
0x151b   : > { %v9337_v3 = vpop.f32.mrf.mxu0 }
0x151d   : > { %v7280_v9 = vpop.f32.mrf.mxu0 }
0x151f   : > { %v4022_v32 = vpop.f32.mrf.mxu0 }
0x1521   : > { %v7281_v6 = vpop.f32.mrf.mxu0 }
0x1523   : > { %v9339_v2 = vpop.f32.mrf.mxu1  ;;  %v4117_v0 = vpop.f32.mrf.mxu0 }
0x1524   : > { %v4227_v5 = vmul.f32 0.17677669, %v4117_v0 }
0x1525   : > { %v7286_v30 = vpop.f32.mrf.mxu1  ;;  %v7292_v1 = vpop.f32.mrf.mxu0 }
0x1526   : > { %v4230_v42 = vsel %vm8846_vm3, %v4227_v5, -1e+30 }
0x1527   : > { %v4068_v51 = vpop.f32.mrf.mxu1  ;;  %v4120_v53 = vpop.f32.mrf.mxu0  ;;  %v4233_v12 = vsel %vm1199_vm4, %v4230_v42, -inf }
0x1528   : > { %4234 = vmax.xlane.f32.xlu1 %v4233_v12 }
0x1529   : > { %v7287_v16 = vpop.f32.mrf.mxu1  ;;  %v7293_v20 = vpop.f32.mrf.mxu0 }
0x152b   : > { %v4169_v47 = vpop.f32.mrf.mxu1  ;;  %v4221_v21 = vpop.f32.mrf.mxu0 }
0x152c   : > { %v4228_v23 = vmul.f32 0.17677669, %v4169_v47  ;;  %v4229_v24 = vmul.f32 0.17677669, %v4221_v21 }
0x152d   : > { %v7298_v43 = vpop.f32.mrf.mxu1  ;;  %v7304_v40 = vpop.f32.mrf.mxu0 }
0x152e   : > { %v4231_v28 = vsel %vm8846_vm3, %v4228_v23, -1e+30  ;;  %v4232_v46 = vsel %vm8846_vm3, %v4229_v24, -1e+30 }
0x152f   : > { %v4172_v33 = vpop.f32.mrf.mxu1  ;;  %v4224_v34 = vpop.f32.mrf.mxu0  ;;  %v4236_v49 = vsel %vm1199_vm4, %v4231_v28, -inf  ;;  %v4239_v55 = vsel %vm1199_vm4, %v4232_v46, -inf }
0x1530   : > { %4237 = vmax.xlane.f32.xlu0 %v4236_v49 }
0x1531   : > { %v7299_v48 = vpop.f32.mrf.mxu1  ;;  %v7305_v52 = vpop.f32.mrf.mxu0 }
0x1534   : > { %4240 = vmax.xlane.f32.xlu0 %v4239_v55 }
0x1539   : > { %4270 = vrot.lane.b32.xlu1 %v9241_v56, %s8432_s28 }
0x15b1   : > { %v4235_v27 = vpop.xlane.xlu1 %4234 }
0x15b2   : > { %v4242_v45 = vsub.f32 %v4230_v42, %v4235_v27 }
0x15b4   : > { %v4245_v58 = vmul.f32 1.442695, %v4242_v45 }
0x15b5   : > { %v4271_v19 = vpop.permute.xlu1 %4270 }
0x15b6   : > { %7989 = vpow2.f32 %v4245_v58  ;;  %v4276_v15 = vsel %vm1242_vm2, %v4271_v19, 0 }
0x15b7   : > { %7307 = vmatpush3.bf16.msra.mxu1 %v4276_v15 }
0x15b8   : > { %7318 = vmatprep.subr.bf16.mxu1 %v8430_v8 }
0x15b9   : > { %v4238_v62 = vpop.xlane.xlu0 %4237 }
0x15ba   : > { %v4243_v37 = vsub.f32 %v4231_v28, %v4238_v62 }
0x15bc   : > { %v4247_v7 = vmul.f32 1.442695, %v4243_v37 }
0x15bd   : > { %v4241_v44 = vpop.xlane.xlu0 %4240 }
0x15be   : > { %7991 = vpow2.f32 %v4247_v7  ;;  %v4244_v60 = vsub.f32 %v4232_v46, %v4241_v44 }
0x15c0   : > { %v4249_v63 = vmul.f32 1.442695, %v4244_v60 }
0x15c2   : > { %7993 = vpow2.f32 %v4249_v63 }
0x15c3   : > { %v7990_v25 = vpop.eup %7989 }
0x15c4   : > { %v4251_v59 = vsel %vm1199_vm4, %v7990_v25, 0.0 }
0x15c5   : > { %4252 = vadd.xlane.f32.xlu0 %v4251_v59 }
0x15cb   : > { %v7992_v61 = vpop.eup %7991 }
0x15cc   : > { %v4254_v9 = vsel %vm1199_vm4, %v7992_v61, 0.0 }
0x15cd   : > { %4255 = vadd.xlane.f32.xlu1 %v4254_v9 }
0x15cf   : > { %v7994_v32 = vpop.eup %7993 }
0x15d0   : > { %v4257_v6 = vsel %vm1199_vm4, %v7994_v32, 0.0 }
0x15d1   : > { %4258 = vadd.xlane.f32.xlu0 %v4257_v6 }
0x15de   : > { %4368 = vrot.lane.b32.xlu1 %v9306_v31, %s8432_s28 }
0x15e2   : > { %4418 = vrot.lane.b32.xlu1 %v9234_v22, %s8433_s30 }
0x15e6   : > { %4468 = vrot.lane.b32.xlu1 %v9246_v4, %s8433_s30 }
0x15e7   : > { %4319 = vrot.lane.b32.xlu0 %v9269_v39, %s8432_s28 }
0x15ea   : > { %4518 = vrot.lane.b32.xlu1 %v9258_v26, %s8433_s30 }
0x15eb   : > { %4416 = vrot.lane.b32.xlu0 %v9249_v38, %s8433_s30 }
0x15ee   : > { %4516 = vrot.lane.b32.xlu1 %v9271_v41, %s8433_s30 }
0x15ef   : > { %4466 = vrot.lane.b32.xlu0 %v9260_v29, %s8433_s30 }
0x164e   : > { %v4253_v0 = vpop.xlane.xlu0 %4252 }
0x164f   : > { %7995 = vrcp.f32 %v4253_v0 }
0x1656   : > { %v4256_v5 = vpop.xlane.xlu1 %4255 }
0x1657   : > { %7997 = vrcp.f32 %v4256_v5 }
0x165a   : > { %v4259_v30 = vpop.xlane.xlu0 %4258  ;;  %v4369_v42 = vpop.permute.xlu1 %4368 }
0x165b   : > { %7999 = vrcp.f32 %v4259_v30  ;;  %v4374_v20 = vsel %vm1242_vm2, %v4369_v42, 0 }
0x165c   : > { %v7996_v1 = vpop.eup %7995 }
0x165d   : > { %v4263_v51 = vmul.f32 %v7996_v1, %v7990_v25 }
0x165e   : > { %v4320_v53 = vpop.permute.xlu0 %4319  ;;  %v4419_v47 = vpop.permute.xlu1 %4418 }
0x165f   : > { %v4325_v12 = vsel %vm1242_vm2, %v4320_v53, 0  ;;  %v4266_v16 = vpack.c.bf16 %v4263_v51, %v4263_v51  ;;  %v4424_v28 = vsel %vm1052_vm1, %v4419_v47, 0 }
0x1660   : > { %7313 = vmatpush3.bf16.msra.mxu0 %v4325_v12 }
0x1661   : > { %7309 = vmatmul.mubr.msk.bf16.vlgmr.msra.gmra.mxu1 %vm1199_vm4, %v4266_v16  ;;  %7324 = vmatprep.subr.bf16.mxu0 %v8430_v8 }
0x1662   : > { %7319 = vmatpush3.bf16.msra.mxu1 %v4374_v20  ;;  %7320 = vmatprep.mubr.msk.bf16.mxu1 %vm8431_vm0, %v8430_v8  ;;  %v4469_v40 = vpop.permute.xlu1 %4468  ;;  %v4417_v46 = vpop.permute.xlu0 %4416 }
0x1663   : > { %7330 = vmatprep.subr.bf16.mxu1 %v8430_v8  ;;  %v4474_v49 = vsel %vm1052_vm1, %v4469_v40, 0 }
0x1664   : > { %v7998_v21 = vpop.eup %7997 }
0x1665   : > { %v4264_v23 = vmul.f32 %v7998_v21, %v7992_v61 }
0x1666   : > { %v4519_v48 = vpop.permute.xlu1 %4518  ;;  %v4467_v55 = vpop.permute.xlu0 %4466 }
0x1667   : > { %v4267_v24 = vpack.c.bf16 %v4264_v23, %v4264_v23  ;;  %v4524_v52 = vsel %vm1052_vm1, %v4519_v48, 0 }
0x1668   : > { %v8000_v43 = vpop.eup %7999 }
0x1669   : > { %7315 = vmatmul.mubr.msk.bf16.vlgmr.msra.gmra.mxu0 %vm1199_vm4, %v4267_v24  ;;  %v4265_v33 = vmul.f32 %v8000_v43, %v7994_v32 }
0x166a   : > { %7325 = vmatpush3.bf16.xpose.msra.mxu0 %v4424_v28  ;;  %7326 = vmatprep.mubr.msk.bf16.mxu0 %vm8431_vm0, %v8430_v8  ;;  %v4517_v27 = vpop.permute.xlu1 %4516 }
0x166b   : > { %v4268_v34 = vpack.c.bf16 %v4265_v33, %v4265_v33  ;;  %7336 = vmatprep.subr.bf16.mxu0 %v8430_v8 }
0x166d   : > { %7321 = vmatmul.mubr.msk.bf16.vlgmr.msra.gmra.mxu1 %vm1199_vm4, %v4268_v34 }
0x166e   : > { %7331 = vmatpush3.bf16.xpose.msra.mxu1 %v4474_v49  ;;  %7332 = vmatprep.mubr.msk.bf16.mxu1 %vm8431_vm0, %v8430_v8 }
0x166f   : > { %7342 = vmatprep.subr.bf16.mxu1 %v8430_v8 }
0x1671   : > { %7327 = vmatmul.mubr.msk.bf16.vlgmr.msra.gmra.mxu0 %vm1052_vm1, %v4417_v46 }
0x1672   : > { %7337 = vmatpush3.bf16.xpose.msra.mxu0 %v4524_v52  ;;  %7338 = vmatprep.mubr.msk.bf16.mxu0 %vm8431_vm0, %v8430_v8 }
0x1673   : > { %7348 = vmatprep.subr.bf16.mxu0 %v8430_v8 }
0x1675   : > { %7333 = vmatmul.mubr.msk.bf16.vlgmr.msra.gmra.mxu1 %vm1052_vm1, %v4467_v55 }
0x1676   : > { %7344 = vmatprep.mubr.msk.bf16.mxu1 %vm8431_vm0, %v8430_v8 }
0x1679   : > { %7339 = vmatmul.mubr.msk.bf16.vlgmr.msra.gmra.mxu0 %vm1052_vm1, %v4517_v27 }
0x167a   : > { %7350 = vmatprep.mubr.msk.bf16.mxu0 %vm8431_vm0, %v8430_v8 }
0x1721   : > { %v9401_v45 = vpop.f32.mrf.mxu1 }
0x1723   : > { %v7310_v58 = vpop.f32.mrf.mxu1 }
0x1725   : > { %v4315_v19 = vpop.f32.mrf.mxu1 }
0x1727   : > { %v7311_v15 = vpop.f32.mrf.mxu1 }
0x1729   : > { %v9403_v62 = vpop.f32.mrf.mxu0 }
0x172a   : > { %v7600_v37 = vpack.i.bf16 %v9403_v62, %v9401_v45 }
0x172b   : > { %v7316_v7 = vpop.f32.mrf.mxu0 }
0x172d   : > { %v4364_v44 = vpop.f32.mrf.mxu0  ;;  %v9407_v60 = vpop.f32.mrf.mxu1 }
0x172f   : > { %v7317_v63 = vpop.f32.mrf.mxu0  ;;  %v7322_v25 = vpop.f32.mrf.mxu1 }
0x1731   : > { %v4413_v59 = vpop.f32.mrf.mxu1  ;;  %v4460_v61 = vpop.f32.mrf.mxu0 }
0x1732   : > { %v4566_v9 = vmul.f32 0.17677669, %v4460_v61 }
0x1733   : > { %v7323_v32 = vpop.f32.mrf.mxu1  ;;  %v7328_v6 = vpop.f32.mrf.mxu0 }
0x1734   : > { %v4569_v0 = vsel %vm8846_vm3, %v4566_v9, -1e+30 }
0x1735   : > { %v4463_v5 = vpop.f32.mrf.mxu0  ;;  %v4510_v30 = vpop.f32.mrf.mxu1  ;;  %v4572_v1 = vsel %vm1199_vm4, %v4569_v0, -inf }
0x1736   : > { %v4567_v42 = vmul.f32 0.17677669, %v4510_v30  ;;  %4573 = vmax.xlane.f32.xlu0 %v4572_v1 }
0x1737   : > { %v7329_v51 = vpop.f32.mrf.mxu0  ;;  %v7334_v53 = vpop.f32.mrf.mxu1 }
0x1738   : > { %v4570_v12 = vsel %vm8846_vm3, %v4567_v42, -1e+30 }
0x1739   : > { %v4513_v16 = vpop.f32.mrf.mxu1  ;;  %v4560_v20 = vpop.f32.mrf.mxu0  ;;  %v4575_v47 = vsel %vm1199_vm4, %v4570_v12, -inf }
0x173a   : > { %v4568_v21 = vmul.f32 0.17677669, %v4560_v20  ;;  %4576 = vmax.xlane.f32.xlu1 %v4575_v47 }
0x173b   : > { %v7335_v23 = vpop.f32.mrf.mxu1  ;;  %v7340_v24 = vpop.f32.mrf.mxu0 }
0x173c   : > { %v4571_v43 = vsel %vm8846_vm3, %v4568_v21, -1e+30 }
0x173d   : > { %v4563_v40 = vpop.f32.mrf.mxu0  ;;  %v4578_v28 = vsel %vm1199_vm4, %v4571_v43, -inf }
0x173e   : > { %4579 = vmax.xlane.f32.xlu0 %v4578_v28 }
0x173f   : > { %v7341_v33 = vpop.f32.mrf.mxu0 }
0x174b   : > { %4656 = vrot.lane.b32.xlu1 %v9269_v39, %s8433_s30 }
0x174f   : > { %4754 = vrot.lane.b32.xlu1 %v9234_v22, %s8434_s27 }
0x1753   : > { %4704 = vrot.lane.b32.xlu1 %v9306_v31, %s8433_s30 }
0x17bf   : > { %v4574_v34 = vpop.xlane.xlu0 %4573 }
0x17c0   : > { %v4581_v49 = vsub.f32 %v4569_v0, %v4574_v34 }
0x17c2   : > { %v4584_v46 = vmul.f32 1.442695, %v4581_v49 }
0x17c3   : > { %v4577_v48 = vpop.xlane.xlu1 %4576 }
0x17c4   : > { %8001 = vpow2.f32 %v4584_v46  ;;  %v4582_v52 = vsub.f32 %v4570_v12, %v4577_v48 }
0x17c6   : > { %v4586_v55 = vmul.f32 1.442695, %v4582_v52 }
0x17c7   : > { %v4657_v27 = vpop.permute.xlu1 %4656  ;;  %v4580_v58 = vpop.xlane.xlu0 %4579 }
0x17c8   : > { %8003 = vpow2.f32 %v4586_v55  ;;  %v4662_v19 = vsel %vm1242_vm2, %v4657_v27, 0  ;;  %v4583_v15 = vsub.f32 %v4571_v43, %v4580_v58 }
0x17c9   : > { %7349 = vmatpush3.bf16.msra.mxu0 %v4662_v19 }
0x17ca   : > { %v4588_v7 = vmul.f32 1.442695, %v4583_v15  ;;  %7360 = vmatprep.subr.bf16.mxu0 %v8430_v8 }
0x17cb   : > { %v4755_v9 = vpop.permute.xlu1 %4754 }
0x17cc   : > { %8005 = vpow2.f32 %v4588_v7  ;;  %v4760_v16 = vsel %vm1052_vm1, %v4755_v9, 0 }
0x17cf   : > { %v4705_v6 = vpop.permute.xlu1 %4704 }
0x17d1   : > { %v8002_v22 = vpop.eup %8001 }
0x17d2   : > { %v4590_v44 = vsel %vm1199_vm4, %v8002_v22, 0.0 }
0x17d3   : > { %4591 = vadd.xlane.f32.xlu0 %v4590_v44 }
0x17d5   : > { %v8004_v63 = vpop.eup %8003 }
0x17d6   : > { %v4593_v25 = vsel %vm1199_vm4, %v8004_v63, 0.0 }
0x17d7   : > { %4594 = vadd.xlane.f32.xlu0 %v4593_v25 }
0x17d9   : > { %v8006_v59 = vpop.eup %8005 }
0x17da   : > { %v4596_v61 = vsel %vm1199_vm4, %v8006_v59, 0.0 }
0x17db   : > { %4597 = vadd.xlane.f32.xlu1 %v4596_v61 }
0x17ec   : > { %4752 = vrot.lane.b32.xlu1 %v9249_v38, %s8434_s27 }
0x17ed   : > { %4608 = vrot.lane.b32.xlu0 %v9241_v56, %s8433_s30 }
0x17f0   : > { %4802 = vrot.lane.b32.xlu1 %v9260_v29, %s8434_s27 }
0x17f1   : > { %4804 = vrot.lane.b32.xlu0 %v9246_v4, %s8434_s27 }
0x17f5   : > { %4854 = vrot.lane.b32.xlu0 %v9258_v26, %s8434_s27 }
0x17f9   : > { %4852 = vrot.lane.b32.xlu0 %v9271_v41, %s8434_s27  ;;  %v4710_v41 = vsel %vm1242_vm2, %v4705_v6, 0 }
0x185c   : > { %v4592_v32 = vpop.xlane.xlu0 %4591 }
0x185d   : > { %8007 = vrcp.f32 %v4592_v32 }
0x1860   : > { %v4595_v38 = vpop.xlane.xlu0 %4594 }
0x1861   : > { %8009 = vrcp.f32 %v4595_v38 }
0x1864   : > { %v4598_v0 = vpop.xlane.xlu1 %4597  ;;  %v4609_v5 = vpop.permute.xlu0 %4608 }
0x1865   : > { %8011 = vrcp.f32 %v4598_v0  ;;  %v4614_v29 = vsel %vm1242_vm2, %v4609_v5, 0 }
0x1866   : > { %7343 = vmatpush3.bf16.msra.mxu1 %v4614_v29 }
0x1867   : > { %7354 = vmatprep.subr.bf16.mxu1 %v8430_v8 }
0x1868   : > { %v4805_v12 = vpop.permute.xlu0 %4804  ;;  %v4753_v23 = vpop.permute.xlu1 %4752 }
0x1869   : > { %v4810_v21 = vsel %vm1052_vm1, %v4805_v12, 0 }
0x186a   : > { %v8008_v4 = vpop.eup %8007 }
0x186b   : > { %v4602_v30 = vmul.f32 %v8008_v4, %v8002_v22 }
0x186c   : > { %v4855_v24 = vpop.permute.xlu0 %4854  ;;  %v4803_v40 = vpop.permute.xlu1 %4802 }
0x186d   : > { %v4605_v26 = vpack.c.bf16 %v4602_v30, %v4602_v30  ;;  %v4860_v43 = vsel %vm1052_vm1, %v4855_v24, 0 }
0x186e   : > { %v8010_v1 = vpop.eup %8009 }
0x186f   : > { %v4603_v42 = vmul.f32 %v8010_v1, %v8004_v63  ;;  %7345 = vmatmul.mubr.msk.bf16.vlgmr.msra.gmra.mxu1 %vm1199_vm4, %v4605_v26 }
0x1870   : > { %7355 = vmatpush3.bf16.msra.mxu1 %v4710_v41  ;;  %7356 = vmatprep.mubr.msk.bf16.mxu1 %vm8431_vm0, %v8430_v8  ;;  %v4853_v28 = vpop.permute.xlu0 %4852 }
0x1871   : > { %v4606_v51 = vpack.c.bf16 %v4603_v42, %v4603_v42  ;;  %7366 = vmatprep.subr.bf16.mxu1 %v8430_v8 }
0x1872   : > { %v8012_v53 = vpop.eup %8011 }
0x1873   : > { %7351 = vmatmul.mubr.msk.bf16.vlgmr.msra.gmra.mxu0 %vm1199_vm4, %v4606_v51  ;;  %v4604_v20 = vmul.f32 %v8012_v53, %v8006_v59 }
0x1874   : > { %7361 = vmatpush3.bf16.xpose.msra.mxu0 %v4760_v16  ;;  %7362 = vmatprep.mubr.msk.bf16.mxu0 %vm8431_vm0, %v8430_v8 }
0x1875   : > { %v4607_v47 = vpack.c.bf16 %v4604_v20, %v4604_v20  ;;  %7372 = vmatprep.subr.bf16.mxu0 %v8430_v8 }
0x1877   : > { %7357 = vmatmul.mubr.msk.bf16.vlgmr.msra.gmra.mxu1 %vm1199_vm4, %v4607_v47 }
0x1878   : > { %7367 = vmatpush3.bf16.xpose.msra.mxu1 %v4810_v21  ;;  %7368 = vmatprep.mubr.msk.bf16.mxu1 %vm8431_vm0, %v8430_v8 }
0x1879   : > { %7378 = vmatprep.subr.bf16.mxu1 %v8430_v8 }
0x187b   : > { %7363 = vmatmul.mubr.msk.bf16.vlgmr.msra.gmra.mxu0 %vm1052_vm1, %v4753_v23 }
0x187c   : > { %7373 = vmatpush3.bf16.xpose.msra.mxu0 %v4860_v43  ;;  %7374 = vmatprep.mubr.msk.bf16.mxu0 %vm8431_vm0, %v8430_v8 }
0x187d   : > { %7384 = vmatprep.subr.bf16.mxu0 %v8430_v8 }
0x187f   : > { %7369 = vmatmul.mubr.msk.bf16.vlgmr.msra.gmra.mxu1 %vm1052_vm1, %v4803_v40 }
0x1880   : > { %7380 = vmatprep.mubr.msk.bf16.mxu1 %vm8431_vm0, %v8430_v8 }
0x1883   : > { %7375 = vmatmul.mubr.msk.bf16.vlgmr.msra.gmra.mxu0 %vm1052_vm1, %v4853_v28 }
0x1884   : > { %7386 = vmatprep.mubr.msk.bf16.mxu0 %vm8431_vm0, %v8430_v8 }
0x192f   : > { %v9469_v33 = vpop.f32.mrf.mxu1 }
0x1931   : > { %v7346_v34 = vpop.f32.mrf.mxu1 }
0x1933   : > { %v4653_v49 = vpop.f32.mrf.mxu1  ;;  %v9471_v46 = vpop.f32.mrf.mxu0 }
0x1934   : > { %v7605_v48 = vpack.i.bf16 %v9471_v46, %v9469_v33 }
0x1935   : > { %v7347_v52 = vpop.f32.mrf.mxu1  ;;  %v7352_v55 = vpop.f32.mrf.mxu0 }
0x1937   : > { %v4701_v27 = vpop.f32.mrf.mxu0  ;;  %v4746_v58 = vpop.f32.mrf.mxu1 }
0x1939   : > { %v7353_v19 = vpop.f32.mrf.mxu0  ;;  %v7358_v15 = vpop.f32.mrf.mxu1 }
0x193b   : > { %v4749_v7 = vpop.f32.mrf.mxu1  ;;  %v4796_v22 = vpop.f32.mrf.mxu0 }
0x193c   : > { %v4902_v44 = vmul.f32 0.17677669, %v4796_v22 }
0x193d   : > { %v7359_v63 = vpop.f32.mrf.mxu1  ;;  %v7364_v25 = vpop.f32.mrf.mxu0 }
0x193e   : > { %v4905_v59 = vsel %vm8846_vm3, %v4902_v44, -1e+30 }
0x193f   : > { %v4799_v61 = vpop.f32.mrf.mxu0  ;;  %v4846_v9 = vpop.f32.mrf.mxu1  ;;  %v4908_v32 = vsel %vm1199_vm4, %v4905_v59, -inf }
0x1940   : > { %v4903_v6 = vmul.f32 0.17677669, %v4846_v9  ;;  %4909 = vmax.xlane.f32.xlu1 %v4908_v32  ;;  %v7768_v61 = vld [vmem:[#allocation9 + $0x70] sm:$0xff]   ;;  %v7769_v9 = vld [vmem:[#allocation9 + $0x68] sm:$0xff]   ;;  %v7770_v32 = vld [vmem:[#allocation9 + $0x60] sm:$0xff]  }
0x1941   : > { %v7365_v38 = vpop.f32.mrf.mxu0  ;;  %v7370_v0 = vpop.f32.mrf.mxu1 }
0x1942   : > { %v4906_v5 = vsel %vm8846_vm3, %v4903_v6, -1e+30  ;;  %v7771_v6 = vld [vmem:[#allocation9 + $0x58] sm:$0xff]   ;;  %v7772_v38 = vld [vmem:[#allocation9 + $0x50] sm:$0xff]   ;;  %v7773_v0 = vld [vmem:[#allocation9 + $0x48] sm:$0xff]  }
0x1943   : > { %v4849_v29 = vpop.f32.mrf.mxu1  ;;  %v4896_v4 = vpop.f32.mrf.mxu0  ;;  %v4911_v30 = vsel %vm1199_vm4, %v4906_v5, -inf }
0x1944   : > { %v4904_v26 = vmul.f32 0.17677669, %v4896_v4  ;;  %4912 = vmax.xlane.f32.xlu0 %v4911_v30 }
0x1945   : > { %v7371_v1 = vpop.f32.mrf.mxu1  ;;  %v7376_v41 = vpop.f32.mrf.mxu0 }
0x1946   : > { %v4907_v42 = vsel %vm8846_vm3, %v4904_v26, -1e+30 }
0x1947   : > { %v4899_v51 = vpop.f32.mrf.mxu0  ;;  %v4914_v53 = vsel %vm1199_vm4, %v4907_v42, -inf }
0x1948   : > { %4915 = vmax.xlane.f32.xlu0 %v4914_v53 }
0x1949   : > { %v7377_v12 = vpop.f32.mrf.mxu0 }
0x1951   : > { %4944 = vrot.lane.b32.xlu1 %v9241_v56, %s8434_s27 }
0x19c9   : > { %v4910_v16 = vpop.xlane.xlu1 %4909 }
0x19ca   : > { %v4917_v20 = vsub.f32 %v4905_v59, %v4910_v16  ;;  %v7767_v59 = vld [vmem:[#allocation9 + $0x78] sm:$0xff]  }
0x19cc   : > { %v4920_v47 = vmul.f32 1.442695, %v4917_v20 }
0x19cd   : > { %v4913_v21 = vpop.xlane.xlu0 %4912  ;;  %v4945_v23 = vpop.permute.xlu1 %4944 }
0x19ce   : > { %8013 = vpow2.f32 %v4920_v47  ;;  %v4918_v24 = vsub.f32 %v4906_v5, %v4913_v21  ;;  %v4950_v43 = vsel %vm1242_vm2, %v4945_v23, 0  ;;  %v7774_v5 = vld [vmem:[#allocation9 + $0x40] sm:$0xff]  }
0x19cf   : > { %7379 = vmatpush3.bf16.msra.mxu1 %v4950_v43 }
0x19d0   : > { %v4922_v54 = vmul.f32 1.442695, %v4918_v24  ;;  %7390 = vmatprep.subr.bf16.mxu1 %v8430_v8 }
0x19d1   : > { %v4916_v40 = vpop.xlane.xlu0 %4915 }
0x19d2   : > { %8015 = vpow2.f32 %v4922_v54  ;;  %v4919_v28 = vsub.f32 %v4907_v42, %v4916_v40 }
0x19d4   : > { %v4924_v34 = vmul.f32 1.442695, %v4919_v28 }
0x19d6   : > { %8017 = vpow2.f32 %v4924_v34 }
0x19db   : > { %v8014_v49 = vpop.eup %8013 }
0x19dc   : > { %v4926_v56 = vsel %vm1199_vm4, %v8014_v49, 0.0 }
0x19dd   : > { %4927 = vadd.xlane.f32.xlu0 %v4926_v56 }
0x19df   : > { %v8016_v52 = vpop.eup %8015 }
0x19e0   : > { %v4929_v55 = vsel %vm1199_vm4, %v8016_v52, 0.0 }
0x19e1   : > { %4930 = vadd.xlane.f32.xlu1 %v4929_v55 }
0x19e3   : > { %v8018_v27 = vpop.eup %8017 }
0x19e4   : > { %v4932_v19 = vsel %vm1199_vm4, %v8018_v27, 0.0 }
0x19e5   : > { %4933 = vadd.xlane.f32.xlu0 %v4932_v19 }
0x19f2   : > { %5040 = vrot.lane.b32.xlu1 %v9306_v31, %s8434_s27 }
0x19f6   : > { %7601 = vrot.lane.b32.xlu1 %v7600_v37, %s8434_s27 }
0x19fa   : > { %5095 = vrot.lane.b32.xlu1 %v9407_v60, %s8434_s27 }
0x19fb   : > { %4992 = vrot.lane.b32.xlu0 %v9269_v39, %s8434_s27  ;;  %s9747_s27 = sld [smem:[#allocation35_spill]] }
0x19fe   : > { %5107 = vrot.lane.b32.xlu1 %v4746_v58, %s8433_s30 }
0x19ff   : > { %7606 = vrot.lane.b32.xlu0 %v7605_v48, %s8433_s30 }
0x1a01   : > { %s700_s23 = scalar_lea.vmem %s9747_s27, %s6496_s29 }
0x1a66   : > { %v4928_v15 = vpop.xlane.xlu0 %4927 }
0x1a67   : > { %8019 = vrcp.f32 %v4928_v15 }
0x1a6a   : > { %v4931_v31 = vpop.xlane.xlu1 %4930 }
0x1a6b   : > { %8021 = vrcp.f32 %v4931_v31 }
0x1a6e   : > { %v4934_v7 = vpop.xlane.xlu0 %4933  ;;  %v5041_v39 = vpop.permute.xlu1 %5040 }
0x1a6f   : > { %8023 = vrcp.f32 %v4934_v7  ;;  %v5046_v63 = vsel %vm1242_vm2, %v5041_v39, 0 }
0x1a72   : > { %v4993_v45 = vpop.permute.xlu0 %4992  ;;  %v7602_v21 = vpop.permute.xlu1 %7601 }
0x1a73   : > { %v4998_v62 = vsel %vm1242_vm2, %v4993_v45, 0  ;;  %v7604_v43 = vunpack.i.h.bf16 %v7602_v21  ;;  %v7603_v54 = vunpack.i.l.bf16 %v7602_v21  ;;  %v7790_v21 = vld [vmem:[#allocation15 + $0x1a8] ss:$16 sps:$4 sm:$0xff]  }
0x1a74   : > { %v8020_v37 = vpop.eup %8019  ;;  %7385 = vmatpush3.bf16.msra.mxu0 %v4998_v62 }
0x1a75   : > { %v4938_v60 = vmul.f32 %v8020_v37, %v8014_v49  ;;  %7396 = vmatprep.subr.bf16.mxu0 %v7767_v59  ;;  %v5125_v49 = vsel %vm1052_vm1, %v9337_v3, %v7604_v43  ;;  %v7793_v43 = vld [vmem:[#allocation15 + $0x180] ss:$16 sps:$4 sm:$0xff]  }
0x1a76   : > { %v5096_v23 = vpop.permute.xlu1 %5095  ;;  %v7607_v24 = vpop.permute.xlu0 %7606 }
0x1a77   : > { %v4941_v22 = vpack.c.bf16 %v4938_v60, %v4938_v60  ;;  %v7609_v40 = vunpack.i.h.bf16 %v7607_v24  ;;  %v7608_v28 = vunpack.i.l.bf16 %v7607_v24  ;;  %v5126_v55 = vsel %vm1052_vm1, %v9339_v2, %v5096_v23  ;;  %v7795_v23 = vld [vmem:[#allocation15 + $0x184] ss:$16 sps:$4 sm:$0xff]   ;;  %v7798_v24 = vld [vmem:[#allocation15 + $0x18c] ss:$16 sps:$4 sm:$0xff]  }
0x1a78   : > { %v8022_v58 = vpop.eup %8021 }
0x1a79   : > { %v4939_v44 = vmul.f32 %v8022_v58, %v8016_v52  ;;  %7381 = vmatmul.mubr.msk.bf16.vlgmr.msra.gmra.mxu1 %vm1199_vm4, %v4941_v22  ;;  %v5124_v52 = vsel %vm1052_vm1, %v9335_v18, %v7603_v54  ;;  %v5128_v15 = vsel %vm2434_vm5, %v5125_v49, %v7609_v40  ;;  %v6695_v58 = vld [vmem:[%s9680_s6 + $0x1] ss:$0 sm:$0xff]  ;;  %v7796_v54 = vld [vmem:[#allocation15 + $0x188] ss:$16 sps:$4 sm:$0xff]   ;;  %v7801_v40 = vld [vmem:[#allocation15 + $0x164] ss:$16 sps:$4 sm:$0xff]  }
0x1a7a   : > { %7391 = vmatpush3.bf16.msra.mxu1 %v5046_v63  ;;  %7392 = vmatprep.mubr.msk.bf16.mxu1 %vm8431_vm0, %v8430_v8  ;;  %v5108_v34 = vpop.permute.xlu1 %5107  ;;  %v5127_v31 = vsel %vm2434_vm5, %v5124_v52, %v7608_v28  ;;  %v7804_v28 = vld [vmem:[#allocation15 + $0x16c] ss:$16 sps:$4 sm:$0xff]   ;;  %v7802_v49 = vld [vmem:[#allocation15 + $0x168] ss:$16 sps:$4 sm:$0xff]  }
0x1a7b   : > { %v4942_v33 = vpack.c.bf16 %v4939_v44, %v4939_v44  ;;  %v5129_v7 = vsel %vm2434_vm5, %v5126_v55, %v5108_v34  ;;  %v7799_v34 = vld [vmem:[#allocation15 + $0x160] ss:$16 sps:$4 sm:$0xff]   ;;  %v7810_v52 = vld [vmem:[#allocation15 + $0x14c] ss:$16 sps:$4 sm:$0xff]  }
0x1a7c   : > { %v8024_v46 = vpop.eup %8023  ;;  %v7805_v55 = vld [vmem:[#allocation15 + $0x140] ss:$16 sps:$4 sm:$0xff]  }
0x1a7d   : > { %v4940_v48 = vmul.f32 %v8024_v46, %v8018_v27  ;;  %7387 = vmatmul.mubr.msk.bf16.vlgmr.msra.gmra.mxu0 %vm1199_vm4, %v4942_v33 }
0x1a7e   : > { %7397 = vmatpush3.bf16.msra.mxu0 %v7767_v59 }
0x1a7f   : > { %v4943_v25 = vpack.c.bf16 %v4940_v48, %v4940_v48  ;;  %7398 = vmatprep.subr.bf16.mxu0 %v7768_v61 }
0x1a81   : > { %7393 = vmatmul.mubr.msk.bf16.vlgmr.msra.gmra.mxu1 %vm1199_vm4, %v4943_v25 }
0x1a82   : > { %5567 = vmatprep.mubr.bf16.mxu1 %v8429_v36  ;;  %7399 = vmatpush3.bf16.msra.mxu0 %v7768_v61  ;;  %v7777_v61 = vld [vmem:[#allocation15 + $0x1e4] ss:$16 sps:$4 sm:$0xff]  }
0x1a83   : > { %7400 = vmatprep.subr.bf16.mxu0 %v7769_v9  ;;  %5535 = vmatprep.subr.bf16.mxu1 %v7777_v61  ;;  %v6697_v61 = vld [vmem:[#allocation14 + $0x1] ss:$0 sm:$0xff] }
0x1a86   : > { %7401 = vmatpush3.bf16.msra.mxu0 %v7769_v9  ;;  %v7778_v9 = vld [vmem:[#allocation15 + $0x1e8] ss:$16 sps:$4 sm:$0xff]  }
0x1a87   : > { %7402 = vmatprep.subr.bf16.mxu0 %v7770_v32 }
0x1a8a   : > { %7403 = vmatpush3.bf16.msra.mxu0 %v7770_v32  ;;  %v7780_v32 = vld [vmem:[#allocation15 + $0x1ec] ss:$16 sps:$4 sm:$0xff]  }
0x1a8b   : > { %7404 = vmatprep.subr.bf16.mxu0 %v7771_v6 }
0x1a8e   : > { %7405 = vmatpush3.bf16.msra.mxu0 %v7771_v6 }
0x1a8f   : > { %7406 = vmatprep.subr.bf16.mxu0 %v7772_v38 }
0x1a92   : > { %7407 = vmatpush3.bf16.msra.mxu0 %v7772_v38 }
0x1a93   : > { %7408 = vmatprep.subr.bf16.mxu0 %v7773_v0 }
0x1a96   : > { %7409 = vmatpush3.bf16.msra.mxu0 %v7773_v0 }
0x1a97   : > { %7410 = vmatprep.subr.bf16.mxu0 %v7774_v5 }
0x1a9a   : > { %7411 = vmatpush3.bf16.msra.mxu0 %v7774_v5 }
0x1a9b   : > { %5586 = vmatprep.subr.bf16.mxu0 %v7780_v32 }
0x1b39   : > { %v4986_v29 = vpop.f32.mrf.mxu1 }
0x1b3b   : > { %v7382_v4 = vpop.f32.mrf.mxu1 }
0x1b3d   : > { %v4989_v30 = vpop.f32.mrf.mxu1  ;;  %v5034_v26 = vpop.f32.mrf.mxu0 }
0x1b3e   : > { %v7610_v1 = vpack.i.bf16 %v5034_v26, %v4986_v29 }
0x1b3f   : > { %v7383_v41 = vpop.f32.mrf.mxu1  ;;  %v7388_v42 = vpop.f32.mrf.mxu0 }
0x1b40   : > { %7611 = vrot.lane.b32.xlu0 %v7610_v1, %s8432_s28  ;;  %v7783_v42 = vld [vmem:[#allocation15 + $0x1c4] ss:$16 sps:$4 sm:$0xff]  }
0x1b41   : > { %v5037_v51 = vpop.f32.mrf.mxu0  ;;  %v5082_v53 = vpop.f32.mrf.mxu1 }
0x1b42   : > { %5119 = vrot.lane.b32.xlu1 %v5082_v53, %s8432_s28  ;;  %v7786_v51 = vld [vmem:[#allocation15 + $0x1cc] ss:$16 sps:$4 sm:$0xff]   ;;  %v7781_v53 = vld [vmem:[#allocation15 + $0x1c0] ss:$16 sps:$4 sm:$0xff]  }
0x1b43   : > { %v7389_v12 = vpop.f32.mrf.mxu0  ;;  %v7394_v16 = vpop.f32.mrf.mxu1 }
0x1b44   : > { %v7784_v12 = vld [vmem:[#allocation15 + $0x1c8] ss:$16 sps:$4 sm:$0xff]   ;;  %v7789_v16 = vld [vmem:[#allocation15 + $0x1a4] ss:$16 sps:$4 sm:$0xff]  }
0x1b45   : > { %v5085_v20 = vpop.f32.mrf.mxu1 }
0x1b46   : > { %v7792_v20 = vld [vmem:[#allocation15 + $0x1ac] ss:$16 sps:$4 sm:$0xff]  }
0x1b47   : > { %v7395_v47 = vpop.f32.mrf.mxu1 }
0x1b48   : > { %v7787_v47 = vld [vmem:[#allocation15 + $0x1a0] ss:$16 sps:$4 sm:$0xff]  }
0x1bb2   : > { %v7612_v56 = vpop.permute.xlu0 %7611 }
0x1bb3   : > { %v7614_v27 = vunpack.i.h.bf16 %v7612_v56  ;;  %v7613_v19 = vunpack.i.l.bf16 %v7612_v56  ;;  %v7807_v56 = vld [vmem:[#allocation15 + $0x144] ss:$16 sps:$4 sm:$0xff]  }
0x1bb4   : > { %v5120_v45 = vpop.permute.xlu1 %5119 }
0x1bb5   : > { %v5132_v62 = vsel %vm2438_vm6, %v5129_v7, %v5120_v45  ;;  %v5130_v3 = vsel %vm2438_vm6, %v5127_v31, %v7613_v19  ;;  %v5131_v37 = vsel %vm2438_vm6, %v5128_v15, %v7614_v27  ;;  %v7808_v27 = vld [vmem:[#allocation15 + $0x148] ss:$16 sps:$4 sm:$0xff]   ;;  %v7813_v19 = vld [vmem:[#allocation15 + $0x124] ss:$16 sps:$4 sm:$0xff]   ;;  %v7816_v15 = vld [vmem:[#allocation15 + $0x12c] ss:$16 sps:$4 sm:$0xff]  }
0x1bb6   : > { %v5151_v60 = vpack.c.bf16 %v5132_v62, %v5132_v62  ;;  %v5150_v18 = vpack.c.bf16 %v5131_v37, %v5130_v3  ;;  %v7811_v31 = vld [vmem:[#allocation15 + $0x120] ss:$16 sps:$4 sm:$0xff]   ;;  %v7814_v7 = vld [vmem:[#allocation15 + $0x128] ss:$16 sps:$4 sm:$0xff]   ;;  %v7819_v45 = vld [vmem:[#allocation15 + $0x104] ss:$16 sps:$4 sm:$0xff]  }
0x1bb7   : > { %v7822_v62 = vld [vmem:[#allocation15 + $0x10c] ss:$16 sps:$4 sm:$0xff]   ;;  %v7817_v3 = vld [vmem:[#allocation15 + $0x100] ss:$16 sps:$4 sm:$0xff]   ;;  %v7820_v37 = vld [vmem:[#allocation15 + $0x108] ss:$16 sps:$4 sm:$0xff]  }
0x1bb8   : > { %7412 = vmatprep.mubr.bf16.mxu0 %v5150_v18 }
0x1bb9   : > { %7413 = vmatmul.mubr.bf16.vlgmr.msra.gmra.mxu0 %v5151_v60 }
0x1bba   : > { %5618 = vmatprep.mubr.bf16.mxu0 %v8429_v36  ;;  %5587 = vmatpush1.bf16.msra.mxu0 %v7778_v9 }
0x1bbb   : > { %5588 = vmatprep.subr.bf16.mxu0 %v7786_v51  ;;  %v7824_v51 = vld [vmem:[#allocation17 + $0x1f8] sm:$0xff]  }
0x1bbe   : > { %5589 = vmatpush1.bf16.msra.mxu0 %v7784_v12  ;;  %v7826_v12 = vld [vmem:[#allocation17 + $0x1b8] sm:$0xff]  }
0x1bbf   : > { %5590 = vmatprep.subr.bf16.mxu0 %v7792_v20  ;;  %v7829_v20 = vld [vmem:[#allocation17 + $0x130] sm:$0xff]  }
0x1bc2   : > { %5591 = vmatpush1.bf16.msra.mxu0 %v7790_v21  ;;  %v7832_v21 = vld [vmem:[#allocation17 + $0x1e8] sm:$0xff]  }
0x1bc3   : > { %5592 = vmatprep.subr.bf16.mxu0 %v7798_v24  ;;  %v7834_v24 = vld [vmem:[#allocation17 + $0x1a8] sm:$0xff]  }
0x1bc6   : > { %5593 = vmatpush1.bf16.msra.mxu0 %v7796_v54  ;;  %v7836_v54 = vld [vmem:[#allocation17 + $0x1e0] sm:$0xff]  }
0x1bc7   : > { %5594 = vmatprep.subr.bf16.mxu0 %v7804_v28  ;;  %v7838_v28 = vld [vmem:[#allocation17 + $0x1a0] sm:$0xff]  }
0x1bca   : > { %5595 = vmatpush1.bf16.msra.mxu0 %v7802_v49  ;;  %v7840_v49 = vld [vmem:[#allocation17 + $0x1d8] sm:$0xff]  }
0x1bcb   : > { %5596 = vmatprep.subr.bf16.mxu0 %v7810_v52  ;;  %v7842_v52 = vld [vmem:[#allocation17 + $0x198] sm:$0xff]  }
0x1bce   : > { %5597 = vmatpush1.bf16.msra.mxu0 %v7808_v27  ;;  %v7844_v27 = vld [vmem:[#allocation17 + $0x1d0] sm:$0xff]  }
0x1bcf   : > { %5598 = vmatprep.subr.bf16.mxu0 %v7816_v15  ;;  %v7846_v15 = vld [vmem:[#allocation17 + $0x190] sm:$0xff]  }
0x1bd2   : > { %5599 = vmatpush1.bf16.msra.mxu0 %v7814_v7  ;;  %v7848_v7 = vld [vmem:[#allocation17 + $0x1c8] sm:$0xff]  }
0x1bd3   : > { %5600 = vmatprep.subr.bf16.mxu0 %v7822_v62  ;;  %v7850_v62 = vld [vmem:[#allocation17 + $0x188] sm:$0xff]  }
0x1bd6   : > { %5601 = vmatpush1.bf16.msra.mxu0 %v7820_v37  ;;  %v7852_v37 = vld [vmem:[#allocation17 + $0x1c0] sm:$0xff]  }
0x1bd7   : > { %7011 = vmatprep.subr.bf16.mxu0 %v7824_v51 }
0x1c79   : > { %v7414_v2 = vpop.f32.mrf.mxu0 }
0x1c7a   : > { %v5250_v63 = vadd.f32 %v7414_v2, %v9201_v14 }
0x1c7b   : > { %v5234_v39 = vpop.f32.mrf.mxu0 }
0x1c7c   : > { %v5248_v22 = vadd.f32 %v5234_v39, %v9193_v35  ;;  %v9538_v25 = vadd.f32 %v6695_v58, %v5250_v63  ;;  %v7775_v35 = vld [vmem:[#allocation15 + $0x1e0] ss:$16 sps:$4 sm:$0xff]  }
0x1c7d   : > { %v7415_v44 = vpop.f32.mrf.mxu0  ;;  %5536 = vmatpush1.bf16.msra.mxu1 %v7775_v35 }
0x1c7e   : > { %v9534_v33 = vadd.f32 %v6695_v58, %v5248_v22  ;;  %5537 = vmatprep.subr.bf16.mxu1 %v7783_v42  ;;  %v7823_v42 = vld [vmem:[#allocation17 + $0x178] sm:$0xff]  }
0x1c7f   : > { %v5237_v46 = vpop.f32.mrf.mxu0 }
0x1c80   : > { %v5249_v48 = vadd.f32 %v5237_v46, %v9197_v57  ;;  %5266 = vadd.xlane.f32.xlu0 %v9534_v33 }
0x1c81   : > { %5538 = vmatpush1.bf16.msra.mxu1 %v7781_v53  ;;  %v7825_v53 = vld [vmem:[#allocation17 + $0x138] sm:$0xff]  }
0x1c82   : > { %v9540_v59 = vadd.f32 %v6695_v58, %v5249_v48  ;;  %5539 = vmatprep.subr.bf16.mxu1 %v7789_v16  ;;  %v7828_v16 = vld [vmem:[#allocation17 + $0x1f0] sm:$0xff]  }
0x1c84   : > { %5270 = vadd.xlane.f32.xlu0 %v9538_v25  ;;  %5268 = vadd.xlane.f32.xlu1 %v9540_v59 }
0x1c85   : > { %5540 = vmatpush1.bf16.msra.mxu1 %v7787_v47  ;;  %v7830_v47 = vld [vmem:[#allocation17 + $0x1b0] sm:$0xff]  }
0x1c86   : > { %5541 = vmatprep.subr.bf16.mxu1 %v7795_v23  ;;  %v7833_v23 = vld [vmem:[#allocation17 + $0x128] sm:$0xff]  }
0x1c89   : > { %5542 = vmatpush1.bf16.msra.mxu1 %v7793_v43  ;;  %v7835_v43 = vld [vmem:[#allocation17 + $0x160] sm:$0xff]  }
0x1c8a   : > { %5543 = vmatprep.subr.bf16.mxu1 %v7801_v40  ;;  %v7837_v40 = vld [vmem:[#allocation17 + $0x120] sm:$0xff]  }
0x1c8d   : > { %5544 = vmatpush1.bf16.msra.mxu1 %v7799_v34  ;;  %v7839_v34 = vld [vmem:[#allocation17 + $0x158] sm:$0xff]  }
0x1c8e   : > { %5545 = vmatprep.subr.bf16.mxu1 %v7807_v56  ;;  %v7841_v56 = vld [vmem:[#allocation17 + $0x118] sm:$0xff]  }
0x1c91   : > { %5546 = vmatpush1.bf16.msra.mxu1 %v7805_v55  ;;  %v7843_v55 = vld [vmem:[#allocation17 + $0x150] sm:$0xff]  }
0x1c92   : > { %5547 = vmatprep.subr.bf16.mxu1 %v7813_v19  ;;  %v7845_v19 = vld [vmem:[#allocation17 + $0x110] sm:$0xff]  }
0x1c95   : > { %5548 = vmatpush1.bf16.msra.mxu1 %v7811_v31  ;;  %v7847_v31 = vld [vmem:[#allocation17 + $0x148] sm:$0xff]  }
0x1c96   : > { %5549 = vmatprep.subr.bf16.mxu1 %v7819_v45  ;;  %v7849_v45 = vld [vmem:[#allocation17 + $0x108] sm:$0xff]  }
0x1c99   : > { %5550 = vmatpush1.bf16.msra.mxu1 %v7817_v3  ;;  %v7851_v3 = vld [vmem:[#allocation17 + $0x140] sm:$0xff]  }
0x1c9a   : > { %6983 = vmatprep.subr.bf16.mxu1 %v7823_v42 }
0x1d09   : > { %v5267_v14 = vpop.xlane.xlu0 %5266 }
0x1d0a   : > { %v5272_v57 = vmul.f32 0.0078125, %v5267_v14 }
0x1d0c   : > { %v9545_v6 = vsub.f32 %v9534_v33, %v5272_v57 }
0x1d0d   : > { %v5271_v38 = vpop.xlane.xlu0 %5270  ;;  %v5269_v0 = vpop.xlane.xlu1 %5268 }
0x1d0e   : > { %v5274_v5 = vmul.f32 0.0078125, %v5271_v38  ;;  %v5273_v29 = vmul.f32 0.0078125, %v5269_v0  ;;  %v5278_v4 = vmul.f32 %v9545_v6, %v9545_v6  ;;  %v6698_v38 = vld [vmem:[%s9684_s10 + $0x1] ss:$0 sm:$0xff] }
0x1d10   : > { %v9550_v30 = vsub.f32 %v9538_v25, %v5274_v5  ;;  %v9553_v26 = vsub.f32 %v9540_v59, %v5273_v29  ;;  %5281 = vadd.xlane.f32.xlu0 %v5278_v4 }
0x1d12   : > { %v5280_v1 = vmul.f32 %v9550_v30, %v9550_v30  ;;  %v5279_v41 = vmul.f32 %v9553_v26, %v9553_v26 }
0x1d14   : > { %5285 = vadd.xlane.f32.xlu1 %v5280_v1  ;;  %5283 = vadd.xlane.f32.xlu0 %v5279_v41 }
0x1d99   : > { %v5282_v60 = vpop.xlane.xlu0 %5281 }
0x1d9a   : > { %v5287_v18 = vmul.f32 0.0078125, %v5282_v60  ;;  %v7853_v60 = vld [vmem:[#allocation17 + $0x100] sm:$0xff]  }
0x1d9c   : > { %v5290_v2 = vadd.f32 1e-05, %v5287_v18  ;;  %v7854_v18 = vld [vmem:[#allocation17 + $0x180] sm:$0xff]  }
0x1d9d   : > { %v5284_v39 = vpop.xlane.xlu0 %5283  ;;  %v5286_v22 = vpop.xlane.xlu1 %5285 }
0x1d9e   : > { %8025 = vrsqrt.f32 %v5290_v2  ;;  %v5288_v58 = vmul.f32 0.0078125, %v5284_v39  ;;  %v5289_v44 = vmul.f32 0.0078125, %v5286_v22  ;;  %v6699_v2 = vld [vmem:[%s9746_s25 + $0x4] sm:$0xf] }
0x1d9f   : > { %v5358_v39 = vrot.slane %v6699_v2, %v8797_v17  ;;  %v5366_v22 = vrot.slane %v6699_v2, %v8786_v11 }
0x1da0   : > { %v5291_v63 = vadd.f32 1e-05, %v5288_v58  ;;  %v5292_v46 = vadd.f32 1e-05, %v5289_v44  ;;  %v5362_v58 = vrot.slane %v6699_v2, %v8792_v13  ;;  %v5370_v44 = vrot.slane %v6699_v2, %v2672_v50 }
0x1da2   : > { %8027 = vrsqrt.f32 %v5291_v63 }
0x1da3   : > { %8029 = vrsqrt.f32 %v5292_v46 }
0x1dab   : > { %v8026_v48 = vpop.eup %8025 }
0x1dac   : > { %v5296_v35 = vmul.f32 %v8026_v48, %v9545_v6 }
0x1dae   : > { %v5305_v57 = vmul.f32 %v6697_v61, %v5296_v35 }
0x1daf   : > { %v8028_v9 = vpop.eup %8027 }
0x1db0   : > { %v8030_v32 = vpop.eup %8029  ;;  %v5297_v14 = vmul.f32 %v8028_v9, %v9553_v26  ;;  %v5314_v29 = vadd.f32 %v6698_v38, %v5305_v57 }
0x1db1   : > { %v5298_v5 = vmul.f32 %v8030_v32, %v9550_v30  ;;  %v7827_v30 = vld [vmem:[#allocation17 + $0x170] sm:$0xff]  }
0x1db2   : > { %v5306_v0 = vmul.f32 %v6697_v61, %v5297_v14 }
0x1db3   : > { %v5307_v41 = vmul.f32 %v6697_v61, %v5298_v5 }
0x1db4   : > { %v5315_v4 = vadd.f32 %v6698_v38, %v5306_v0 }
0x1db5   : > { %v5316_v6 = vadd.f32 %v6698_v38, %v5307_v41 }
0x1db6   : > { %v5350_v1 = vpack.c.bf16 %v5315_v4, %v5314_v29 }
0x1db7   : > { %v5351_v26 = vpack.c.bf16 %v5316_v6, %v5316_v6 }
0x1db8   : > { %5568 = vmatmul.mubr.bf16.vlgmr.msra.gmra.mxu1 %v5350_v1  ;;  %5619 = vmatmul.mubr.bf16.vlgmr.msra.gmra.mxu0 %v5350_v1 }
0x1db9   : > { %5577 = vmatprep.mubr.bf16.mxu1 %v8429_v36  ;;  %5628 = vmatprep.mubr.bf16.mxu0 %v8429_v36  ;;  %v7831_v36 = vld [vmem:[#allocation17 + $0x168] sm:$0xff]  }
0x1dba   : > { %6984 = vmatpush3.bf16.msra.mxu1 %v7825_v53  ;;  %7012 = vmatpush3.bf16.msra.mxu0 %v7826_v12 }
0x1dbb   : > { %6985 = vmatprep.subr.bf16.mxu1 %v7827_v30  ;;  %7013 = vmatprep.subr.bf16.mxu0 %v7828_v16 }
0x1dbe   : > { %6986 = vmatpush3.bf16.msra.mxu1 %v7829_v20  ;;  %7014 = vmatpush3.bf16.msra.mxu0 %v7830_v47 }
0x1dbf   : > { %6987 = vmatprep.subr.bf16.mxu1 %v7831_v36  ;;  %7015 = vmatprep.subr.bf16.mxu0 %v7832_v21 }
0x1dc0   : > { %5578 = vmatmul.mubr.bf16.gmra.mxu1 %v5351_v26  ;;  %5629 = vmatmul.mubr.bf16.gmra.mxu0 %v5351_v26 }
0x1dc2   : > { %6988 = vmatpush3.bf16.msra.mxu1 %v7833_v23  ;;  %7016 = vmatpush3.bf16.msra.mxu0 %v7834_v24 }
0x1dc3   : > { %6989 = vmatprep.subr.bf16.mxu1 %v7835_v43  ;;  %7017 = vmatprep.subr.bf16.mxu0 %v7836_v54 }
0x1dc6   : > { %6990 = vmatpush3.bf16.msra.mxu1 %v7837_v40  ;;  %7018 = vmatpush3.bf16.msra.mxu0 %v7838_v28 }
0x1dc7   : > { %6991 = vmatprep.subr.bf16.mxu1 %v7839_v34  ;;  %7019 = vmatprep.subr.bf16.mxu0 %v7840_v49 }
0x1dca   : > { %6992 = vmatpush3.bf16.msra.mxu1 %v7841_v56  ;;  %7020 = vmatpush3.bf16.msra.mxu0 %v7842_v52 }
0x1dcb   : > { %6993 = vmatprep.subr.bf16.mxu1 %v7843_v55  ;;  %7021 = vmatprep.subr.bf16.mxu0 %v7844_v27 }
0x1dce   : > { %6994 = vmatpush3.bf16.msra.mxu1 %v7845_v19  ;;  %7022 = vmatpush3.bf16.msra.mxu0 %v7846_v15 }
0x1dcf   : > { %6995 = vmatprep.subr.bf16.mxu1 %v7847_v31  ;;  %7023 = vmatprep.subr.bf16.mxu0 %v7848_v7 }
0x1dd2   : > { %6996 = vmatpush3.bf16.msra.mxu1 %v7849_v45  ;;  %7024 = vmatpush3.bf16.msra.mxu0 %v7850_v62 }
0x1dd3   : > { %6997 = vmatprep.subr.bf16.mxu1 %v7851_v3  ;;  %7025 = vmatprep.subr.bf16.mxu0 %v7852_v37 }
0x1dd6   : > { %6998 = vmatpush3.bf16.msra.mxu1 %v7853_v60  ;;  %7026 = vmatpush3.bf16.msra.mxu0 %v7854_v18 }
0x1dd7   : > { %7416 = vmatprep.subr.bf16.mxu1 %v8430_v8 }
0x1e78   : > { %v5569_v63 = vpop.f32.mrf.mxu1  ;;  %v5620_v46 = vpop.f32.mrf.mxu0 }
0x1e79   : > { %v9576_v48 = vadd.f32 %v5569_v63, %v5358_v39  ;;  %v9578_v35 = vadd.f32 %v5620_v46, %v5366_v22 }
0x1e7a   : > { %v5571_v61 = vpop.f32.mrf.mxu1  ;;  %v5622_v9 = vpop.f32.mrf.mxu0 }
0x1e7b   : > { %v6732_v32 = vmul.f32 -1.702, %v9576_v48  ;;  %v6734_v14 = vmul.f32 -1.702, %v9578_v35  ;;  %v9582_v17 = vadd.f32 %v5571_v61, %v5362_v58  ;;  %v9584_v11 = vadd.f32 %v5622_v9, %v5370_v44 }
0x1e7c   : > { %v5573_v13 = vpop.f32.mrf.mxu1  ;;  %v5624_v57 = vpop.f32.mrf.mxu0 }
0x1e7d   : > { %v5661_v38 = vmul.f32 1.442695, %v6732_v32  ;;  %v5665_v50 = vmul.f32 1.442695, %v6734_v14  ;;  %v6733_v0 = vmul.f32 -1.702, %v9582_v17  ;;  %v9587_v5 = vadd.f32 %v5573_v13, %v5358_v39 }
0x1e7e   : > { %v6735_v29 = vmul.f32 -1.702, %v9584_v11  ;;  %v9590_v4 = vadd.f32 %v5624_v57, %v5366_v22  ;;  %v5575_v1 = vpop.f32.mrf.mxu1  ;;  %v5626_v41 = vpop.f32.mrf.mxu0 }
0x1e7f   : > { %8031 = vpow2.f32 %v5661_v38  ;;  %v5663_v6 = vmul.f32 1.442695, %v6733_v0  ;;  %v6736_v26 = vmul.f32 -1.702, %v9587_v5  ;;  %v9593_v42 = vadd.f32 %v5575_v1, %v5362_v58 }
0x1e80   : > { %8033 = vpow2.f32 %v5665_v50  ;;  %v5667_v51 = vmul.f32 1.442695, %v6735_v29  ;;  %v6738_v53 = vmul.f32 -1.702, %v9590_v4  ;;  %v9596_v12 = vadd.f32 %v5626_v41, %v5370_v44  ;;  %v5579_v30 = vpop.f32.mrf.mxu1  ;;  %v5630_v16 = vpop.f32.mrf.mxu0 }
0x1e81   : > { %8035 = vpow2.f32 %v5663_v6  ;;  %v5669_v20 = vmul.f32 1.442695, %v6736_v26  ;;  %v6737_v47 = vmul.f32 -1.702, %v9593_v42  ;;  %v9599_v36 = vadd.f32 %v5579_v30, %v5358_v39 }
0x1e82   : > { %8037 = vpow2.f32 %v5667_v51  ;;  %v5673_v21 = vmul.f32 1.442695, %v6738_v53  ;;  %v6739_v23 = vmul.f32 -1.702, %v9596_v12  ;;  %v9602_v24 = vadd.f32 %v5630_v16, %v5366_v22  ;;  %v5581_v43 = vpop.f32.mrf.mxu1  ;;  %v5632_v54 = vpop.f32.mrf.mxu0 }
0x1e83   : > { %8039 = vpow2.f32 %v5669_v20  ;;  %v5671_v40 = vmul.f32 1.442695, %v6737_v47  ;;  %v6740_v28 = vmul.f32 -1.702, %v9599_v36  ;;  %v9605_v34 = vadd.f32 %v5581_v43, %v5362_v58 }
0x1e84   : > { %8041 = vpow2.f32 %v5673_v21  ;;  %v5675_v49 = vmul.f32 1.442695, %v6739_v23  ;;  %v6742_v56 = vmul.f32 -1.702, %v9602_v24  ;;  %v9608_v52 = vadd.f32 %v5632_v54, %v5370_v44  ;;  %v5583_v55 = vpop.f32.mrf.mxu1  ;;  %v5634_v27 = vpop.f32.mrf.mxu0 }
0x1e85   : > { %8043 = vpow2.f32 %v5671_v40  ;;  %v5677_v19 = vmul.f32 1.442695, %v6740_v28  ;;  %v6741_v15 = vmul.f32 -1.702, %v9605_v34 }
0x1e86   : > { %8045 = vpow2.f32 %v5675_v49  ;;  %v5681_v31 = vmul.f32 1.442695, %v6742_v56  ;;  %v6743_v7 = vmul.f32 -1.702, %v9608_v52  ;;  %v5584_v45 = vpop.f32.mrf.mxu1  ;;  %v5635_v62 = vpop.f32.mrf.mxu0 }
0x1e87   : > { %8047 = vpow2.f32 %v5677_v19  ;;  %v5679_v3 = vmul.f32 1.442695, %v6741_v15 }
0x1e88   : > { %8049 = vpow2.f32 %v5681_v31  ;;  %v5683_v37 = vmul.f32 1.442695, %v6743_v7 }
0x1e89   : > { %8051 = vpow2.f32 %v5679_v3 }
0x1e8a   : > { %8053 = vpow2.f32 %v5683_v37 }
0x1e8c   : > { %v8032_v60 = vpop.eup %8031 }
0x1e8d   : > { %v8034_v18 = vpop.eup %8033  ;;  %v5685_v2 = vadd.f32 1.0, %v8032_v60 }
0x1e8e   : > { %v8036_v39 = vpop.eup %8035  ;;  %v5687_v22 = vadd.f32 1.0, %v8034_v18 }
0x1e8f   : > { %v8038_v58 = vpop.eup %8037  ;;  %8055 = vrcp.f32 %v5685_v2  ;;  %v5686_v44 = vadd.f32 1.0, %v8036_v39 }
0x1e90   : > { %v8040_v63 = vpop.eup %8039  ;;  %8057 = vrcp.f32 %v5687_v22  ;;  %v5688_v46 = vadd.f32 1.0, %v8038_v58  ;;  %v6109_v22 = vstv %s6108_s20 }
0x1e91   : > { %v8042_v61 = vpop.eup %8041  ;;  %8059 = vrcp.f32 %v5686_v44  ;;  %v5689_v9 = vadd.f32 1.0, %v8040_v63  ;;  %vm6110_vm7 = vcmp.eq.s32.totalorder %v8783_v10, %v6109_v22 }
0x1e92   : > { %v8044_v32 = vpop.eup %8043  ;;  %8061 = vrcp.f32 %v5688_v46  ;;  %v5691_v14 = vadd.f32 1.0, %v8042_v61  ;;  %v6777_v46 = vld [vmem:[%s9688_s14 + $0x1] ss:$0 sm:$0xff] }
0x1e93   : > { %v8046_v13 = vpop.eup %8045  ;;  %8063 = vrcp.f32 %v5689_v9  ;;  %v5690_v57 = vadd.f32 1.0, %v8044_v32 }
0x1e94   : > { %v8048_v38 = vpop.eup %8047  ;;  %8065 = vrcp.f32 %v5691_v14  ;;  %v5692_v50 = vadd.f32 1.0, %v8046_v13 }
0x1e95   : > { %v8050_v0 = vpop.eup %8049  ;;  %8067 = vrcp.f32 %v5690_v57  ;;  %v5693_v29 = vadd.f32 1.0, %v8048_v38  ;;  %v6778_v57 = vsel %vm6110_vm7, 1.0, %v8430_v8 }
0x1e96   : > { %v8052_v1 = vpop.eup %8051  ;;  %8069 = vrcp.f32 %v5692_v50  ;;  %v5695_v6 = vadd.f32 1.0, %v8050_v0 }
0x1e97   : > { %v8054_v41 = vpop.eup %8053  ;;  %v5694_v26 = vadd.f32 1.0, %v8052_v1  ;;  %8071 = vrcp.f32 %v5693_v29 }
0x1e98   : > { %v5696_v51 = vadd.f32 1.0, %v8054_v41 }
0x1e99   : > { %8073 = vrcp.f32 %v5694_v26 }
0x1e9a   : > { %8075 = vrcp.f32 %v5696_v51 }
0x1e9b   : > { %8077 = vrcp.f32 %v5695_v6 }
0x1e9c   : > { %v8056_v53 = vpop.eup %8055 }
0x1e9d   : > { %v8058_v30 = vpop.eup %8057  ;;  %v5721_v56 = vmul.f32 %v8056_v53, %v9576_v48 }
0x1e9e   : > { %v8060_v16 = vpop.eup %8059  ;;  %v5723_v15 = vmul.f32 %v8058_v30, %v9578_v35 }
0x1e9f   : > { %v8062_v20 = vpop.eup %8061  ;;  %v5722_v40 = vmul.f32 %v8060_v16, %v9582_v17 }
0x1ea0   : > { %v8064_v47 = vpop.eup %8063  ;;  %v5724_v55 = vmul.f32 %v8062_v20, %v9584_v11 }
0x1ea1   : > { %v8066_v21 = vpop.eup %8065  ;;  %v5725_v43 = vmul.f32 %v8064_v47, %v9587_v5 }
0x1ea2   : > { %v8068_v23 = vpop.eup %8067  ;;  %v5727_v28 = vmul.f32 %v8066_v21, %v9590_v4 }
0x1ea3   : > { %v8070_v54 = vpop.eup %8069  ;;  %v5726_v49 = vmul.f32 %v8068_v23, %v9593_v42  ;;  %v5798_v45 = vpack.c.bf16 %v5725_v43, %v5721_v56 }
0x1ea4   : > { %v5728_v27 = vmul.f32 %v8070_v54, %v9596_v12  ;;  %v8072_v19 = vpop.eup %8071  ;;  %v5800_v3 = vpack.c.bf16 %v5727_v28, %v5723_v15 }
0x1ea5   : > { %v5799_v31 = vpack.c.bf16 %v5726_v49, %v5722_v40  ;;  %v5729_v42 = vmul.f32 %v8072_v19, %v9599_v36 }
0x1ea6   : > { %v8074_v7 = vpop.eup %8073  ;;  %v5801_v5 = vpack.c.bf16 %v5728_v27, %v5724_v55 }
0x1ea7   : > { %v8076_v62 = vpop.eup %8075  ;;  %v5730_v17 = vmul.f32 %v8074_v7, %v9605_v34  ;;  %6030 = vmatprep.mubr.bf16.mxu1 %v5799_v31  ;;  %v5802_v37 = vpack.c.bf16 %v5729_v42, %v5729_v42 }
0x1ea8   : > { %v8078_v4 = vpop.eup %8077  ;;  %v5732_v48 = vmul.f32 %v8076_v62, %v9608_v52  ;;  %6078 = vmatprep.mubr.bf16.mxu0 %v5801_v5  ;;  %6031 = vmatmul.mubr.bf16.vlgmr.msra.gmra.mxu1 %v5798_v45 }
0x1ea9   : > { %v5803_v11 = vpack.c.bf16 %v5730_v17, %v5730_v17  ;;  %6079 = vmatmul.mubr.bf16.vlgmr.msra.gmra.mxu0 %v5800_v3  ;;  %v5731_v12 = vmul.f32 %v8078_v4, %v9602_v24 }
0x1eaa   : > { %v5805_v35 = vpack.c.bf16 %v5732_v48, %v5732_v48 }
0x1eab   : > { %6038 = vmatprep.mubr.bf16.mxu1 %v5803_v11  ;;  %v5804_v60 = vpack.c.bf16 %v5731_v12, %v5731_v12 }
0x1eac   : > { %6086 = vmatprep.mubr.bf16.mxu0 %v5805_v35 }
0x1eb0   : > { %6039 = vmatmul.mubr.bf16.gmra.mxu1 %v5802_v37 }
0x1eb1   : > { %6087 = vmatmul.mubr.bf16.gmra.mxu0 %v5804_v60  ;;  %7432 = vmatprep.mubr.msk.bf16.mxu1 %vm8431_vm0, %v8430_v8 }
0x1f68   : > { %v6999_v34 = vpop.f32.mrf.mxu1 }
0x1f69   : > { %v7027_v52 = vpop.f32.mrf.mxu0 }
0x1f6a   : > { %v7000_v18 = vpop.f32.mrf.mxu1 }
0x1f6b   : > { %v7001_v2 = vadd.f32 %v7000_v18, %v6999_v34  ;;  %v7028_v39 = vpop.f32.mrf.mxu0 }
0x1f6c   : > { %v7029_v36 = vadd.f32 %v7028_v39, %v7027_v52  ;;  %v7002_v58 = vpop.f32.mrf.mxu1 }
0x1f6d   : > { %v7030_v44 = vpop.f32.mrf.mxu0 }
0x1f6e   : > { %v6081_v24 = vadd.f32 %v7029_v36, %v7001_v2  ;;  %v7003_v63 = vpop.f32.mrf.mxu1 }
0x1f6f   : > { %v7004_v61 = vadd.f32 %v7003_v63, %v7002_v58  ;;  %v7031_v9 = vpop.f32.mrf.mxu0  ;;  %v7855_v63 = vld [vmem:[#allocation18 + $0x38] sm:$0xff]  }
0x1f70   : > { %v6094_v32 = vadd.f32 %v6081_v24, %v9534_v33  ;;  %v7032_v14 = vadd.f32 %v7031_v9, %v7030_v44  ;;  %v7005_v13 = vpop.f32.mrf.mxu1  ;;  %7417 = vmatpush3.bf16.msra.mxu1 %v7855_v63  ;;  %v7858_v9 = vld [vmem:[#allocation18 + $0x20] sm:$0xff]  }
0x1f71   : > { %v7033_v38 = vpop.f32.mrf.mxu0  ;;  %7418 = vmatprep.subr.bf16.mxu1 %v8430_v8 }
0x1f72   : > { %v6105_v50 = vadd.f32 %v6777_v46, %v6094_v32  ;;  %v6084_v0 = vadd.f32 %v7032_v14, %v7004_v61  ;;  %v7006_v29 = vpop.f32.mrf.mxu1  ;;  %v7857_v61 = vld [vmem:[#allocation18 + $0x28] sm:$0xff]   ;;  %v7859_v32 = vld [vmem:[#allocation18 + $0x18] sm:$0xff]   ;;  %v7860_v14 = vld [vmem:[#allocation18 + $0x10] sm:$0xff]  }
0x1f73   : > { %v7007_v1 = vadd.f32 %v7006_v29, %v7005_v13  ;;  %v7034_v41 = vpop.f32.mrf.mxu0  ;;  %v7861_v13 = vld [vmem:[#allocation18 + $0x8] sm:$0xff]  }
0x1f74   : > { %v6113_v10 = vmul.f32 %v6778_v57, %v6105_v50  ;;  %v6095_v6 = vadd.f32 %v6084_v0, %v9540_v59  ;;  %v7035_v26 = vadd.f32 %v7034_v41, %v7033_v38  ;;  %v7008_v51 = vpop.f32.mrf.mxu1 }
0x1f75   : > { %v7036_v53 = vpop.f32.mrf.mxu0 }
0x1f76   : > { %v6116_v30 = vrot.slane %v6113_v10, 4  ;;  %v6106_v16 = vadd.f32 %v6777_v46, %v6095_v6  ;;  %v6089_v20 = vadd.f32 %v7035_v26, %v7007_v1  ;;  %v7009_v33 = vpop.f32.mrf.mxu1  ;;  %v6779_v1 = vld [vmem:[%s9689_s15] ss:$0 sm:$0xff] }
0x1f77   : > { %v7037_v47 = vpop.f32.mrf.mxu0  ;;  %v6780_v26 = vld [vmem:[%s9690_s16] ss:$0 sm:$0xff] }
0x1f78   : > { %v6117_v21 = vadd.f32 %v6116_v30, %v6113_v10  ;;  %v6114_v23 = vmul.f32 %v6778_v57, %v6106_v16  ;;  %v6096_v43 = vadd.f32 %v6089_v20, %v9538_v25 }
0x1f7a   : > { %v6122_v54 = vrot.slane %v6114_v23, 4  ;;  %v6107_v40 = vadd.f32 %v6777_v46, %v6096_v43  ;;  %v6118_v28 = vrot.slane %v6117_v21, 2  ;;  %v7856_v46 = vld [vmem:[#allocation18 + $0x30] sm:$0xff]  }
0x1f7b   : > { %7419 = vmatpush3.bf16.msra.mxu1 %v7856_v46 }
0x1f7c   : > { %v6123_v49 = vadd.f32 %v6122_v54, %v6114_v23  ;;  %v6115_v56 = vmul.f32 %v6778_v57, %v6107_v40  ;;  %v6119_v59 = vadd.f32 %v6118_v28, %v6117_v21  ;;  %7420 = vmatprep.subr.bf16.mxu1 %v8430_v8  ;;  %v7862_v57 = vld [vmem:[#allocation18] sm:$0xff]  }
0x1f7e   : > { %v6124_v55 = vrot.slane %v6123_v49, 2  ;;  %v6128_v27 = vrot.slane %v6115_v56, 4  ;;  %v6120_v45 = vrot.slane %v6119_v59, 1 }
0x1f7f   : > { %7421 = vmatpush3.bf16.msra.mxu1 %v7857_v61 }
0x1f80   : > { %v6129_v19 = vadd.f32 %v6128_v27, %v6115_v56  ;;  %v6125_v15 = vadd.f32 %v6124_v55, %v6123_v49  ;;  %v6121_v17 = vadd.f32 %v6120_v45, %v6119_v59  ;;  %7422 = vmatprep.subr.bf16.mxu1 %v8430_v8 }
0x1f82   : > { %v6126_v31 = vrot.slane %v6125_v15, 1  ;;  %v6130_v7 = vrot.slane %v6129_v19, 2 }
0x1f83   : > { %7423 = vmatpush3.bf16.msra.mxu1 %v7858_v9 }
0x1f84   : > { %v6131_v5 = vadd.f32 %v6130_v7, %v6129_v19  ;;  %v6127_v62 = vadd.f32 %v6126_v31, %v6125_v15  ;;  %7424 = vmatprep.subr.bf16.mxu1 %v8430_v8 }
0x1f86   : > { %v6132_v3 = vrot.slane %v6131_v5, 1  ;;  %v6140_v4 = vsel %vm6139_vm8, %v6127_v62, %v6121_v17 }
0x1f87   : > { %7425 = vmatpush3.bf16.msra.mxu1 %v7859_v32 }
0x1f88   : > { %v6133_v25 = vadd.f32 %v6132_v3, %v6131_v5  ;;  %7426 = vmatprep.subr.bf16.mxu1 %v8430_v8 }
0x1f8a   : > { %v6142_v48 = vsel %vm6141_vm9, %v6133_v25, %v6140_v4 }
0x1f8b   : > { %v6145_v11 = vsel %vm6144_vm10, %v6142_v48, 0.0  ;;  %7427 = vmatpush3.bf16.msra.mxu1 %v7860_v14 }
0x1f8c   : > { %6146 = vadd.xlane.f32.xlu0 %v6145_v11  ;;  %7428 = vmatprep.subr.bf16.mxu1 %v8430_v8 }
0x1f8f   : > { %7429 = vmatpush3.bf16.msra.mxu1 %v7861_v13 }
0x1f90   : > { %7430 = vmatprep.subr.bf16.mxu1 %v8430_v8 }
0x1f93   : > { %7431 = vmatpush3.bf16.msra.mxu1 %v7862_v57 }
0x2015   : > { %v6147_v42 = vpop.xlane.xlu0 %6146 }
0x2016   : > { %v6148_v35 = vmul.f32 0.0078125, %v6147_v42 }
0x2018   : > { %v6150_v12 = vrot.slane %v6148_v35, 1  ;;  %v6151_v37 = vrot.slane %v6148_v35, 2  ;;  %v6155_v60 = vsub.f32 %v6121_v17, %v6148_v35 }
0x201a   : > { %v6156_v34 = vsub.f32 %v6127_v62, %v6150_v12  ;;  %v6157_v52 = vsub.f32 %v6133_v25, %v6151_v37  ;;  %v6158_v39 = vmul.f32 %v6155_v60, %v6155_v60 }
0x201c   : > { %v6159_v18 = vmul.f32 %v6156_v34, %v6156_v34  ;;  %v6160_v2 = vmul.f32 %v6157_v52, %v6157_v52 }
0x201e   : > { %v6164_v22 = vrot.slane %v6159_v18, 7  ;;  %v6166_v36 = vrot.slane %v6160_v2, 6 }
0x2020   : > { %v6165_v58 = vsel %vm6139_vm8, %v6164_v22, %v6158_v39 }
0x2021   : > { %v6167_v44 = vsel %vm6141_vm9, %v6166_v36, %v6165_v58 }
0x2022   : > { %v6169_v24 = vsel %vm6144_vm10, %v6167_v44, 0.0 }
0x2023   : > { %6170 = vadd.xlane.f32.xlu1 %v6169_v24 }
0x20ac   : > { %v6171_v38 = vpop.xlane.xlu1 %6170 }
0x20ad   : > { %v6172_v50 = vmul.f32 0.0078125, %v6171_v38 }
0x20af   : > { %v6173_v0 = vadd.f32 1e-05, %v6172_v50 }
0x20b1   : > { %8079 = vrsqrt.f32 %v6173_v0 }
0x20be   : > { %v8080_v29 = vpop.eup %8079 }
0x20bf   : > { %v6176_v41 = vrot.slane %v8080_v29, 1  ;;  %v6177_v10 = vrot.slane %v8080_v29, 2  ;;  %v6181_v6 = vmul.f32 %v8080_v29, %v6155_v60 }
0x20c1   : > { %v6182_v51 = vmul.f32 %v6176_v41, %v6156_v34  ;;  %v6183_v53 = vmul.f32 %v6177_v10, %v6157_v52  ;;  %v6190_v8 = vmul.f32 %v6779_v1, %v6181_v6 }
0x20c3   : > { %v6191_v30 = vmul.f32 %v6779_v1, %v6182_v51  ;;  %v6192_v16 = vmul.f32 %v6779_v1, %v6183_v53  ;;  %v6199_v20 = vadd.f32 %v6780_v26, %v6190_v8 }
0x20c5   : > { %v6200_v33 = vadd.f32 %v6780_v26, %v6191_v30  ;;  %v6201_v47 = vadd.f32 %v6780_v26, %v6192_v16  ;;  %v6218_v21 = vpack.c.bf16 %v6199_v20, %v6199_v20 }
0x20c7   : > { %v6219_v23 = vpack.c.bf16 %v6200_v33, %v6200_v33  ;;  %v6220_v43 = vpack.c.bf16 %v6201_v47, %v6201_v47  ;;  %v6224_v28 = vunpack.c.l.b16 %v6218_v21 }
0x20c9   : > { %v6225_v54 = vunpack.c.l.b16 %v6219_v23  ;;  %v6226_v40 = vunpack.c.l.b16 %v6220_v43 }
0x20cb   : > { %v6227_v49 = vrot.slane %v6225_v54, 7  ;;  %v6229_v56 = vrot.slane %v6226_v40, 6 }
0x20cd   : > { %v6228_v55 = vsel %vm6139_vm8, %v6227_v49, %v6224_v28 }
0x20ce   : > { %v6230_v27 = vsel %vm6141_vm9, %v6229_v56, %v6228_v55 }
0x20cf   : > { %v6231_v59 = vpack.c.b16 %v6230_v27, %v6230_v27 }
0x20d1   : > { %7433 = vmatmul.mubr.bf16.vlgmr.msra.gmra.mxu1 %v6231_v59 }
0x2191   : > { %v6315_v19 = vpop.f32.mrf.mxu1 }
0x2192   : > { %6321 = vst [vmem:[%s700_s23] sm:$0x7] %v6315_v19 }
0x2193   : > { %v7434_v15 = vpop.f32.mrf.mxu1 }
0x2195   : > { %v6318_v31 = vpop.f32.mrf.mxu1 }
0x2197   : > { %v7435_v7 = vpop.f32.mrf.mxu1 }
0x2198 PF: > { %p37_p9 = scmp.ge.s32.totalorder %s8667_s24, 4   ;;  %s9748_s30 = smov %s8399_s0 }
0x2199   : > { %s9749_s0 = smov %s8403_s19  ;;  %s9750_s19 = smov %s8679_s26 }
0x219a   : > { %s9751_s1 = smov %s8667_s24  ;;  %39 = sbr.rel (!%p37_p9) target bundleno = 28 (0x1c), region = 176 }
0x219f   :  { %6341 = vsyncpa [#allocation5], 1 }
0x21a0   :  { %6343 = vsyncpa [#allocation5 + $0x1], 1 }
0x21a1   :  { %6344 = vsyncpa [#allocation7], 1 }
0x21a2   :  { %6345 = vsyncpa [#allocation10], 1 }
0x21a3   :  { %6346 = vsyncpa [#allocation13], 1 }
0x21a4   :  { %6347 = vsyncpa [#allocation16], 1 }
0x21a5   :  { %6348 = vsyncpa [#allocation19], 1 }

</bundles_post_ra>
